<compile_context>
chip_gen: v5e
topology: v5e:2x2
jax: 0.10.0
libtpu: 0.0.40
codegen_flags: <defaults>
</compile_context>

<pallas_src>
import functools
import math

import jax
import jax.numpy as jnp
from jax import lax
from jax.experimental import pallas as pl
from jax.experimental.pallas import tpu as pltpu


# ----------------------------- fused Pallas kernel ------------------------------

def _lstm_gates(g, c, H):
    """PyTorch gate order i, f, g, o.  sigmoid(x) == 0.5*(tanh(0.5*x)+1): EUP tanh, no divide."""
    s_if = 0.5 * (jnp.tanh(0.5 * g[:, :2 * H]) + 1.0)        # i and f sigmoids as one slab
    i = s_if[:, :H]
    f = s_if[:, H:]
    g_c = jnp.tanh(g[:, 2 * H:3 * H])
    o = 0.5 * (jnp.tanh(0.5 * g[:, 3 * H:]) + 1.0)
    c_new = f * c + i * g_c
    h_new = o * jnp.tanh(c_new)
    return h_new, c_new


def _fused_lstm_head_kernel(
        x_ref, demo_ref,
        wih0_ref, whh0_ref, b0_ref, wih1_ref, whh1_ref, b1_ref,
        wd1_ref, bd1_ref, wd2_ref, bd2_ref, wd3_ref, bd3_ref,
        ws1e_ref, ws1d_ref, bs1_ref, wfc2_ref, bfc2_ref, wfc3_ref, bfc3_ref,
        o_ref,
        g_ref, h_all_ref, feat_ref,
        *, S, N, H):
    """x_ref: (S*N, I) bf16 rows; step s owns rows [s*N, (s+1)*N).  Everything VMEM-resident."""
    f32 = jnp.float32
    bf16 = jnp.bfloat16

    def row_start(s):
        r = s * N
        if N % 8 == 0:                      # static condition; aligned-sublane hint
            r = pl.multiple_of(r, 8)
        return r

    # ---- layer 0: bulk input projection (one big matmul, hoisted off the serial path) ----
    g_ref[...] = (jnp.dot(x_ref[...], wih0_ref[...], preferred_element_type=f32)
                  + b0_ref[...])

    zeros = jnp.zeros((N, H), f32)

    # ---- layer 0 recurrence: only the Whh0 push is per-step ----
    whh0 = whh0_ref[...]

    def step0(s, carry):
        h, c = carry
        r = row_start(s)
        g = g_ref[pl.ds(r, N), :] + jnp.dot(h.astype(bf16), whh0,
                                            preferred_element_type=f32)
        h_new, c_new = _lstm_gates(g, c, H)
        h_all_ref[pl.ds(r, N), :] = h_new
        return h_new, c_new

    lax.fori_loop(0, S, step0, (zeros, zeros), unroll=True)

    # ---- layer 1: bulk input projection over ALL layer-0 hidden states (reuses g_ref) ----
    g_ref[...] = (jnp.dot(h_all_ref[...].astype(bf16), wih1_ref[...],
                          preferred_element_type=f32)
                  + b1_ref[...])

    # ---- layer 1 recurrence ----
    whh1 = whh1_ref[...]

    def step1(s, carry):
        h, c = carry
        r = row_start(s)
        g = g_ref[pl.ds(r, N), :] + jnp.dot(h.astype(bf16), whh1,
                                            preferred_element_type=f32)
        h_new, c_new = _lstm_gates(g, c, H)
        # `output[:, -1, :]` only consumes LSTM-batch row N-1 of the top-layer hidden state.
        feat_ref[pl.ds(s, 1), :] = h_new[N - 1:N, :]
        return h_new, c_new

    lax.fori_loop(0, S, step1, (zeros, zeros), unroll=True)

    # ---- fused head epilogue: demo MLP + split shared1(+BN) + fc2(+BN) + fc3 ----
    ecg_feat = feat_ref[...]                                   # (S, H) f32
    demo = demo_ref[...]                                       # (S, 2) f32
    # Linear(2,32) as VPU broadcast-mul-adds (a K=2 matmul would waste an MXU pass).
    d = demo[:, 0:1] * wd1_ref[0:1, :] + demo[:, 1:2] * wd1_ref[1:2, :] + bd1_ref[...]
    d = jnp.maximum(d, 0.0)
    d = jnp.maximum(jnp.dot(d, wd2_ref[...], preferred_element_type=f32) + bd2_ref[...], 0.0)
    d = jnp.dot(d, wd3_ref[...], preferred_element_type=f32) + bd3_ref[...]
    # shared1 on cat(ecg, demo) == split matmul (no in-kernel concat); BN folded into W/b.
    z = (jnp.dot(ecg_feat, ws1e_ref[...], preferred_element_type=f32)
         + jnp.dot(d, ws1d_ref[...], preferred_element_type=f32)
         + bs1_ref[...])
    z = jnp.maximum(z, 0.0)
    z = jnp.maximum(jnp.dot(z, wfc2_ref[...], preferred_element_type=f32) + bfc2_ref[...], 0.0)
    o_ref[...] = jnp.dot(z, wfc3_ref[...], preferred_element_type=f32) + bfc3_ref[...]


# ------------------------------ model wrapper ------------------------------

def lstm_model_forward(params, ecg, demo):
    """LSTM.forward(ecg, demo, which='both').  ecg: (B, 12, T), demo: (B, 2) -> (B, 2)."""
    p_lstm = params["lstm"]
    p_head = params["head"]
    B, C, T = ecg.shape
    H = p_lstm["whh0"].shape[0]
    n_out = p_head["wfc3"].shape[1]

    # .permute(0, 2, 1); flatten (recurrence step, LSTM batch) into rows; bf16 MXU operand.
    x2d = jnp.transpose(ecg, (0, 2, 1)).reshape(B * T, C).astype(jnp.bfloat16)

    kernel = functools.partial(_fused_lstm_head_kernel, S=B, N=T, H=H)
    # TODO(synk): for very long sequences the resident (B*T, 4H) f32 gate buffer must be chunked /
    # streamed (budget against 64 MiB VMEM on v7x); at these sizes it is ~64 KB and trivially fits.
    return pl.pallas_call(
        kernel,
        out_shape=jax.ShapeDtypeStruct((B, n_out), jnp.float32),
        scratch_shapes=[
            pltpu.VMEM((B * T, 4 * H), jnp.float32),   # gate buffer, reused by layer 0 and layer 1
            pltpu.VMEM((B * T, H), jnp.float32),       # all layer-0 hidden states
            pltpu.VMEM((B, H), jnp.float32),           # per-step top-layer h of LSTM-batch row N-1
        ],
    )(x2d, demo.astype(jnp.float32),
      p_lstm["wih0"], p_lstm["whh0"], p_lstm["b0"],
      p_lstm["wih1"], p_lstm["whh1"], p_lstm["b1"],
      p_head["wd1"], p_head["bd1"], p_head["wd2"], p_head["bd2"], p_head["wd3"], p_head["bd3"],
      p_head["ws1_ecg"], p_head["ws1_demo"], p_head["bs1"],
      p_head["wfc2"], p_head["bfc2"], p_head["wfc3"], p_head["bfc3"])


# --------------------------- parameter construction -------------------------

_BN_EPS = 1e-5


def _uniform(key, shape, bound):
    return jax.random.uniform(key, shape, jnp.float32, -bound, bound)


def _linear(key, d_in, d_out):
    k1, k2 = jax.random.split(key)
    bound = 1.0 / math.sqrt(d_in)
    return _uniform(k1, (d_in, d_out), bound), _uniform(k2, (d_out,), bound)


def _bn_fold(key, n):
    ks = jax.random.split(key, 4)
    gamma = jax.random.uniform(ks[0], (n,), jnp.float32, 0.5, 1.5)
    beta = 0.1 * jax.random.normal(ks[1], (n,), jnp.float32)
    rmean = 0.1 * jax.random.normal(ks[2], (n,), jnp.float32)
    rvar = jax.random.uniform(ks[3], (n,), jnp.float32, 0.5, 1.5)
    s = gamma / jnp.sqrt(rvar + _BN_EPS)
    return s, beta - rmean * s


def make_lstm_params(key, input_size, hidden):
    ks = jax.random.split(key, 8)
    k = 1.0 / math.sqrt(hidden)
    p = {}
    # Weight matrices stored bf16 (MXU operands); biases / state stay f32.
    p["wih0"] = _uniform(ks[0], (input_size, 4 * hidden), k).astype(jnp.bfloat16)
    p["whh0"] = _uniform(ks[1], (hidden, 4 * hidden), k).astype(jnp.bfloat16)
    p["b0"] = (_uniform(ks[2], (4 * hidden,), k)
               + _uniform(ks[3], (4 * hidden,), k)).reshape(1, 4 * hidden)   # b_ih + b_hh
    p["wih1"] = _uniform(ks[4], (hidden, 4 * hidden), k).astype(jnp.bfloat16)
    p["whh1"] = _uniform(ks[5], (hidden, 4 * hidden), k).astype(jnp.bfloat16)
    p["b1"] = (_uniform(ks[6], (4 * hidden,), k)
               + _uniform(ks[7], (4 * hidden,), k)).reshape(1, 4 * hidden)
    return p


def make_head_params(key, hidden):
    ks = jax.random.split(key, 8)
    p = {}
    w, b = _linear(ks[0], 2, 32);  p["wd1"], p["bd1"] = w, b.reshape(1, -1)
    w, b = _linear(ks[1], 32, 64); p["wd2"], p["bd2"] = w, b.reshape(1, -1)
    w, b = _linear(ks[2], 64, 64); p["wd3"], p["bd3"] = w, b.reshape(1, -1)

    # shared1: Linear(hidden+64, hidden) + shared2: BatchNorm(hidden), folded (eval mode).
    w, b = _linear(ks[3], hidden + 64, hidden)
    s, sh = _bn_fold(ks[4], hidden)
    wf = w * s[None, :]
    bf = b * s + sh
    p["ws1_ecg"] = wf[:hidden, :]      # rows that multiply the LSTM features
    p["ws1_demo"] = wf[hidden:, :]     # rows that multiply the demo features
    p["bs1"] = bf.reshape(1, -1)

    # fc2 + bn2, folded.
    w, b = _linear(ks[5], hidden, hidden)
    s, sh = _bn_fold(ks[6], hidden)
    p["wfc2"] = w * s[None, :]
    p["bfc2"] = (b * s + sh).reshape(1, -1)

    # fc3
    w, b = _linear(ks[7], hidden, 2)
    p["wfc3"], p["bfc3"] = w, b.reshape(1, -1)
    return p


# ------------------------------------ main -----------------------------------

if __name__ == "__main__":
    B, C_IN, T, HIDDEN = 2, 12, 8, 256   # ecg: (batch, 12 leads, seq); hidden_size=256 (module default)

    key = jax.random.PRNGKey(0)
    k_ecg, k_demo, k_lstm, k_head = jax.random.split(key, 4)
    ecg = jax.random.normal(k_ecg, (B, C_IN, T), jnp.float32)
    demo = jax.random.normal(k_demo, (B, 2), jnp.float32)

    params = dict(
        lstm=make_lstm_params(k_lstm, C_IN, HIDDEN),
        head=make_head_params(k_head, HIDDEN),
    )

    fwd = jax.jit(lstm_model_forward)
    out = jax.block_until_ready(fwd(params, ecg, demo))
    assert out.shape == (B, 2), out.shape
    print("KERNEL_OK")
</pallas_src>

<mosaic_0001>
module attributes {stable_mosaic.version = 11 : i64} {
  func.func @_fused_lstm_head_kernel(%arg0: memref<16x12xbf16, #tpu.memory_space<vmem>>, %arg1: memref<2x2xf32, #tpu.memory_space<vmem>>, %arg2: memref<12x1024xbf16, #tpu.memory_space<vmem>>, %arg3: memref<256x1024xbf16, #tpu.memory_space<vmem>>, %arg4: memref<1x1024xf32, #tpu.memory_space<vmem>>, %arg5: memref<256x1024xbf16, #tpu.memory_space<vmem>>, %arg6: memref<256x1024xbf16, #tpu.memory_space<vmem>>, %arg7: memref<1x1024xf32, #tpu.memory_space<vmem>>, %arg8: memref<2x32xf32, #tpu.memory_space<vmem>>, %arg9: memref<1x32xf32, #tpu.memory_space<vmem>>, %arg10: memref<32x64xf32, #tpu.memory_space<vmem>>, %arg11: memref<1x64xf32, #tpu.memory_space<vmem>>, %arg12: memref<64x64xf32, #tpu.memory_space<vmem>>, %arg13: memref<1x64xf32, #tpu.memory_space<vmem>>, %arg14: memref<256x256xf32, #tpu.memory_space<vmem>>, %arg15: memref<64x256xf32, #tpu.memory_space<vmem>>, %arg16: memref<1x256xf32, #tpu.memory_space<vmem>>, %arg17: memref<256x256xf32, #tpu.memory_space<vmem>>, %arg18: memref<1x256xf32, #tpu.memory_space<vmem>>, %arg19: memref<256x2xf32, #tpu.memory_space<vmem>>, %arg20: memref<1x2xf32, #tpu.memory_space<vmem>>, %arg21: memref<2x2xf32, #tpu.memory_space<vmem>>, %arg22: memref<16x1024xf32, #tpu.memory_space<vmem>>, %arg23: memref<16x256xf32, #tpu.memory_space<vmem>>, %arg24: memref<2x256xf32, #tpu.memory_space<vmem>>) attributes {dimension_semantics = [], scalar_prefetch = 0 : i64, scratch_operands = 3 : i64, tpu.core_type = #tpu.core_type<tc>} {
    %c0 = arith.constant 0 : index
    %c0_0 = arith.constant 0 : index
    %0 = vector.load %arg0[%c0, %c0_0] : memref<16x12xbf16, #tpu.memory_space<vmem>>, vector<16x12xbf16>
    %c0_1 = arith.constant 0 : index
    %c0_2 = arith.constant 0 : index
    %1 = vector.load %arg2[%c0_1, %c0_2] : memref<12x1024xbf16, #tpu.memory_space<vmem>>, vector<12x1024xbf16>
    %cst = arith.constant dense<0.000000e+00> : vector<16x1024xf32>
    %2 = tpu.matmul %0, %1, %cst {dimension_numbers = #tpu.dot_dimension_numbers<[1], [0], [0], [1], [0, 0, 1, 1], [], []>} : vector<16x12xbf16>, vector<12x1024xbf16>, vector<16x1024xf32> -> vector<16x1024xf32>
    %c0_3 = arith.constant 0 : index
    %c0_4 = arith.constant 0 : index
    %3 = vector.load %arg4[%c0_3, %c0_4] : memref<1x1024xf32, #tpu.memory_space<vmem>>, vector<1x1024xf32>
    %4 = vector.broadcast %3 : vector<1x1024xf32> to vector<16x1024xf32>
    %5 = arith.addf %2, %4 : vector<16x1024xf32>
    %c0_5 = arith.constant 0 : index
    %c0_6 = arith.constant 0 : index
    %6 = vector.load %arg22[%c0_5, %c0_6] : memref<16x1024xf32, #tpu.memory_space<vmem>>, vector<16x1024xf32>
    tpu.vector_store %arg22[%c0_5, %c0_6], %5 {strides = array<i32>} : memref<16x1024xf32, #tpu.memory_space<vmem>>, vector<16x1024xf32>,
    %cst_7 = arith.constant 0.000000e+00 : f32
    %7 = vector.broadcast %cst_7 : f32 to vector<8x256xf32>
    %c0_8 = arith.constant 0 : index
    %c0_9 = arith.constant 0 : index
    %8 = vector.load %arg3[%c0_8, %c0_9] : memref<256x1024xbf16, #tpu.memory_space<vmem>>, vector<256x1024xbf16>
    %c0_i32 = arith.constant 0 : i32
    %c8_i32 = arith.constant 8 : i32
    %9 = arith.muli %c0_i32, %c8_i32 : i32
    %10 = tpu.assume_multiple %9, 8 : i32
    %11 = arith.index_cast %10 : i32 to index
    %c0_10 = arith.constant 0 : index
    %12 = vector.load %arg22[%11, %c0_10] : memref<16x1024xf32, #tpu.memory_space<vmem>>, vector<8x1024xf32>
    %13 = arith.truncf %7 : vector<8x256xf32> to vector<8x256xbf16>
    %cst_11 = arith.constant dense<0.000000e+00> : vector<8x1024xf32>
    %14 = tpu.matmul %13, %8, %cst_11 {dimension_numbers = #tpu.dot_dimension_numbers<[1], [0], [0], [1], [0, 0, 1, 1], [], []>} : vector<8x256xbf16>, vector<256x1024xbf16>, vector<8x1024xf32> -> vector<8x1024xf32>
    %15 = arith.addf %12, %14 : vector<8x1024xf32>
    %16 = vector.extract_strided_slice %15 {offsets = [0, 0], sizes = [8, 512], strides = [1, 1]} : vector<8x1024xf32> to vector<8x512xf32>
    %cst_12 = arith.constant 5.000000e-01 : f32
    %17 = vector.broadcast %cst_12 : f32 to vector<8x512xf32>
    %18 = arith.mulf %17, %16 : vector<8x512xf32>
    %19 = math.tanh %18 : vector<8x512xf32>
    %cst_13 = arith.constant 1.000000e+00 : f32
    %20 = vector.broadcast %cst_13 : f32 to vector<8x512xf32>
    %21 = arith.addf %19, %20 : vector<8x512xf32>
    %cst_14 = arith.constant 5.000000e-01 : f32
    %22 = vector.broadcast %cst_14 : f32 to vector<8x512xf32>
    %23 = arith.mulf %22, %21 : vector<8x512xf32>
    %24 = vector.extract_strided_slice %23 {offsets = [0, 0], sizes = [8, 256], strides = [1, 1]} : vector<8x512xf32> to vector<8x256xf32>
    %25 = vector.extract_strided_slice %23 {offsets = [0, 256], sizes = [8, 256], strides = [1, 1]} : vector<8x512xf32> to vector<8x256xf32>
    %26 = vector.extract_strided_slice %15 {offsets = [0, 512], sizes = [8, 256], strides = [1, 1]} : vector<8x1024xf32> to vector<8x256xf32>
    %27 = math.tanh %26 : vector<8x256xf32>
    %28 = vector.extract_strided_slice %15 {offsets = [0, 768], sizes = [8, 256], strides = [1, 1]} : vector<8x1024xf32> to vector<8x256xf32>
    %cst_15 = arith.constant 5.000000e-01 : f32
    %29 = vector.broadcast %cst_15 : f32 to vector<8x256xf32>
    %30 = arith.mulf %29, %28 : vector<8x256xf32>
    %31 = math.tanh %30 : vector<8x256xf32>
    %cst_16 = arith.constant 1.000000e+00 : f32
    %32 = vector.broadcast %cst_16 : f32 to vector<8x256xf32>
    %33 = arith.addf %31, %32 : vector<8x256xf32>
    %cst_17 = arith.constant 5.000000e-01 : f32
    %34 = vector.broadcast %cst_17 : f32 to vector<8x256xf32>
    %35 = arith.mulf %34, %33 : vector<8x256xf32>
    %36 = arith.mulf %25, %7 : vector<8x256xf32>
    %37 = arith.mulf %24, %27 : vector<8x256xf32>
    %38 = arith.addf %36, %37 : vector<8x256xf32>
    %39 = math.tanh %38 : vector<8x256xf32>
    %40 = arith.mulf %35, %39 : vector<8x256xf32>
    %41 = arith.index_cast %10 : i32 to index
    %c0_18 = arith.constant 0 : index
    %42 = vector.load %arg23[%41, %c0_18] : memref<16x256xf32, #tpu.memory_space<vmem>>, vector<8x256xf32>
    tpu.vector_store %arg23[%41, %c0_18], %40 {strides = array<i32>} : memref<16x256xf32, #tpu.memory_space<vmem>>, vector<8x256xf32>,
    %c1_i32 = arith.constant 1 : i32
    %c8_i32_19 = arith.constant 8 : i32
    %43 = arith.muli %c1_i32, %c8_i32_19 : i32
    %44 = tpu.assume_multiple %43, 8 : i32
    %45 = arith.index_cast %44 : i32 to index
    %c0_20 = arith.constant 0 : index
    %46 = vector.load %arg22[%45, %c0_20] : memref<16x1024xf32, #tpu.memory_space<vmem>>, vector<8x1024xf32>
    %47 = arith.truncf %40 : vector<8x256xf32> to vector<8x256xbf16>
    %cst_21 = arith.constant dense<0.000000e+00> : vector<8x1024xf32>
    %48 = tpu.matmul %47, %8, %cst_21 {dimension_numbers = #tpu.dot_dimension_numbers<[1], [0], [0], [1], [0, 0, 1, 1], [], []>} : vector<8x256xbf16>, vector<256x1024xbf16>, vector<8x1024xf32> -> vector<8x1024xf32>
    %49 = arith.addf %46, %48 : vector<8x1024xf32>
    %50 = vector.extract_strided_slice %49 {offsets = [0, 0], sizes = [8, 512], strides = [1, 1]} : vector<8x1024xf32> to vector<8x512xf32>
    %cst_22 = arith.constant 5.000000e-01 : f32
    %51 = vector.broadcast %cst_22 : f32 to vector<8x512xf32>
    %52 = arith.mulf %51, %50 : vector<8x512xf32>
    %53 = math.tanh %52 : vector<8x512xf32>
    %cst_23 = arith.constant 1.000000e+00 : f32
    %54 = vector.broadcast %cst_23 : f32 to vector<8x512xf32>
    %55 = arith.addf %53, %54 : vector<8x512xf32>
    %cst_24 = arith.constant 5.000000e-01 : f32
    %56 = vector.broadcast %cst_24 : f32 to vector<8x512xf32>
    %57 = arith.mulf %56, %55 : vector<8x512xf32>
    %58 = vector.extract_strided_slice %57 {offsets = [0, 0], sizes = [8, 256], strides = [1, 1]} : vector<8x512xf32> to vector<8x256xf32>
    %59 = vector.extract_strided_slice %57 {offsets = [0, 256], sizes = [8, 256], strides = [1, 1]} : vector<8x512xf32> to vector<8x256xf32>
    %60 = vector.extract_strided_slice %49 {offsets = [0, 512], sizes = [8, 256], strides = [1, 1]} : vector<8x1024xf32> to vector<8x256xf32>
    %61 = math.tanh %60 : vector<8x256xf32>
    %62 = vector.extract_strided_slice %49 {offsets = [0, 768], sizes = [8, 256], strides = [1, 1]} : vector<8x1024xf32> to vector<8x256xf32>
    %cst_25 = arith.constant 5.000000e-01 : f32
    %63 = vector.broadcast %cst_25 : f32 to vector<8x256xf32>
    %64 = arith.mulf %63, %62 : vector<8x256xf32>
    %65 = math.tanh %64 : vector<8x256xf32>
    %cst_26 = arith.constant 1.000000e+00 : f32
    %66 = vector.broadcast %cst_26 : f32 to vector<8x256xf32>
    %67 = arith.addf %65, %66 : vector<8x256xf32>
    %cst_27 = arith.constant 5.000000e-01 : f32
    %68 = vector.broadcast %cst_27 : f32 to vector<8x256xf32>
    %69 = arith.mulf %68, %67 : vector<8x256xf32>
    %70 = arith.mulf %59, %38 : vector<8x256xf32>
    %71 = arith.mulf %58, %61 : vector<8x256xf32>
    %72 = arith.addf %70, %71 : vector<8x256xf32>
    %73 = math.tanh %72 : vector<8x256xf32>
    %74 = arith.mulf %69, %73 : vector<8x256xf32>
    %75 = arith.index_cast %44 : i32 to index
    %c0_28 = arith.constant 0 : index
    %76 = vector.load %arg23[%75, %c0_28] : memref<16x256xf32, #tpu.memory_space<vmem>>, vector<8x256xf32>
    tpu.vector_store %arg23[%75, %c0_28], %74 {strides = array<i32>} : memref<16x256xf32, #tpu.memory_space<vmem>>, vector<8x256xf32>,
    %c2_i32 = arith.constant 2 : i32
    %c0_29 = arith.constant 0 : index
    %c0_30 = arith.constant 0 : index
    %77 = vector.load %arg23[%c0_29, %c0_30] : memref<16x256xf32, #tpu.memory_space<vmem>>, vector<16x256xf32>
    %78 = arith.truncf %77 : vector<16x256xf32> to vector<16x256xbf16>
    %c0_31 = arith.constant 0 : index
    %c0_32 = arith.constant 0 : index
    %79 = vector.load %arg5[%c0_31, %c0_32] : memref<256x1024xbf16, #tpu.memory_space<vmem>>, vector<256x1024xbf16>
    %cst_33 = arith.constant dense<0.000000e+00> : vector<16x1024xf32>
    %80 = tpu.matmul %78, %79, %cst_33 {dimension_numbers = #tpu.dot_dimension_numbers<[1], [0], [0], [1], [0, 0, 1, 1], [], []>} : vector<16x256xbf16>, vector<256x1024xbf16>, vector<16x1024xf32> -> vector<16x1024xf32>
    %c0_34 = arith.constant 0 : index
    %c0_35 = arith.constant 0 : index
    %81 = vector.load %arg7[%c0_34, %c0_35] : memref<1x1024xf32, #tpu.memory_space<vmem>>, vector<1x1024xf32>
    %82 = vector.broadcast %81 : vector<1x1024xf32> to vector<16x1024xf32>
    %83 = arith.addf %80, %82 : vector<16x1024xf32>
    %c0_36 = arith.constant 0 : index
    %c0_37 = arith.constant 0 : index
    %84 = vector.load %arg22[%c0_36, %c0_37] : memref<16x1024xf32, #tpu.memory_space<vmem>>, vector<16x1024xf32>
    tpu.vector_store %arg22[%c0_36, %c0_37], %83 {strides = array<i32>} : memref<16x1024xf32, #tpu.memory_space<vmem>>, vector<16x1024xf32>,
    %c0_38 = arith.constant 0 : index
    %c0_39 = arith.constant 0 : index
    %85 = vector.load %arg6[%c0_38, %c0_39] : memref<256x1024xbf16, #tpu.memory_space<vmem>>, vector<256x1024xbf16>
    %c0_i32_40 = arith.constant 0 : i32
    %c8_i32_41 = arith.constant 8 : i32
    %86 = arith.muli %c0_i32_40, %c8_i32_41 : i32
    %87 = tpu.assume_multiple %86, 8 : i32
    %88 = arith.index_cast %87 : i32 to index
    %c0_42 = arith.constant 0 : index
    %89 = vector.load %arg22[%88, %c0_42] : memref<16x1024xf32, #tpu.memory_space<vmem>>, vector<8x1024xf32>
    %90 = arith.truncf %7 : vector<8x256xf32> to vector<8x256xbf16>
    %cst_43 = arith.constant dense<0.000000e+00> : vector<8x1024xf32>
    %91 = tpu.matmul %90, %85, %cst_43 {dimension_numbers = #tpu.dot_dimension_numbers<[1], [0], [0], [1], [0, 0, 1, 1], [], []>} : vector<8x256xbf16>, vector<256x1024xbf16>, vector<8x1024xf32> -> vector<8x1024xf32>
    %92 = arith.addf %89, %91 : vector<8x1024xf32>
    %93 = vector.extract_strided_slice %92 {offsets = [0, 0], sizes = [8, 512], strides = [1, 1]} : vector<8x1024xf32> to vector<8x512xf32>
    %cst_44 = arith.constant 5.000000e-01 : f32
    %94 = vector.broadcast %cst_44 : f32 to vector<8x512xf32>
    %95 = arith.mulf %94, %93 : vector<8x512xf32>
    %96 = math.tanh %95 : vector<8x512xf32>
    %cst_45 = arith.constant 1.000000e+00 : f32
    %97 = vector.broadcast %cst_45 : f32 to vector<8x512xf32>
    %98 = arith.addf %96, %97 : vector<8x512xf32>
    %cst_46 = arith.constant 5.000000e-01 : f32
    %99 = vector.broadcast %cst_46 : f32 to vector<8x512xf32>
    %100 = arith.mulf %99, %98 : vector<8x512xf32>
    %101 = vector.extract_strided_slice %100 {offsets = [0, 0], sizes = [8, 256], strides = [1, 1]} : vector<8x512xf32> to vector<8x256xf32>
    %102 = vector.extract_strided_slice %100 {offsets = [0, 256], sizes = [8, 256], strides = [1, 1]} : vector<8x512xf32> to vector<8x256xf32>
    %103 = vector.extract_strided_slice %92 {offsets = [0, 512], sizes = [8, 256], strides = [1, 1]} : vector<8x1024xf32> to vector<8x256xf32>
    %104 = math.tanh %103 : vector<8x256xf32>
    %105 = vector.extract_strided_slice %92 {offsets = [0, 768], sizes = [8, 256], strides = [1, 1]} : vector<8x1024xf32> to vector<8x256xf32>
    %cst_47 = arith.constant 5.000000e-01 : f32
    %106 = vector.broadcast %cst_47 : f32 to vector<8x256xf32>
    %107 = arith.mulf %106, %105 : vector<8x256xf32>
    %108 = math.tanh %107 : vector<8x256xf32>
    %cst_48 = arith.constant 1.000000e+00 : f32
    %109 = vector.broadcast %cst_48 : f32 to vector<8x256xf32>
    %110 = arith.addf %108, %109 : vector<8x256xf32>
    %cst_49 = arith.constant 5.000000e-01 : f32
    %111 = vector.broadcast %cst_49 : f32 to vector<8x256xf32>
    %112 = arith.mulf %111, %110 : vector<8x256xf32>
    %113 = arith.mulf %102, %7 : vector<8x256xf32>
    %114 = arith.mulf %101, %104 : vector<8x256xf32>
    %115 = arith.addf %113, %114 : vector<8x256xf32>
    %116 = math.tanh %115 : vector<8x256xf32>
    %117 = arith.mulf %112, %116 : vector<8x256xf32>
    %118 = vector.extract_strided_slice %117 {offsets = [7, 0], sizes = [1, 256], strides = [1, 1]} : vector<8x256xf32> to vector<1x256xf32>
    %119 = arith.index_cast %c0_i32_40 : i32 to index
    %c0_50 = arith.constant 0 : index
    %120 = vector.load %arg24[%119, %c0_50] : memref<2x256xf32, #tpu.memory_space<vmem>>, vector<1x256xf32>
    tpu.vector_store %arg24[%119, %c0_50], %118 {strides = array<i32>} : memref<2x256xf32, #tpu.memory_space<vmem>>, vector<1x256xf32>,
    %c1_i32_51 = arith.constant 1 : i32
    %c8_i32_52 = arith.constant 8 : i32
    %121 = arith.muli %c1_i32_51, %c8_i32_52 : i32
    %122 = tpu.assume_multiple %121, 8 : i32
    %123 = arith.index_cast %122 : i32 to index
    %c0_53 = arith.constant 0 : index
    %124 = vector.load %arg22[%123, %c0_53] : memref<16x1024xf32, #tpu.memory_space<vmem>>, vector<8x1024xf32>
    %125 = arith.truncf %117 : vector<8x256xf32> to vector<8x256xbf16>
    %cst_54 = arith.constant dense<0.000000e+00> : vector<8x1024xf32>
    %126 = tpu.matmul %125, %85, %cst_54 {dimension_numbers = #tpu.dot_dimension_numbers<[1], [0], [0], [1], [0, 0, 1, 1], [], []>} : vector<8x256xbf16>, vector<256x1024xbf16>, vector<8x1024xf32> -> vector<8x1024xf32>
    %127 = arith.addf %124, %126 : vector<8x1024xf32>
    %128 = vector.extract_strided_slice %127 {offsets = [0, 0], sizes = [8, 512], strides = [1, 1]} : vector<8x1024xf32> to vector<8x512xf32>
    %cst_55 = arith.constant 5.000000e-01 : f32
    %129 = vector.broadcast %cst_55 : f32 to vector<8x512xf32>
    %130 = arith.mulf %129, %128 : vector<8x512xf32>
    %131 = math.tanh %130 : vector<8x512xf32>
    %cst_56 = arith.constant 1.000000e+00 : f32
    %132 = vector.broadcast %cst_56 : f32 to vector<8x512xf32>
    %133 = arith.addf %131, %132 : vector<8x512xf32>
    %cst_57 = arith.constant 5.000000e-01 : f32
    %134 = vector.broadcast %cst_57 : f32 to vector<8x512xf32>
    %135 = arith.mulf %134, %133 : vector<8x512xf32>
    %136 = vector.extract_strided_slice %135 {offsets = [0, 0], sizes = [8, 256], strides = [1, 1]} : vector<8x512xf32> to vector<8x256xf32>
    %137 = vector.extract_strided_slice %135 {offsets = [0, 256], sizes = [8, 256], strides = [1, 1]} : vector<8x512xf32> to vector<8x256xf32>
    %138 = vector.extract_strided_slice %127 {offsets = [0, 512], sizes = [8, 256], strides = [1, 1]} : vector<8x1024xf32> to vector<8x256xf32>
    %139 = math.tanh %138 : vector<8x256xf32>
    %140 = vector.extract_strided_slice %127 {offsets = [0, 768], sizes = [8, 256], strides = [1, 1]} : vector<8x1024xf32> to vector<8x256xf32>
    %cst_58 = arith.constant 5.000000e-01 : f32
    %141 = vector.broadcast %cst_58 : f32 to vector<8x256xf32>
    %142 = arith.mulf %141, %140 : vector<8x256xf32>
    %143 = math.tanh %142 : vector<8x256xf32>
    %cst_59 = arith.constant 1.000000e+00 : f32
    %144 = vector.broadcast %cst_59 : f32 to vector<8x256xf32>
    %145 = arith.addf %143, %144 : vector<8x256xf32>
    %cst_60 = arith.constant 5.000000e-01 : f32
    %146 = vector.broadcast %cst_60 : f32 to vector<8x256xf32>
    %147 = arith.mulf %146, %145 : vector<8x256xf32>
    %148 = arith.mulf %137, %115 : vector<8x256xf32>
    %149 = arith.mulf %136, %139 : vector<8x256xf32>
    %150 = arith.addf %148, %149 : vector<8x256xf32>
    %151 = math.tanh %150 : vector<8x256xf32>
    %152 = arith.mulf %147, %151 : vector<8x256xf32>
    %153 = vector.extract_strided_slice %152 {offsets = [7, 0], sizes = [1, 256], strides = [1, 1]} : vector<8x256xf32> to vector<1x256xf32>
    %154 = arith.index_cast %c1_i32_51 : i32 to index
    %c0_61 = arith.constant 0 : index
    %155 = vector.load %arg24[%154, %c0_61] : memref<2x256xf32, #tpu.memory_space<vmem>>, vector<1x256xf32>
    tpu.vector_store %arg24[%154, %c0_61], %153 {strides = array<i32>} : memref<2x256xf32, #tpu.memory_space<vmem>>, vector<1x256xf32>,
    %c2_i32_62 = arith.constant 2 : i32
    %c0_63 = arith.constant 0 : index
    %c0_64 = arith.constant 0 : index
    %156 = vector.load %arg24[%c0_63, %c0_64] : memref<2x256xf32, #tpu.memory_space<vmem>>, vector<2x256xf32>
    %c0_65 = arith.constant 0 : index
    %c0_66 = arith.constant 0 : index
    %157 = vector.load %arg1[%c0_65, %c0_66] : memref<2x2xf32, #tpu.memory_space<vmem>>, vector<2x2xf32>
    %158 = vector.extract_strided_slice %157 {offsets = [0, 0], sizes = [2, 1], strides = [1, 1]} : vector<2x2xf32> to vector<2x1xf32>
    %c0_67 = arith.constant 0 : index
    %c0_68 = arith.constant 0 : index
    %159 = vector.load %arg8[%c0_67, %c0_68] : memref<2x32xf32, #tpu.memory_space<vmem>>, vector<1x32xf32>
    %160 = vector.broadcast %158 : vector<2x1xf32> to vector<2x32xf32>
    %161 = vector.broadcast %159 : vector<1x32xf32> to vector<2x32xf32>
    %162 = arith.mulf %160, %161 : vector<2x32xf32>
    %163 = vector.extract_strided_slice %157 {offsets = [0, 1], sizes = [2, 1], strides = [1, 1]} : vector<2x2xf32> to vector<2x1xf32>
    %c1 = arith.constant 1 : index
    %c0_69 = arith.constant 0 : index
    %164 = vector.load %arg8[%c1, %c0_69] : memref<2x32xf32, #tpu.memory_space<vmem>>, vector<1x32xf32>
    %165 = vector.broadcast %163 : vector<2x1xf32> to vector<2x32xf32>
    %166 = vector.broadcast %164 : vector<1x32xf32> to vector<2x32xf32>
    %167 = arith.mulf %165, %166 : vector<2x32xf32>
    %168 = arith.addf %162, %167 : vector<2x32xf32>
    %c0_70 = arith.constant 0 : index
    %c0_71 = arith.constant 0 : index
    %169 = vector.load %arg9[%c0_70, %c0_71] : memref<1x32xf32, #tpu.memory_space<vmem>>, vector<1x32xf32>
    %170 = vector.broadcast %169 : vector<1x32xf32> to vector<2x32xf32>
    %171 = arith.addf %168, %170 : vector<2x32xf32>
    %cst_72 = arith.constant 0.000000e+00 : f32
    %172 = vector.broadcast %cst_72 : f32 to vector<2x32xf32>
    %173 = arith.maximumf %171, %172 : vector<2x32xf32>
    %c0_73 = arith.constant 0 : index
    %c0_74 = arith.constant 0 : index
    %174 = vector.load %arg10[%c0_73, %c0_74] : memref<32x64xf32, #tpu.memory_space<vmem>>, vector<32x64xf32>
    %cst_75 = arith.constant dense<0.000000e+00> : vector<2x64xf32>
    %175 = tpu.matmul %173, %174, %cst_75 {dimension_numbers = #tpu.dot_dimension_numbers<[1], [0], [0], [1], [0, 0, 1, 1], [], []>} : vector<2x32xf32>, vector<32x64xf32>, vector<2x64xf32> -> vector<2x64xf32>
    %c0_76 = arith.constant 0 : index
    %c0_77 = arith.constant 0 : index
    %176 = vector.load %arg11[%c0_76, %c0_77] : memref<1x64xf32, #tpu.memory_space<vmem>>, vector<1x64xf32>
    %177 = vector.broadcast %176 : vector<1x64xf32> to vector<2x64xf32>
    %178 = arith.addf %175, %177 : vector<2x64xf32>
    %cst_78 = arith.constant 0.000000e+00 : f32
    %179 = vector.broadcast %cst_78 : f32 to vector<2x64xf32>
    %180 = arith.maximumf %178, %179 : vector<2x64xf32>
    %c0_79 = arith.constant 0 : index
    %c0_80 = arith.constant 0 : index
    %181 = vector.load %arg12[%c0_79, %c0_80] : memref<64x64xf32, #tpu.memory_space<vmem>>, vector<64x64xf32>
    %cst_81 = arith.constant dense<0.000000e+00> : vector<2x64xf32>
    %182 = tpu.matmul %180, %181, %cst_81 {dimension_numbers = #tpu.dot_dimension_numbers<[1], [0], [0], [1], [0, 0, 1, 1], [], []>} : vector<2x64xf32>, vector<64x64xf32>, vector<2x64xf32> -> vector<2x64xf32>
    %c0_82 = arith.constant 0 : index
    %c0_83 = arith.constant 0 : index
    %183 = vector.load %arg13[%c0_82, %c0_83] : memref<1x64xf32, #tpu.memory_space<vmem>>, vector<1x64xf32>
    %184 = vector.broadcast %183 : vector<1x64xf32> to vector<2x64xf32>
    %185 = arith.addf %182, %184 : vector<2x64xf32>
    %c0_84 = arith.constant 0 : index
    %c0_85 = arith.constant 0 : index
    %186 = vector.load %arg14[%c0_84, %c0_85] : memref<256x256xf32, #tpu.memory_space<vmem>>, vector<256x256xf32>
    %cst_86 = arith.constant dense<0.000000e+00> : vector<2x256xf32>
    %187 = tpu.matmul %156, %186, %cst_86 {dimension_numbers = #tpu.dot_dimension_numbers<[1], [0], [0], [1], [0, 0, 1, 1], [], []>} : vector<2x256xf32>, vector<256x256xf32>, vector<2x256xf32> -> vector<2x256xf32>
    %c0_87 = arith.constant 0 : index
    %c0_88 = arith.constant 0 : index
    %188 = vector.load %arg15[%c0_87, %c0_88] : memref<64x256xf32, #tpu.memory_space<vmem>>, vector<64x256xf32>
    %cst_89 = arith.constant dense<0.000000e+00> : vector<2x256xf32>
    %189 = tpu.matmul %185, %188, %cst_89 {dimension_numbers = #tpu.dot_dimension_numbers<[1], [0], [0], [1], [0, 0, 1, 1], [], []>} : vector<2x64xf32>, vector<64x256xf32>, vector<2x256xf32> -> vector<2x256xf32>
    %190 = arith.addf %187, %189 : vector<2x256xf32>
    %c0_90 = arith.constant 0 : index
    %c0_91 = arith.constant 0 : index
    %191 = vector.load %arg16[%c0_90, %c0_91] : memref<1x256xf32, #tpu.memory_space<vmem>>, vector<1x256xf32>
    %192 = vector.broadcast %191 : vector<1x256xf32> to vector<2x256xf32>
    %193 = arith.addf %190, %192 : vector<2x256xf32>
    %cst_92 = arith.constant 0.000000e+00 : f32
    %194 = vector.broadcast %cst_92 : f32 to vector<2x256xf32>
    %195 = arith.maximumf %193, %194 : vector<2x256xf32>
    %c0_93 = arith.constant 0 : index
    %c0_94 = arith.constant 0 : index
    %196 = vector.load %arg17[%c0_93, %c0_94] : memref<256x256xf32, #tpu.memory_space<vmem>>, vector<256x256xf32>
    %cst_95 = arith.constant dense<0.000000e+00> : vector<2x256xf32>
    %197 = tpu.matmul %195, %196, %cst_95 {dimension_numbers = #tpu.dot_dimension_numbers<[1], [0], [0], [1], [0, 0, 1, 1], [], []>} : vector<2x256xf32>, vector<256x256xf32>, vector<2x256xf32> -> vector<2x256xf32>
    %c0_96 = arith.constant 0 : index
    %c0_97 = arith.constant 0 : index
    %198 = vector.load %arg18[%c0_96, %c0_97] : memref<1x256xf32, #tpu.memory_space<vmem>>, vector<1x256xf32>
    %199 = vector.broadcast %198 : vector<1x256xf32> to vector<2x256xf32>
    %200 = arith.addf %197, %199 : vector<2x256xf32>
    %cst_98 = arith.constant 0.000000e+00 : f32
    %201 = vector.broadcast %cst_98 : f32 to vector<2x256xf32>
    %202 = arith.maximumf %200, %201 : vector<2x256xf32>
    %c0_99 = arith.constant 0 : index
    %c0_100 = arith.constant 0 : index
    %203 = vector.load %arg19[%c0_99, %c0_100] : memref<256x2xf32, #tpu.memory_space<vmem>>, vector<256x2xf32>
    %cst_101 = arith.constant dense<0.000000e+00> : vector<2x2xf32>
    %204 = tpu.matmul %202, %203, %cst_101 {dimension_numbers = #tpu.dot_dimension_numbers<[1], [0], [0], [1], [0, 0, 1, 1], [], []>} : vector<2x256xf32>, vector<256x2xf32>, vector<2x2xf32> -> vector<2x2xf32>
    %c0_102 = arith.constant 0 : index
    %c0_103 = arith.constant 0 : index
    %205 = vector.load %arg20[%c0_102, %c0_103] : memref<1x2xf32, #tpu.memory_space<vmem>>, vector<1x2xf32>
    %206 = vector.broadcast %205 : vector<1x2xf32> to vector<2x2xf32>
    %207 = arith.addf %204, %206 : vector<2x2xf32>
    %c0_104 = arith.constant 0 : index
    %c0_105 = arith.constant 0 : index
    %208 = vector.load %arg21[%c0_104, %c0_105] : memref<2x2xf32, #tpu.memory_space<vmem>>, vector<2x2xf32>
    tpu.vector_store %arg21[%c0_104, %c0_105], %207 {strides = array<i32>} : memref<2x2xf32, #tpu.memory_space<vmem>>, vector<2x2xf32>,
    return
  }
}

</mosaic_0001>

<bundles_post_ra>
// kernel: lstm_model_forward.1
= control target key start
LH: loop header
LB: loop body
LE: loop exit
PB: predicated region body
PF: predicated region fallthrough
CT: control target
= control target key end

     0   :  { %s8791_s0 = inlined_call_operand.vmem [shape: bf16[16,12], index: 0, kind: input, shape index: {}]   ;;  %s8792_s1 = inlined_call_operand.vmem [shape: f32[2,2], index: 1, kind: input, shape index: {}]   ;;  %s8793_s2 = inlined_call_operand.vmem [shape: bf16[12,1024], index: 2, kind: input, shape index: {}]   ;;  %s8794_s3 = inlined_call_operand.hbm [shape: bf16[256,1024], index: 3, kind: input, shape index: {}]   ;;  %s8795_s4 = inlined_call_operand.vmem [shape: f32[1,1024], index: 4, kind: input, shape index: {}]   ;;  %s8796_s5 = inlined_call_operand.hbm [shape: bf16[256,1024], index: 5, kind: input, shape index: {}]   ;;  %s8797_s6 = inlined_call_operand.hbm [shape: bf16[256,1024], index: 6, kind: input, shape index: {}]   ;;  %s8798_s7 = inlined_call_operand.vmem [shape: f32[1,1024], index: 7, kind: input, shape index: {}]   ;;  %s8799_s8 = inlined_call_operand.vmem [shape: f32[2,32], index: 8, kind: input, shape index: {}]   ;;  %s8800_s9 = inlined_call_operand.hbm [shape: f32[1,32], index: 9, kind: input, shape index: {}]   ;;  %s8801_s10 = inlined_call_operand.hbm [shape: f32[32,64], index: 10, kind: input, shape index: {}]   ;;  %s8802_s11 = inlined_call_operand.hbm [shape: f32[1,64], index: 11, kind: input, shape index: {}]   ;;  %s8803_s12 = inlined_call_operand.vmem [shape: f32[64,64], index: 12, kind: input, shape index: {}]   ;;  %s8804_s13 = inlined_call_operand.hbm [shape: f32[1,64], index: 13, kind: input, shape index: {}]   ;;  %s8805_s14 = inlined_call_operand.hbm [shape: f32[256,256], index: 14, kind: input, shape index: {}]   ;;  %s8806_s15 = inlined_call_operand.vmem [shape: f32[64,256], index: 15, kind: input, shape index: {}]   ;;  %s8807_s16 = inlined_call_operand.vmem [shape: f32[1,256], index: 16, kind: input, shape index: {}]   ;;  %s8808_s17 = inlined_call_operand.hbm [shape: f32[256,256], index: 17, kind: input, shape index: {}]   ;;  %s8809_s18 = inlined_call_operand.vmem [shape: f32[1,256], index: 18, kind: input, shape index: {}]   ;;  %s8810_s19 = inlined_call_operand.vmem [shape: f32[256,2], index: 19, kind: input, shape index: {}]   ;;  %s8811_s20 = inlined_call_operand.vmem [shape: f32[1,2], index: 20, kind: input, shape index: {}]   ;;  %s8812_s21 = inlined_call_operand.hbm [shape: f32[2,2], index: 21, kind: output, shape index: {}]  }
   0x1   :  { %8966 = sst [smem:[#allocation124_spill]] %s8791_s0 }
   0x2   :  { %8967 = sst [smem:[#allocation125_spill]] %s8792_s1 }
   0x3   :  { %8968 = sst [smem:[#allocation126_spill]] %s8793_s2 }
   0x4   :  { %8969 = sst [smem:[#allocation127_spill]] %s8794_s3 }
   0x5   :  { %8970 = sst [smem:[#allocation128_spill]] %s8795_s4 }
   0x6   :  { %8971 = sst [smem:[#allocation129_spill]] %s8796_s5 }
   0x7   :  { %26 = vsyncpa [#allocation6], 0 }
   0x8   :  { %27 = vsyncpa [#allocation9], 0 }
   0x9   :  { %28 = vsyncpa [#allocation12], 0 }
   0xa   :  { %29 = vsyncpa [#allocation15], 0 }
   0xb   :  { %30 = vsyncpa [#allocation18], 0 }
   0xc   :  { %31 = vsyncpa [#allocation7], 0  ;;  %s8972_s26 = sld [smem:[#allocation129_spill]]  ;;  %s6975_s3 = smov [#allocation8]  }
   0xd   :  { %s59_s28 = sshll.u32 %s6975_s3, 4  ;;  %s88_s4 = sshll.u32 %s8800_s9, 4  ;;  %s60_s28 = int_to_ptr.vmem [resolvable:$true] %s59_s28  ;;  %s89_s4 = int_to_ptr.hbm [resolvable:$true] %s88_s4 }
   0xe   :  { %s6976_s30 = smov 512   ;;  %s6977_s5 = smov 32  }
   0xf   :  { %s6978_s22 = smov [#allocation11]   ;;  %s112_s2 = sshll.u32 %s8802_s11, 4  ;;  %s113_s2 = int_to_ptr.hbm [resolvable:$true] %s112_s2 }
  0x10   :  { %s90_s23 = sshll.u32 %s6978_s22, 4  ;;  %s135_s9 = sshll.u32 %s8805_s14, 4  ;;  %s91_s23 = int_to_ptr.vmem [resolvable:$true] %s90_s23  ;;  %s136_s9 = int_to_ptr.hbm [resolvable:$true] %s135_s9 }
  0x11   :  { %93 = dma.hbm_to_vmem [thread:$0]  %s89_s4, 16, %s91_s23, [#allocation12]  }
  0x12   :  { %s57_s27 = sshll.u32 %s8972_s26, 4  ;;  %s6979_s3 = smov [#allocation14]   ;;  %s58_s27 = int_to_ptr.hbm [resolvable:$true] %s57_s27 }
  0x13   :  { %65 = dma.hbm_to_vmem [thread:$0]  %s58_s27, 16384, %s60_s28, [#allocation9], %s6976_s30, %s6976_s30, %s6977_s5  }
  0x14   :  { %s114_s29 = sshll.u32 %s6979_s3, 4  ;;  %s6980_s27 = smov [#allocation17]   ;;  %s115_s29 = int_to_ptr.vmem [resolvable:$true] %s114_s29 }
  0x15   :  { %117 = dma.hbm_to_vmem [thread:$0]  %s113_s2, 16, %s115_s29, [#allocation15]  }
  0x16   :  { %s137_s28 = sshll.u32 %s6980_s27, 4  ;;  %s6981_s0 = smov 256   ;;  %s138_s28 = int_to_ptr.vmem [resolvable:$true] %s137_s28 }
  0x17   :  { %s6982_s22 = smov 16   ;;  %s8973_s23 = sld [smem:[#allocation127_spill]] }
  0x18   :  { %143 = dma.hbm_to_vmem [thread:$0]  %s136_s9, 8192, %s138_s28, [#allocation18], %s6981_s0, %s6981_s0, %s6982_s22  }
  0x19   :  { %s6983_s14 = smov [#allocation5]   ;;  %s70_s2 = sshll.u32 %s8797_s6, 4  ;;  %s71_s2 = int_to_ptr.hbm [resolvable:$true] %s70_s2 }
  0x1a   :  { %s44_s24 = sshll.u32 %s6983_s14, 4  ;;  %s6984_s3 = smov [#allocation10]   ;;  %s45_s24 = int_to_ptr.vmem [resolvable:$true] %s44_s24 }
  0x1b   :  { %s72_s29 = sshll.u32 %s6984_s3, 4  ;;  %s98_s28 = sshll.u32 %s8801_s10, 4  ;;  %s73_s29 = int_to_ptr.vmem [resolvable:$true] %s72_s29  ;;  %s99_s28 = int_to_ptr.hbm [resolvable:$true] %s98_s28 }
  0x1c   :  { %78 = dma.hbm_to_vmem [thread:$0]  %s71_s2, 16384, %s73_s29, [#allocation9], %s6976_s30, %s6976_s30, %s6977_s5  }
  0x1d   :  { %s42_s1 = sshll.u32 %s8973_s23, 4  ;;  %s6985_s11 = smov [#allocation13]   ;;  %s43_s1 = int_to_ptr.hbm [resolvable:$true] %s42_s1 }
  0x1e   :  { %50 = dma.hbm_to_vmem [thread:$0]  %s43_s1, 16384, %s45_s24, [#allocation6], %s6976_s30, %s6976_s30, %s6977_s5  }
  0x1f   :  { %s100_s4 = sshll.u32 %s6985_s11, 4  ;;  %s125_s1 = sshll.u32 %s8804_s13, 4  ;;  %s101_s4 = int_to_ptr.vmem [resolvable:$true] %s100_s4  ;;  %s126_s1 = int_to_ptr.hbm [resolvable:$true] %s125_s1 }
  0x20   :  { %s6986_s14 = smov 128   ;;  %s6987_s24 = smov 8  }
  0x21   :  { %106 = dma.hbm_to_vmem [thread:$0]  %s99_s28, 512, %s101_s4, [#allocation12], %s6986_s14, %s6986_s14, %s6987_s24  }
  0x22   :  { %s6988_s25 = smov [#allocation16]   ;;  %s152_s9 = sshll.u32 %s8808_s17, 4  ;;  %s153_s9 = int_to_ptr.hbm [resolvable:$true] %s152_s9 }
  0x23   :  { %s127_s26 = sshll.u32 %s6988_s25, 4  ;;  %s6989_s30 = smov [#allocation19]   ;;  %s128_s26 = int_to_ptr.vmem [resolvable:$true] %s127_s26 }
  0x24   :  { %130 = dma.hbm_to_vmem [thread:$0]  %s126_s1, 16, %s128_s26, [#allocation15]  }
  0x25   :  { %s154_s5 = sshll.u32 %s6989_s30, 4  ;;  %s155_s5 = int_to_ptr.vmem [resolvable:$true] %s154_s5 }
  0x26   :  { %160 = dma.hbm_to_vmem [thread:$0]  %s153_s9, 8192, %s155_s5, [#allocation18], %s6981_s0, %s6981_s0, %s6982_s22  }
  0x27   :  { %6963 = dma.done.wait [#allocation6], 16384  }
  0x28   :  { %6964 = vsyncadd [#allocation6], 4294950912 }
  0x29   :  { %6965 = dma.done.wait [#allocation9], 32768  }
  0x2a   :  { %6966 = vsyncadd [#allocation9], 4294934528 }
  0x2b   :  { %6967 = dma.done.wait [#allocation12], 528  }
  0x2c   :  { %6968 = vsyncadd [#allocation12], 4294966768 }
  0x2d   :  { %6969 = dma.done.wait [#allocation15], 32  }
  0x2e   :  { %6970 = vsyncadd [#allocation15], 4294967264 }
  0x2f   :  { %6971 = dma.done.wait [#allocation18], 16384  }
  0x30   :  { %6972 = vsyncadd [#allocation18], 4294950912  ;;  %vm273_vm0 = vcmask 1045504   ;;  %vm269_vm1 = vcmask 97280   ;;  %s8974_s2 = sld [smem:[#allocation126_spill]]  ;;  %v8818_v36 = vmov 0  }
  0x31   :  { %v4910_v11 = vld [vmem:[#allocation5 + $0x1c0] sm:$0xf]  ;;  %s8975_s9 = sld [smem:[#allocation124_spill]]  ;;  %6635 = vset.pattern.permute.xlu0 %v8818_v36  ;;  %v6289_v62 = vld [vmem:[#allocation5 + $0x1c4] sm:$0xf]  ;;  %vm4107_vm3 = vcmask 261120  }
  0x32   :  { %v6293_v14 = vld [vmem:[#allocation5 + $0x1dc] sm:$0xf0]  ;;  %v4912_v63 = vld [vmem:[#allocation5 + $0x1e0] sm:$0xf0]  ;;  %s9045_s26 = sld [smem:[#allocation128_spill]]  ;;  %vm4144_vm4 = vcmask 523264  }
  0x33   :  { %v5166_v15 = vld [vmem:[#allocation5 + $0x3c0] sm:$0xf]  ;;  %v7177_v19 = vor.u32 %v6293_v14, %v4910_v11  ;;  %v4880_v11 = vld [vmem:[#allocation5 + $0x1a0] sm:$0xf0]  ;;  %s9232_s30 = sld [smem:[#allocation125_spill]]  ;;  %s4624_s10 = sshll.u32 %s8812_s21, 4  ;;  %s4625_s10 = int_to_ptr.hbm [resolvable:$true] %s4624_s10 }
  0x34   :  { %v6357_v20 = vld [vmem:[#allocation5 + $0x3dc] sm:$0xf0]  ;;  %v5136_v14 = vld [vmem:[#allocation5 + $0x3a0] sm:$0xf0]  ;;  %vm4615_vm5 = vcmask 9216  }
  0x35   :  { %v4878_v21 = vld [vmem:[#allocation5 + $0x180] sm:$0xf]  ;;  %v7180_v23 = vor.u32 %v6357_v20, %v5166_v15 }
  0x36   :  { %v4646_v0 = vld [vmem:[%s8974_s2] sm:$0xf]  ;;  %v6225_v2 = vld [vmem:[%s8974_s2 + $0x4] sm:$0xf]  ;;  %v4662_v5 = vld [vmem:[%s8974_s2 + $0x10] sm:$0xf] }
  0x37   :  { %v6229_v1 = vld [vmem:[%s8974_s2 + $0x1c] sm:$0x30]  ;;  %v4648_v4 = vld [vmem:[%s8974_s2 + $0x20] sm:$0x30]  ;;  %v6231_v6 = vld [vmem:[%s8974_s2 + $0x2c] sm:$0x30] }
  0x38   :  { %v4647_v3 = vor.u32 %v6229_v1, %v4646_v0  ;;  %v4651_v7 = vor.u32 %v6225_v2, %v4648_v4  ;;  %v4663_v8 = vor.u32 %v6231_v6, %v4662_v5  ;;  %v6227_v9 = vld [vmem:[%s8974_s2 + $0x14] sm:$0xf]  ;;  %v7173_v16 = vld [vmem:[%s8975_s9] sm:$0xff]  ;;  %v6285_v24 = vld [vmem:[#allocation5 + $0x19c] sm:$0xf0]  ;;  %v7243_v6 = vor.u32 %v6289_v62, %v4912_v63 }
  0x39   :  { %v4664_v10 = vld [vmem:[%s8974_s2 + $0x30] sm:$0x30]  ;;  %v5134_v25 = vld [vmem:[#allocation5 + $0x380] sm:$0xf]  ;;  %v7183_v26 = vor.u32 %v6285_v24, %v4878_v21  ;;  %v4654_v33 = vld [vmem:[%s8974_s2 + $0x8] sm:$0xf] }
  0x3a   :  { %v275_v12 = vsel %vm273_vm0, %v4647_v3, 0  ;;  %v4667_v13 = vor.u32 %v6227_v9, %v4664_v10  ;;  %v278_v17 = vsel %vm273_vm0, %v4651_v7, 0  ;;  %v287_v18 = vsel %vm273_vm0, %v4663_v8, 0  ;;  %v6349_v27 = vld [vmem:[#allocation5 + $0x39c] sm:$0xf0] }
  0x3b   :  { %305 = vmatpush.bf16.msra.mxu2 %v275_v12  ;;  %319 = vmatpush.bf16.msra.mxu3 %v278_v17  ;;  %v7188_v28 = vor.u32 %v6349_v27, %v5134_v25  ;;  %v4846_v29 = vld [vmem:[#allocation5 + $0x140] sm:$0xf]  ;;  %v6230_v34 = vld [vmem:[%s8974_s2 + $0x24] sm:$0x30]  ;;  %v4670_v46 = vld [vmem:[%s8974_s2 + $0x18] sm:$0xf] }
  0x3c   :  { %361 = vmatpush.bf16.msra.mxu0 %v287_v18  ;;  %v290_v22 = vsel %vm273_vm0, %v4667_v13, 0  ;;  %v6277_v30 = vld [vmem:[#allocation5 + $0x15c] sm:$0xf0]  ;;  %v4655_v40 = vor.u32 %v6230_v34, %v4654_v33  ;;  %v6232_v48 = vld [vmem:[%s8974_s2 + $0x34] sm:$0x30] }
  0x3d   :  { %375 = vmatpush.bf16.msra.mxu1 %v290_v22  ;;  %v5102_v31 = vld [vmem:[#allocation5 + $0x340] sm:$0xf]  ;;  %v7207_v37 = vor.u32 %v6277_v30, %v4846_v29  ;;  %v6228_v49 = vld [vmem:[%s8974_s2 + $0x1c] sm:$0xf]  ;;  %v4671_v51 = vor.u32 %v6232_v48, %v4670_v46  ;;  %v6353_v1 = vld [vmem:[#allocation5 + $0x3c4] sm:$0xf] }
  0x3e   :  { %4676 = vmatmul.msk.bf16.vlgmr.msra.gmra.mxu2 %vm269_vm1, %v7173_v16  ;;  %4677 = vmatmul.msk.bf16.vlgmr.msra.gmra.mxu3 %vm269_vm1, %v7173_v16  ;;  %v6341_v32 = vld [vmem:[#allocation5 + $0x35c] sm:$0xf0]  ;;  %v281_v47 = vsel %vm273_vm0, %v4655_v40, 0  ;;  %v4672_v52 = vld [vmem:[%s8974_s2 + $0x38] sm:$0x30] }
  0x3f   :  { %4680 = vmatmul.msk.bf16.vlgmr.msra.gmra.mxu0 %vm269_vm1, %v7173_v16  ;;  %v6226_v35 = vld [vmem:[%s8974_s2 + $0xc] sm:$0xf]  ;;  %v7213_v42 = vor.u32 %v6341_v32, %v5102_v31  ;;  %333 = vmatpush.bf16.msrb.mxu2 %v281_v47  ;;  %v4675_v54 = vor.u32 %v6228_v49, %v4672_v52  ;;  %v293_v58 = vsel %vm273_vm0, %v4671_v51, 0  ;;  %v5168_v2 = vld [vmem:[#allocation5 + $0x3e0] sm:$0xf0] }
  0x40   :  { %1205 = vmatpush.bf16.msrb.mxu0 %v7177_v19  ;;  %4681 = vmatmul.msk.bf16.vlgmr.msra.gmra.mxu1 %vm269_vm1, %v7173_v16  ;;  %v4814_v38 = vld [vmem:[#allocation5 + $0x100] sm:$0xf]  ;;  %v7245_v9 = vor.u32 %v6353_v1, %v5168_v2  ;;  %v6281_v10 = vld [vmem:[#allocation5 + $0x184] sm:$0xf]  ;;  %v4918_v40 = vld [vmem:[#allocation5 + $0x1c8] sm:$0xf] }
  0x41   :  { %1218 = vmatpush.bf16.msrb.mxu1 %v7180_v23  ;;  %v6269_v39 = vld [vmem:[#allocation5 + $0x11c] sm:$0xf0]  ;;  %v296_v61 = vsel %vm273_vm0, %v4675_v54, 0  ;;  %v6345_v13 = vld [vmem:[#allocation5 + $0x384] sm:$0xf]  ;;  %v7258_v20 = vor.u32 %v6281_v10, %v4880_v11 }
  0x42   :  { %v4656_v41 = vld [vmem:[%s8974_s2 + $0x28] sm:$0x30]  ;;  %v7230_v53 = vor.u32 %v6269_v39, %v4814_v38  ;;  %v7261_v24 = vor.u32 %v6345_v13, %v5136_v14  ;;  %v6273_v25 = vld [vmem:[#allocation5 + $0x144] sm:$0xf]  ;;  %v5110_v13 = vld [vmem:[#allocation5 + $0x348] sm:$0xf] }
  0x43   :  { %v5070_v43 = vld [vmem:[#allocation5 + $0x300] sm:$0xf]  ;;  %v4659_v45 = vor.u32 %v6226_v35, %v4656_v41  ;;  %389 = vmatpush.bf16.msra.mxu2 %v293_v58  ;;  %v4848_v27 = vld [vmem:[#allocation5 + $0x160] sm:$0xf0]  ;;  %v6294_v41 = vld [vmem:[#allocation5 + $0x1e4] sm:$0xf0] }
  0x44   :  { %1206 = vmatpush.bf16.msrb.mxu0 %v7183_v26  ;;  %v6333_v44 = vld [vmem:[#allocation5 + $0x31c] sm:$0xf0]  ;;  %v6337_v30 = vld [vmem:[#allocation5 + $0x344] sm:$0xf]  ;;  %v7270_v39 = vor.u32 %v6273_v25, %v4848_v27  ;;  %v7281_v52 = vor.u32 %v6294_v41, %v4918_v40  ;;  %v6286_v58 = vld [vmem:[#allocation5 + $0x1a4] sm:$0xf0] }
  0x45   :  { %1219 = vmatpush.bf16.msrb.mxu1 %v7188_v28  ;;  %v284_v50 = vsel %vm273_vm0, %v4659_v45, 0  ;;  %v7233_v55 = vor.u32 %v6333_v44, %v5070_v43  ;;  %v4782_v56 = vld [vmem:[#allocation5 + $0xc0] sm:$0xf]  ;;  %v5104_v31 = vld [vmem:[#allocation5 + $0x360] sm:$0xf0] }
  0x46   :  { %347 = vmatpush.bf16.msrb.mxu3 %v284_v50  ;;  %v6261_v57 = vld [vmem:[#allocation5 + $0xdc] sm:$0xf0]  ;;  %v5174_v43 = vld [vmem:[#allocation5 + $0x3c8] sm:$0xf]  ;;  %v7273_v44 = vor.u32 %v6337_v30, %v5104_v31  ;;  %v6265_v46 = vld [vmem:[#allocation5 + $0x104] sm:$0xf] }
  0x47   :  { %v5038_v59 = vld [vmem:[#allocation5 + $0x2c0] sm:$0xf]  ;;  %v7238_v0 = vor.u32 %v6261_v57, %v4782_v56  ;;  %v6358_v45 = vld [vmem:[#allocation5 + $0x3e4] sm:$0xf0]  ;;  %v4816_v47 = vld [vmem:[#allocation5 + $0x120] sm:$0xf0] }
  0x48   :  { %1207 = vmatpush.bf16.msrb.mxu0 %v7207_v37  ;;  %v6325_v60 = vld [vmem:[#allocation5 + $0x2dc] sm:$0xf0]  ;;  %v6329_v49 = vld [vmem:[#allocation5 + $0x304] sm:$0xf]  ;;  %v7284_v54 = vor.u32 %v6358_v45, %v5174_v43  ;;  %v7286_v56 = vor.u32 %v6265_v46, %v4816_v47  ;;  %v4886_v57 = vld [vmem:[#allocation5 + $0x188] sm:$0xf] }
  0x49   :  { %1220 = vmatpush.bf16.msrb.mxu1 %v7213_v42  ;;  %v7241_v3 = vor.u32 %v6325_v60, %v5038_v59  ;;  %v4750_v4 = vld [vmem:[#allocation5 + $0x80] sm:$0xf]  ;;  %v5072_v50 = vld [vmem:[#allocation5 + $0x320] sm:$0xf0]  ;;  %v5142_v60 = vld [vmem:[#allocation5 + $0x388] sm:$0xf] }
  0x4a   :  { %403 = vmatpush.bf16.msra.mxu3 %v296_v61  ;;  %v6253_v5 = vld [vmem:[#allocation5 + $0x9c] sm:$0xf0]  ;;  %v7289_v59 = vor.u32 %v6329_v49, %v5072_v50  ;;  %v6350_v61 = vld [vmem:[#allocation5 + $0x3a4] sm:$0xf0]  ;;  %v6257_v62 = vld [vmem:[#allocation5 + $0xc4] sm:$0xf] }
  0x4b   :  { %v5006_v7 = vld [vmem:[#allocation5 + $0x280] sm:$0xf]  ;;  %v7248_v12 = vor.u32 %v6253_v5, %v4750_v4  ;;  %v4784_v63 = vld [vmem:[#allocation5 + $0xe0] sm:$0xf0]  ;;  %v7294_v4 = vor.u32 %v6286_v58, %v4886_v57  ;;  %v7298_v5 = vor.u32 %v6350_v61, %v5142_v60  ;;  %v6342_v14 = vld [vmem:[#allocation5 + $0x364] sm:$0xf0] }
  0x4c   :  { %1208 = vmatpush.bf16.msrb.mxu0 %v7230_v53  ;;  %v6317_v8 = vld [vmem:[#allocation5 + $0x29c] sm:$0xf0]  ;;  %v6321_v1 = vld [vmem:[#allocation5 + $0x2c4] sm:$0xf]  ;;  %v7302_v10 = vor.u32 %v6257_v62, %v4784_v63  ;;  %v7315_v27 = vor.u32 %v6342_v14, %v5110_v13  ;;  %v4822_v30 = vld [vmem:[#allocation5 + $0x108] sm:$0xf] }
  0x4d   :  { %1221 = vmatpush.bf16.msrb.mxu1 %v7233_v55  ;;  %v7253_v15 = vor.u32 %v6317_v8, %v5006_v7  ;;  %v4718_v17 = vld [vmem:[#allocation5 + $0x40] sm:$0xf]  ;;  %v5040_v2 = vld [vmem:[#allocation5 + $0x2e0] sm:$0xf0]  ;;  %v4854_v7 = vld [vmem:[#allocation5 + $0x148] sm:$0xf] }
  0x4e   :  { %4678 = vmatmul.msk.bf16.vlgmr.msrb.gmra.mxu2 %vm269_vm1, %v7173_v16  ;;  %v6245_v18 = vld [vmem:[#allocation5 + $0x5c] sm:$0xf0]  ;;  %4679 = vmatmul.msk.bf16.vlgmr.msrb.gmra.mxu3 %vm269_vm1, %v7173_v16  ;;  %v6278_v8 = vld [vmem:[#allocation5 + $0x164] sm:$0xf0]  ;;  %v7304_v11 = vor.u32 %v6321_v1, %v5040_v2  ;;  %v6241_v40 = vld [vmem:[#allocation5 + $0x44] sm:$0xf] }
  0x4f   :  { %1231 = vmatpush.bf16.msrb.mxu2 %v7243_v6  ;;  %v4974_v21 = vld [vmem:[#allocation5 + $0x240] sm:$0xf]  ;;  %1244 = vmatpush.bf16.msrb.mxu3 %v7245_v9  ;;  %v7264_v29 = vor.u32 %v6245_v18, %v4718_v17  ;;  %v6249_v17 = vld [vmem:[#allocation5 + $0x84] sm:$0xf]  ;;  %v7310_v25 = vor.u32 %v6278_v8, %v4854_v7  ;;  %v6270_v31 = vld [vmem:[#allocation5 + $0x124] sm:$0xf0] }
  0x50   :  { %1209 = vmatpush.bf16.msrb.mxu0 %v7238_v0  ;;  %v6309_v22 = vld [vmem:[#allocation5 + $0x25c] sm:$0xf0]  ;;  %v4752_v18 = vld [vmem:[#allocation5 + $0xa0] sm:$0xf0]  ;;  %v4790_v47 = vld [vmem:[#allocation5 + $0xc8] sm:$0xf] }
  0x51   :  { %1222 = vmatpush.bf16.msrb.mxu1 %v7241_v3  ;;  %v4686_v32 = vld [vmem:[#allocation5] sm:$0xf]  ;;  %v7267_v33 = vor.u32 %v6309_v22, %v4974_v21  ;;  %v6313_v21 = vld [vmem:[#allocation5 + $0x284] sm:$0xf]  ;;  %v6262_v49 = vld [vmem:[#allocation5 + $0xe4] sm:$0xf0] }
  0x52   :  { %v6237_v34 = vld [vmem:[#allocation5 + $0x1c] sm:$0xf0]  ;;  %v5008_v22 = vld [vmem:[#allocation5 + $0x2a0] sm:$0xf0]  ;;  %v5046_v50 = vld [vmem:[#allocation5 + $0x2c8] sm:$0xf]  ;;  %v7336_v7 = vor.u32 %v6262_v49, %v4790_v47 }
  0x53   :  { %v4942_v35 = vld [vmem:[#allocation5 + $0x200] sm:$0xf]  ;;  %1232 = vmatpush.bf16.msrb.mxu2 %v7258_v20  ;;  %1245 = vmatpush.bf16.msrb.mxu3 %v7261_v24  ;;  %v7276_v48 = vor.u32 %v6237_v34, %v4686_v32  ;;  %v7319_v32 = vor.u32 %v6249_v17, %v4752_v18  ;;  %v7321_v34 = vor.u32 %v6313_v21, %v5008_v22  ;;  %v4720_v41 = vld [vmem:[#allocation5 + $0x60] sm:$0xf0]  ;;  %v6326_v60 = vld [vmem:[#allocation5 + $0x2e4] sm:$0xf0] }
  0x54   :  { %1210 = vmatpush.bf16.msrb.mxu0 %v7248_v12  ;;  %v6301_v38 = vld [vmem:[#allocation5 + $0x21c] sm:$0xf0]  ;;  %v6305_v43 = vld [vmem:[#allocation5 + $0x244] sm:$0xf]  ;;  %v7331_v57 = vor.u32 %v6241_v40, %v4720_v41  ;;  %v6290_v2 = vld [vmem:[#allocation5 + $0x1cc] sm:$0xf]  ;;  %v7339_v17 = vor.u32 %v6326_v60, %v5046_v50 }
  0x55   :  { %1223 = vmatpush.bf16.msrb.mxu1 %v7253_v15  ;;  %v7279_v51 = vor.u32 %v6301_v38, %v4942_v35  ;;  %v5078_v35 = vld [vmem:[#allocation5 + $0x308] sm:$0xf]  ;;  %v4976_v45 = vld [vmem:[#allocation5 + $0x260] sm:$0xf0]  ;;  %v4920_v8 = vld [vmem:[#allocation5 + $0x1e8] sm:$0xf0] }
  0x56   :  { %v6334_v38 = vld [vmem:[#allocation5 + $0x324] sm:$0xf0]  ;;  %v7333_v58 = vor.u32 %v6305_v43, %v4976_v45  ;;  %v6233_v61 = vld [vmem:[#allocation5 + $0x4] sm:$0xf]  ;;  %v6354_v13 = vld [vmem:[#allocation5 + $0x3cc] sm:$0xf] }
  0x57   :  { %1233 = vmatpush.bf16.msrb.mxu2 %v7270_v39  ;;  %1246 = vmatpush.bf16.msrb.mxu3 %v7273_v44  ;;  %v7327_v46 = vor.u32 %v6334_v38, %v5078_v35  ;;  %v4688_v62 = vld [vmem:[#allocation5 + $0x20] sm:$0xf0]  ;;  %v5176_v14 = vld [vmem:[#allocation5 + $0x3e8] sm:$0xf0]  ;;  %8977 = vst [vmem:[#allocation28_spill] sm:$0xff] %v7339_v17  ;;  %v7347_v38 = vor.u32 %v6290_v2, %v4920_v8 }
  0x58   :  { %1211 = vmatpush.bf16.msrb.mxu0 %v7264_v29  ;;  %v6297_v63 = vld [vmem:[#allocation5 + $0x204] sm:$0xf]  ;;  %v4758_v18 = vld [vmem:[#allocation5 + $0x88] sm:$0xf]  ;;  %v7343_v22 = vor.u32 %v6233_v61, %v4688_v62  ;;  %v7349_v40 = vor.u32 %v6354_v13, %v5176_v14  ;;  %v6282_v41 = vld [vmem:[#allocation5 + $0x18c] sm:$0xf] }
  0x59   :  { %1224 = vmatpush.bf16.msrb.mxu1 %v7267_v33  ;;  %8976 = vst [vmem:[#allocation27_spill] sm:$0xff] %v7327_v46  ;;  %v4944_v1 = vld [vmem:[#allocation5 + $0x220] sm:$0xf0]  ;;  %v6254_v21 = vld [vmem:[#allocation5 + $0xa4] sm:$0xf0] }
  0x5a   :  { %8978 = vst [vmem:[#allocation29_spill] sm:$0xff] %v7343_v22  ;;  %v6318_v35 = vld [vmem:[#allocation5 + $0x2a4] sm:$0xf0]  ;;  %v7352_v43 = vor.u32 %v6254_v21, %v4758_v18  ;;  %v4888_v45 = vld [vmem:[#allocation5 + $0x1a8] sm:$0xf0] }
  0x5b   :  { %1234 = vmatpush.bf16.msrb.mxu2 %v7286_v56  ;;  %1247 = vmatpush.bf16.msrb.mxu3 %v7289_v59  ;;  %8980 = vst [vmem:[#allocation31_spill] sm:$0xff] %v7347_v38  ;;  %v6346_v47 = vld [vmem:[#allocation5 + $0x38c] sm:$0xf]  ;;  %v4726_v60 = vld [vmem:[#allocation5 + $0x48] sm:$0xf] }
  0x5c   :  { %1212 = vmatpush.bf16.msrb.mxu0 %v7276_v48  ;;  %8981 = vst [vmem:[#allocation32_spill] sm:$0xff] %v7349_v40  ;;  %v5144_v49 = vld [vmem:[#allocation5 + $0x3a8] sm:$0xf0]  ;;  %v6246_v61 = vld [vmem:[#allocation5 + $0x64] sm:$0xf0] }
  0x5d   :  { %1225 = vmatpush.bf16.msrb.mxu1 %v7279_v51  ;;  %8982 = vst [vmem:[#allocation33_spill] sm:$0xff] %v7352_v43  ;;  %v4982_v62 = vld [vmem:[#allocation5 + $0x248] sm:$0xf]  ;;  %v7363_v2 = vor.u32 %v6346_v47, %v5144_v49  ;;  %v6274_v8 = vld [vmem:[#allocation5 + $0x14c] sm:$0xf]  ;;  %v7366_v13 = vor.u32 %v6246_v61, %v4726_v60 }
  0x5e   :  { %4682 = vmatmul.msk.bf16.vlgmr.msra.gmra.mxu2 %vm269_vm1, %v7173_v16  ;;  %4683 = vmatmul.msk.bf16.vlgmr.msra.gmra.mxu3 %vm269_vm1, %v7173_v16  ;;  %v7324_v16 = vor.u32 %v6270_v31, %v4822_v30  ;;  %v7345_v30 = vor.u32 %v6297_v63, %v4944_v1  ;;  %v5014_v31 = vld [vmem:[#allocation5 + $0x288] sm:$0xf]  ;;  %v7361_v1 = vor.u32 %v6282_v41, %v4888_v45  ;;  %v4856_v14 = vld [vmem:[#allocation5 + $0x168] sm:$0xf0]  ;;  %v4926_v47 = vld [vmem:[#allocation5 + $0x1d0] sm:$0xf] }
  0x5f   :  { %1213 = vmatmul.bf16.vlgmr.msrb.gmra.mxu0 %v8818_v36  ;;  %1235 = vmatpush.bf16.msrb.mxu2 %v7302_v10  ;;  %v7355_v50 = vor.u32 %v6318_v35, %v5014_v31  ;;  %v6310_v63 = vld [vmem:[#allocation5 + $0x264] sm:$0xf0]  ;;  %8985 = vst [vmem:[#allocation36_spill] sm:$0xff] %v7363_v2  ;;  %v6338_v18 = vld [vmem:[#allocation5 + $0x34c] sm:$0xf]  ;;  %v7375_v60 = vor.u32 %v6274_v8, %v4856_v14 }
  0x60   :  { %1257 = vmatpush.bf16.msra.mxu0 %v7281_v52  ;;  %1226 = vmatmul.bf16.vlgmr.msrb.gmra.mxu1 %v8818_v36  ;;  %8979 = vst [vmem:[#allocation30_spill] sm:$0xff] %v7345_v30  ;;  %v5112_v21 = vld [vmem:[#allocation5 + $0x368] sm:$0xf0]  ;;  %v7370_v31 = vor.u32 %v6310_v63, %v4982_v62  ;;  %v4694_v35 = vld [vmem:[#allocation5 + $0x8] sm:$0xf] }
  0x61   :  { %1270 = vmatpush.bf16.msra.mxu1 %v7284_v54  ;;  %1248 = vmatpush.bf16.msrb.mxu3 %v7304_v11  ;;  %8983 = vst [vmem:[#allocation34_spill] sm:$0xff] %v7355_v50  ;;  %v4950_v41 = vld [vmem:[#allocation5 + $0x208] sm:$0xf]  ;;  %v6295_v49 = vld [vmem:[#allocation5 + $0x1ec] sm:$0xf0]  ;;  %v7377_v61 = vor.u32 %v6338_v18, %v5112_v21 }
  0x62   :  { %8984 = vst [vmem:[#allocation35_spill] sm:$0xff] %v7361_v1  ;;  %v6302_v45 = vld [vmem:[#allocation5 + $0x224] sm:$0xf0]  ;;  %v6266_v62 = vld [vmem:[#allocation5 + $0x10c] sm:$0xf] }
  0x63   :  { %1236 = vmatpush.bf16.msrb.mxu2 %v7319_v32  ;;  %8986 = vst [vmem:[#allocation37_spill] sm:$0xff] %v7366_v13  ;;  %v4894_v14 = vld [vmem:[#allocation5 + $0x190] sm:$0xf] }
  0x64   :  { %1258 = vmatpush.bf16.msra.mxu0 %v7294_v4  ;;  %8987 = vst [vmem:[#allocation38_spill] sm:$0xff] %v7370_v31  ;;  %v6287_v18 = vld [vmem:[#allocation5 + $0x1ac] sm:$0xf0] }
  0x65   :  { %1271 = vmatpush.bf16.msra.mxu1 %v7298_v5  ;;  %1249 = vmatpush.bf16.msrb.mxu3 %v7321_v34  ;;  %8988 = vst [vmem:[#allocation39_spill] sm:$0xff] %v7375_v60 }
  0x66   :  { %8989 = vst [vmem:[#allocation40_spill] sm:$0xff] %v7377_v61 }
  0x67   :  { %1237 = vmatpush.bf16.msrb.mxu2 %v7331_v57 }
  0x68   :  { %1259 = vmatpush.bf16.msra.mxu0 %v7310_v25 }
  0x69   :  { %1272 = vmatpush.bf16.msra.mxu1 %v7315_v27  ;;  %1250 = vmatpush.bf16.msrb.mxu3 %v7333_v58 }
  0x6b   :  { %1238 = vmatpush.bf16.msrb.mxu2 %v7343_v22  ;;  %v6283_v22 = vld [vmem:[#allocation5 + $0x194] sm:$0xf] }
  0x6c   :  { %1260 = vmatpush.bf16.msra.mxu0 %v7324_v16 }
  0x6d   :  { %1273 = vmatpush.bf16.msra.mxu1 %v7327_v46  ;;  %1251 = vmatpush.bf16.msrb.mxu3 %v7345_v30  ;;  %v5080_v30 = vld [vmem:[#allocation5 + $0x328] sm:$0xf0]  ;;  %v4734_v46 = vld [vmem:[#allocation5 + $0x50] sm:$0xf] }
  0x6e   :  { %1239 = vmatmul.bf16.vlgmr.msrb.gmra.mxu2 %v8818_v36 }
  0x6f   :  { %1283 = vmatpush.bf16.msra.mxu2 %v7347_v38  ;;  %v7383_v38 = vor.u32 %v6302_v45, %v4950_v41  ;;  %v4792_v41 = vld [vmem:[#allocation5 + $0xe8] sm:$0xf0] }
  0x70   :  { %1261 = vmatpush.bf16.msra.mxu0 %v7336_v7  ;;  %1252 = vmatmul.bf16.vlgmr.msrb.gmra.mxu3 %v8818_v36  ;;  %v6330_v36 = vld [vmem:[#allocation5 + $0x30c] sm:$0xf] }
  0x71   :  { %1274 = vmatpush.bf16.msra.mxu1 %v7339_v17  ;;  %1296 = vmatpush.bf16.msra.mxu3 %v7349_v40  ;;  %v6238_v17 = vld [vmem:[#allocation5 + $0x24] sm:$0xf0]  ;;  %v6359_v40 = vld [vmem:[#allocation5 + $0x3ec] sm:$0xf0]  ;;  %8991 = vst [vmem:[#allocation42_spill] sm:$0xff] %v7383_v38 }
  0x72   :  { %v7380_v63 = vor.u32 %v6238_v17, %v4694_v35  ;;  %v7393_v17 = vor.u32 %v6330_v36, %v5080_v30  ;;  %v5150_v35 = vld [vmem:[#allocation5 + $0x390] sm:$0xf]  ;;  %v6322_v45 = vld [vmem:[#allocation5 + $0x2cc] sm:$0xf] }
  0x73   :  { %1284 = vmatpush.bf16.msra.mxu2 %v7361_v1  ;;  %v7385_v1 = vor.u32 %v6295_v49, %v4926_v47  ;;  %v5048_v47 = vld [vmem:[#allocation5 + $0x2e8] sm:$0xf0]  ;;  %v4862_v36 = vld [vmem:[#allocation5 + $0x150] sm:$0xf] }
  0x74   :  { %1262 = vmatpush.bf16.msra.mxu0 %v7352_v43  ;;  %8990 = vst [vmem:[#allocation41_spill] sm:$0xff] %v7380_v63  ;;  %v4824_v43 = vld [vmem:[#allocation5 + $0x128] sm:$0xf0]  ;;  %v6279_v30 = vld [vmem:[#allocation5 + $0x16c] sm:$0xf0]  ;;  %v7407_v49 = vor.u32 %v6322_v45, %v5048_v47 }
  0x75   :  { %1275 = vmatpush.bf16.msra.mxu1 %v7355_v50  ;;  %1297 = vmatpush.bf16.msra.mxu3 %v7363_v2  ;;  %v5182_v50 = vld [vmem:[#allocation5 + $0x3d0] sm:$0xf]  ;;  %8992 = vst [vmem:[#allocation43_spill] sm:$0xff] %v7385_v1  ;;  %v7391_v21 = vor.u32 %v6266_v62, %v4824_v43 }
  0x76   :  { %v7387_v8 = vor.u32 %v6359_v40, %v5182_v50  ;;  %8995 = vst [vmem:[#allocation46_spill] sm:$0xff] %v7393_v17  ;;  %v6351_v2 = vld [vmem:[#allocation5 + $0x3ac] sm:$0xf0]  ;;  %v7398_v40 = vor.u32 %v6287_v18, %v4894_v14  ;;  %v4760_v14 = vld [vmem:[#allocation5 + $0xa8] sm:$0xf0] }
  0x77   :  { %1285 = vmatpush.bf16.msra.mxu2 %v7375_v60  ;;  %8994 = vst [vmem:[#allocation45_spill] sm:$0xff] %v7391_v21  ;;  %v7401_v43 = vor.u32 %v6351_v2, %v5150_v35  ;;  %v5118_v62 = vld [vmem:[#allocation5 + $0x350] sm:$0xf]  ;;  %v6314_v2 = vld [vmem:[#allocation5 + $0x28c] sm:$0xf]  ;;  %v7412_v35 = vor.u32 %v6279_v30, %v4862_v36 }
  0x78   :  { %1263 = vmatpush.bf16.msra.mxu0 %v7366_v13  ;;  %8993 = vst [vmem:[#allocation44_spill] sm:$0xff] %v7387_v8  ;;  %v6258_v13 = vld [vmem:[#allocation5 + $0xcc] sm:$0xf]  ;;  %v6271_v45 = vld [vmem:[#allocation5 + $0x12c] sm:$0xf0] }
  0x79   :  { %1276 = vmatpush.bf16.msra.mxu1 %v7370_v31  ;;  %1298 = vmatpush.bf16.msra.mxu3 %v7377_v61  ;;  %8996 = vst [vmem:[#allocation47_spill] sm:$0xff] %v7398_v40  ;;  %v7405_v50 = vor.u32 %v6258_v13, %v4792_v41  ;;  %v6250_v31 = vld [vmem:[#allocation5 + $0x8c] sm:$0xf]  ;;  %v4830_v41 = vld [vmem:[#allocation5 + $0x110] sm:$0xf] }
  0x7a   :  { %8997 = vst [vmem:[#allocation48_spill] sm:$0xff] %v7401_v43  ;;  %v5016_v18 = vld [vmem:[#allocation5 + $0x2a8] sm:$0xf0]  ;;  %v7419_v47 = vor.u32 %v6250_v31, %v4760_v14  ;;  %v5054_v31 = vld [vmem:[#allocation5 + $0x2d0] sm:$0xf] }
  0x7b   :  { %1286 = vmatpush.bf16.msra.mxu2 %v7391_v21  ;;  %8998 = vst [vmem:[#allocation49_spill] sm:$0xff] %v7405_v50  ;;  %v6335_v21 = vld [vmem:[#allocation5 + $0x32c] sm:$0xf0]  ;;  %v6242_v61 = vld [vmem:[#allocation5 + $0x4c] sm:$0xf] }
  0x7c   :  { %1264 = vmatpush.bf16.msra.mxu0 %v7380_v63  ;;  %8999 = vst [vmem:[#allocation50_spill] sm:$0xff] %v7407_v49  ;;  %v6306_v36 = vld [vmem:[#allocation5 + $0x24c] sm:$0xf]  ;;  %v6327_v14 = vld [vmem:[#allocation5 + $0x2ec] sm:$0xf0] }
  0x7d   :  { %1277 = vmatpush.bf16.msra.mxu1 %v7383_v38  ;;  %1299 = vmatpush.bf16.msra.mxu3 %v7393_v17  ;;  %v6343_v38 = vld [vmem:[#allocation5 + $0x36c] sm:$0xf0]  ;;  %9001 = vst [vmem:[#allocation51_spill] sm:$0xff] %v7412_v35  ;;  %v4984_v30 = vld [vmem:[#allocation5 + $0x268] sm:$0xf0] }
  0x7e   :  { %v7415_v13 = vor.u32 %v6343_v38, %v5118_v62  ;;  %9003 = vst [vmem:[#allocation53_spill] sm:$0xff] %v7419_v47  ;;  %v5086_v17 = vld [vmem:[#allocation5 + $0x310] sm:$0xf]  ;;  %v7424_v38 = vor.u32 %v6271_v45, %v4830_v41  ;;  %v6298_v41 = vld [vmem:[#allocation5 + $0x20c] sm:$0xf] }
  0x7f   :  { %1287 = vmatpush.bf16.msra.mxu2 %v7405_v50  ;;  %v4798_v62 = vld [vmem:[#allocation5 + $0xd0] sm:$0xf]  ;;  %v6234_v50 = vld [vmem:[#allocation5 + $0xc] sm:$0xf]  ;;  %v6291_v63 = vld [vmem:[#allocation5 + $0x1d4] sm:$0xf] }
  0x80   :  { %1309 = vmatpush.bf16.msrb.mxu0 %v7385_v1  ;;  %v9000_v1 = vmov 0   ;;  %9002 = vst [vmem:[#allocation52_spill] sm:$0xff] %v7415_v13  ;;  %v4952_v45 = vld [vmem:[#allocation5 + $0x228] sm:$0xf0]  ;;  %v5184_v60 = vld [vmem:[#allocation5 + $0x3f0] sm:$0xf0] }
  0x81   :  { %1322 = vmatpush.bf16.msrb.mxu1 %v7387_v8  ;;  %1265 = vmatmul.bf16.vlgmr.msra.gmra.mxu0 %v9000_v1  ;;  %v7421_v8 = vor.u32 %v6314_v2, %v5016_v18  ;;  %9005 = vst [vmem:[#allocation55_spill] sm:$0xff] %v7424_v38  ;;  %v7433_v18 = vor.u32 %v6306_v36, %v4984_v30 }
  0x82   :  { %1278 = vmatmul.bf16.vlgmr.msra.gmra.mxu1 %v9000_v1  ;;  %1300 = vmatpush.bf16.msra.mxu3 %v7407_v49  ;;  %v6263_v49 = vld [vmem:[#allocation5 + $0xec] sm:$0xf0]  ;;  %v7445_v30 = vor.u32 %v6298_v41, %v4952_v45  ;;  %v6275_v45 = vld [vmem:[#allocation5 + $0x154] sm:$0xf] }
  0x83   :  { %9004 = vst [vmem:[#allocation54_spill] sm:$0xff] %v7421_v8  ;;  %1288 = vmatpush.bf16.msra.mxu2 %v7419_v47  ;;  %v7439_v47 = vor.u32 %v6327_v14, %v5054_v31  ;;  %v6347_v14 = vld [vmem:[#allocation5 + $0x394] sm:$0xf] }
  0x84   :  { %1310 = vmatpush.bf16.msrb.mxu0 %v7398_v40  ;;  %v4728_v40 = vld [vmem:[#allocation5 + $0x68] sm:$0xf0]  ;;  %9011 = vst [vmem:[#allocation61_spill] sm:$0xff] %v7445_v30 }
  0x85   :  { %1323 = vmatpush.bf16.msrb.mxu1 %v7401_v43  ;;  %v7427_v43 = vor.u32 %v6335_v21, %v5086_v17  ;;  %v7431_v2 = vor.u32 %v6242_v61, %v4728_v40  ;;  %v7436_v21 = vor.u32 %v6263_v49, %v4798_v62  ;;  %v4928_v17 = vld [vmem:[#allocation5 + $0x1f0] sm:$0xf0]  ;;  %9009 = vst [vmem:[#allocation59_spill] sm:$0xff] %v7439_v47  ;;  %v4766_v61 = vld [vmem:[#allocation5 + $0x90] sm:$0xf] }
  0x86   :  { %1301 = vmatpush.bf16.msra.mxu3 %v7421_v8  ;;  %v6255_v40 = vld [vmem:[#allocation5 + $0xac] sm:$0xf0]  ;;  %v7447_v49 = vor.u32 %v6291_v63, %v4928_v17 }
  0x87   :  { %9006 = vst [vmem:[#allocation56_spill] sm:$0xff] %v7427_v43  ;;  %1289 = vmatpush.bf16.msra.mxu2 %v7431_v2  ;;  %v6319_v8 = vld [vmem:[#allocation5 + $0x2ac] sm:$0xf0]  ;;  %v7452_v31 = vor.u32 %v6255_v40, %v4766_v61  ;;  %v4864_v61 = vld [vmem:[#allocation5 + $0x170] sm:$0xf0] }
  0x88   :  { %1311 = vmatpush.bf16.msrb.mxu0 %v7412_v35  ;;  %9007 = vst [vmem:[#allocation57_spill] sm:$0xff] %v7431_v2  ;;  %v4696_v35 = vld [vmem:[#allocation5 + $0x28] sm:$0xf0]  ;;  %v5152_v2 = vld [vmem:[#allocation5 + $0x3b0] sm:$0xf0] }
  0x89   :  { %1324 = vmatpush.bf16.msrb.mxu1 %v7415_v13  ;;  %9008 = vst [vmem:[#allocation58_spill] sm:$0xff] %v7436_v21  ;;  %v6355_v13 = vld [vmem:[#allocation5 + $0x3d4] sm:$0xf]  ;;  %v7443_v36 = vor.u32 %v6234_v50, %v4696_v35  ;;  %v6247_v50 = vld [vmem:[#allocation5 + $0x6c] sm:$0xf0]  ;;  %v7463_v41 = vor.u32 %v6347_v14, %v5152_v2 }
  0x8a   :  { %1302 = vmatpush.bf16.msra.mxu3 %v7433_v18  ;;  %9012 = vst [vmem:[#allocation62_spill] sm:$0xff] %v7447_v49  ;;  %v7449_v62 = vor.u32 %v6355_v13, %v5184_v60  ;;  %v4990_v60 = vld [vmem:[#allocation5 + $0x250] sm:$0xf]  ;;  %v7466_v17 = vor.u32 %v6247_v50, %v4734_v46  ;;  %v6339_v40 = vld [vmem:[#allocation5 + $0x354] sm:$0xf]  ;;  %v7475_v46 = vor.u32 %v6275_v45, %v4864_v61 }
  0x8b   :  { %9010 = vst [vmem:[#allocation60_spill] sm:$0xff] %v7443_v36  ;;  %1290 = vmatpush.bf16.msra.mxu2 %v7443_v36  ;;  %v6311_v35 = vld [vmem:[#allocation5 + $0x26c] sm:$0xf0]  ;;  %v6296_v2 = vld [vmem:[#allocation5 + $0x1f4] sm:$0xf0] }
  0x8c   :  { %1312 = vmatpush.bf16.msrb.mxu0 %v7424_v38  ;;  %v5022_v38 = vld [vmem:[#allocation5 + $0x290] sm:$0xf]  ;;  %9013 = vst [vmem:[#allocation63_spill] sm:$0xff] %v7449_v62  ;;  %v6288_v61 = vld [vmem:[#allocation5 + $0x1b4] sm:$0xf0] }
  0x8d   :  { %1325 = vmatpush.bf16.msrb.mxu1 %v7427_v43  ;;  %v4896_v43 = vld [vmem:[#allocation5 + $0x1b0] sm:$0xf0]  ;;  %9014 = vst [vmem:[#allocation64_spill] sm:$0xff] %v7452_v31  ;;  %v7457_v63 = vor.u32 %v6319_v8, %v5022_v38  ;;  %v4702_v8 = vld [vmem:[#allocation5 + $0x10] sm:$0xf] }
  0x8e   :  { %1303 = vmatpush.bf16.msra.mxu3 %v7445_v30  ;;  %v7461_v13 = vor.u32 %v6283_v22, %v4896_v43  ;;  %9017 = vst [vmem:[#allocation67_spill] sm:$0xff] %v7463_v41  ;;  %1291 = vmatmul.bf16.vlgmr.msra.gmra.mxu2 %v9000_v1  ;;  %v6239_v38 = vld [vmem:[#allocation5 + $0x2c] sm:$0xf0]  ;;  %v7471_v22 = vor.u32 %v6311_v35, %v4990_v60  ;;  %v4934_v43 = vld [vmem:[#allocation5 + $0x1d8] sm:$0xf] }
  0x8f   :  { %9015 = vst [vmem:[#allocation65_spill] sm:$0xff] %v7457_v63  ;;  %1335 = vmatpush.bf16.msrb.mxu2 %v7447_v49  ;;  %v4958_v50 = vld [vmem:[#allocation5 + $0x210] sm:$0xf]  ;;  %v6267_v60 = vld [vmem:[#allocation5 + $0x114] sm:$0xf]  ;;  %v7482_v49 = vor.u32 %v6296_v2, %v4934_v43 }
  0x90   :  { %1313 = vmatpush.bf16.msrb.mxu0 %v7436_v21  ;;  %9016 = vst [vmem:[#allocation66_spill] sm:$0xff] %v7461_v13  ;;  %v7480_v21 = vor.u32 %v6239_v38, %v4702_v8  ;;  %v4832_v35 = vld [vmem:[#allocation5 + $0x130] sm:$0xf0]  ;;  %v5158_v38 = vld [vmem:[#allocation5 + $0x398] sm:$0xf] }
  0x91   :  { %1326 = vmatpush.bf16.msrb.mxu1 %v7439_v47  ;;  %9018 = vst [vmem:[#allocation68_spill] sm:$0xff] %v7466_v17  ;;  %v5120_v47 = vld [vmem:[#allocation5 + $0x370] sm:$0xf0]  ;;  %1304 = vmatmul.bf16.vlgmr.msra.gmra.mxu3 %v9000_v1  ;;  %v7491_v8 = vor.u32 %v6267_v60, %v4832_v35  ;;  %v6352_v2 = vld [vmem:[#allocation5 + $0x3b4] sm:$0xf0] }
  0x92   :  { %1348 = vmatpush.bf16.msrb.mxu3 %v7449_v62  ;;  %9019 = vst [vmem:[#allocation69_spill] sm:$0xff] %v7471_v22  ;;  %v7477_v14 = vor.u32 %v6339_v40, %v5120_v47  ;;  %v6303_v62 = vld [vmem:[#allocation5 + $0x22c] sm:$0xf0]  ;;  %v6331_v30 = vld [vmem:[#allocation5 + $0x314] sm:$0xf]  ;;  %v7502_v60 = vor.u32 %v6352_v2, %v5158_v38 }
  0x93   :  { %1336 = vmatpush.bf16.msrb.mxu2 %v7461_v13  ;;  %9020 = vst [vmem:[#allocation70_spill] sm:$0xff] %v7475_v46  ;;  %v5088_v13 = vld [vmem:[#allocation5 + $0x330] sm:$0xf0]  ;;  %v7485_v45 = vor.u32 %v6303_v62, %v4958_v50  ;;  %v4902_v47 = vld [vmem:[#allocation5 + $0x198] sm:$0xf] }
  0x94   :  { %1314 = vmatpush.bf16.msrb.mxu0 %v7452_v31  ;;  %9021 = vst [vmem:[#allocation71_spill] sm:$0xff] %v7477_v14  ;;  %v5190_v31 = vld [vmem:[#allocation5 + $0x3d8] sm:$0xf]  ;;  %v7494_v43 = vor.u32 %v6331_v30, %v5088_v13  ;;  %v7497_v62 = vor.u32 %v6288_v61, %v4902_v47  ;;  %v6323_v50 = vld [vmem:[#allocation5 + $0x2d4] sm:$0xf] }
  0x95   :  { %1327 = vmatpush.bf16.msrb.mxu1 %v7457_v63  ;;  %9022 = vst [vmem:[#allocation72_spill] sm:$0xff] %v7480_v21  ;;  %v6360_v63 = vld [vmem:[#allocation5 + $0x3f4] sm:$0xf0]  ;;  %v6251_v61 = vld [vmem:[#allocation5 + $0x94] sm:$0xf] }
  0x96   :  { %1349 = vmatpush.bf16.msrb.mxu3 %v7463_v41  ;;  %9023 = vst [vmem:[#allocation73_spill] sm:$0xff] %v7482_v49  ;;  %v7489_v40 = vor.u32 %v6360_v63, %v5190_v31  ;;  %v6259_v41 = vld [vmem:[#allocation5 + $0xd4] sm:$0xf]  ;;  %v4870_v31 = vld [vmem:[#allocation5 + $0x158] sm:$0xf] }
  0x97   :  { %9024 = vst [vmem:[#allocation74_spill] sm:$0xff] %v7485_v45  ;;  %1337 = vmatpush.bf16.msrb.mxu2 %v7475_v46  ;;  %v6280_v63 = vld [vmem:[#allocation5 + $0x174] sm:$0xf0]  ;;  %v6315_v38 = vld [vmem:[#allocation5 + $0x294] sm:$0xf] }
  0x98   :  { %1315 = vmatpush.bf16.msrb.mxu0 %v7466_v17  ;;  %9025 = vst [vmem:[#allocation75_spill] sm:$0xff] %v7489_v40  ;;  %v5056_v17 = vld [vmem:[#allocation5 + $0x2f0] sm:$0xf0]  ;;  %v5126_v13 = vld [vmem:[#allocation5 + $0x358] sm:$0xf] }
  0x99   :  { %1328 = vmatpush.bf16.msrb.mxu1 %v7471_v22  ;;  %9026 = vst [vmem:[#allocation76_spill] sm:$0xff] %v7491_v8  ;;  %v4800_v22 = vld [vmem:[#allocation5 + $0xf0] sm:$0xf0]  ;;  %v7508_v35 = vor.u32 %v6323_v50, %v5056_v17  ;;  %v6344_v47 = vld [vmem:[#allocation5 + $0x374] sm:$0xf0] }
  0x9a   :  { %1350 = vmatpush.bf16.msrb.mxu3 %v7477_v14  ;;  %9027 = vst [vmem:[#allocation77_spill] sm:$0xff] %v7494_v43  ;;  %v7504_v30 = vor.u32 %v6259_v41, %v4800_v22  ;;  %v5024_v2 = vld [vmem:[#allocation5 + $0x2b0] sm:$0xf0]  ;;  %v4838_v41 = vld [vmem:[#allocation5 + $0x118] sm:$0xf] }
  0x9b   :  { %9028 = vst [vmem:[#allocation78_spill] sm:$0xff] %v7497_v62  ;;  %1338 = vmatpush.bf16.msrb.mxu2 %v7491_v8  ;;  %v6272_v22 = vld [vmem:[#allocation5 + $0x134] sm:$0xf0]  ;;  %v7521_v14 = vor.u32 %v6315_v38, %v5024_v2  ;;  %v6235_v38 = vld [vmem:[#allocation5 + $0x14] sm:$0xf] }
  0x9c   :  { %1316 = vmatpush.bf16.msrb.mxu0 %v7480_v21  ;;  %9029 = vst [vmem:[#allocation79_spill] sm:$0xff] %v7502_v60  ;;  %v5094_v50 = vld [vmem:[#allocation5 + $0x318] sm:$0xf]  ;;  %v6307_v21 = vld [vmem:[#allocation5 + $0x254] sm:$0xf] }
  0x9d   :  { %1329 = vmatpush.bf16.msrb.mxu1 %v7485_v45  ;;  %9030 = vst [vmem:[#allocation80_spill] sm:$0xff] %v7504_v30  ;;  %v4768_v45 = vld [vmem:[#allocation5 + $0xb0] sm:$0xf0]  ;;  %v4806_v8 = vld [vmem:[#allocation5 + $0xd8] sm:$0xf] }
  0x9e   :  { %1351 = vmatpush.bf16.msrb.mxu3 %v7494_v43  ;;  %9031 = vst [vmem:[#allocation81_spill] sm:$0xff] %v7508_v35  ;;  %v7516_v43 = vor.u32 %v6344_v47, %v5126_v13  ;;  %v7518_v17 = vor.u32 %v6251_v61, %v4768_v45  ;;  %v5062_v47 = vld [vmem:[#allocation5 + $0x2d8] sm:$0xf] }
  0x9f   :  { %1317 = vmatmul.bf16.vlgmr.msrb.gmra.mxu0 %v9000_v1  ;;  %1339 = vmatpush.bf16.msrb.mxu2 %v7504_v30  ;;  %9035 = vst [vmem:[#allocation85_spill] sm:$0xff] %v7521_v14  ;;  %v6264_v30 = vld [vmem:[#allocation5 + $0xf4] sm:$0xf0] }
  0xa0   :  { %1361 = vmatpush.bf16.msra.mxu0 %v7482_v49  ;;  %1330 = vmatmul.bf16.vlgmr.msrb.gmra.mxu1 %v9000_v1  ;;  %9033 = vst [vmem:[#allocation83_spill] sm:$0xff] %v7516_v43  ;;  %v7524_v49 = vor.u32 %v6272_v22, %v4838_v41  ;;  %v6328_v61 = vld [vmem:[#allocation5 + $0x2f4] sm:$0xf0]  ;;  %v4704_v41 = vld [vmem:[#allocation5 + $0x30] sm:$0xf0] }
  0xa1   :  { %1374 = vmatpush.bf16.msra.mxu1 %v7489_v40  ;;  %v7512_v40 = vor.u32 %v6280_v63, %v4870_v31  ;;  %9034 = vst [vmem:[#allocation84_spill] sm:$0xff] %v7518_v17  ;;  %v6243_v31 = vld [vmem:[#allocation5 + $0x54] sm:$0xf] }
  0xa2   :  { %1352 = vmatpush.bf16.msrb.mxu3 %v7508_v35  ;;  %v4736_v63 = vld [vmem:[#allocation5 + $0x70] sm:$0xf0]  ;;  %9036 = vst [vmem:[#allocation86_spill] sm:$0xff] %v7524_v49 }
  0xa3   :  { %9032 = vst [vmem:[#allocation82_spill] sm:$0xff] %v7512_v40  ;;  %1340 = vmatpush.bf16.msrb.mxu2 %v7518_v17  ;;  %v7530_v13 = vor.u32 %v6243_v31, %v4736_v63  ;;  %v6299_v22 = vld [vmem:[#allocation5 + $0x214] sm:$0xf]  ;;  %v4936_v17 = vld [vmem:[#allocation5 + $0x1f8] sm:$0xf0] }
  0xa4   :  { %1362 = vmatpush.bf16.msra.mxu0 %v7497_v62  ;;  %v6336_v62 = vld [vmem:[#allocation5 + $0x334] sm:$0xf0]  ;;  %v4960_v35 = vld [vmem:[#allocation5 + $0x230] sm:$0xf0] }
  0xa5   :  { %1375 = vmatpush.bf16.msra.mxu1 %v7502_v60  ;;  %v4992_v60 = vld [vmem:[#allocation5 + $0x270] sm:$0xf0]  ;;  %v7528_v45 = vor.u32 %v6336_v62, %v5094_v50  ;;  %9038 = vst [vmem:[#allocation88_spill] sm:$0xff] %v7530_v13  ;;  %v6356_v62 = vld [vmem:[#allocation5 + $0x3dc] sm:$0xf] }
  0xa6   :  { %1353 = vmatpush.bf16.msrb.mxu3 %v7521_v14  ;;  %v7533_v2 = vor.u32 %v6307_v21, %v4992_v60  ;;  %v5192_v50 = vld [vmem:[#allocation5 + $0x3f8] sm:$0xf0]  ;;  %v4774_v31 = vld [vmem:[#allocation5 + $0x98] sm:$0xf]  ;;  %v7540_v14 = vor.u32 %v6328_v61, %v5062_v47  ;;  %v7542_v21 = vor.u32 %v6235_v38, %v4704_v41  ;;  %v7545_v60 = vor.u32 %v6299_v22, %v4960_v35 }
  0xa7   :  { %9037 = vst [vmem:[#allocation87_spill] sm:$0xff] %v7528_v45  ;;  %v6256_v63 = vld [vmem:[#allocation5 + $0xb4] sm:$0xf0]  ;;  %1341 = vmatpush.bf16.msrb.mxu2 %v7530_v13  ;;  %v7550_v46 = vor.u32 %v6356_v62, %v5192_v50  ;;  %v4904_v13 = vld [vmem:[#allocation5 + $0x1b8] sm:$0xf0] }
  0xa8   :  { %1363 = vmatpush.bf16.msra.mxu0 %v7512_v40  ;;  %9039 = vst [vmem:[#allocation89_spill] sm:$0xff] %v7533_v2  ;;  %v7536_v40 = vor.u32 %v6264_v30, %v4806_v8  ;;  %v5030_v30 = vld [vmem:[#allocation5 + $0x298] sm:$0xf]  ;;  %v7552_v36 = vor.u32 %v6256_v63, %v4774_v31  ;;  %v6348_v47 = vld [vmem:[#allocation5 + $0x39c] sm:$0xf] }
  0xa9   :  { %1376 = vmatpush.bf16.msra.mxu1 %v7516_v43  ;;  %v6292_v43 = vld [vmem:[#allocation5 + $0x1dc] sm:$0xf]  ;;  %9040 = vst [vmem:[#allocation90_spill] sm:$0xff] %v7540_v14  ;;  %v4742_v38 = vld [vmem:[#allocation5 + $0x58] sm:$0xf] }
  0xaa   :  { %1354 = vmatpush.bf16.msrb.mxu3 %v7533_v2  ;;  %9041 = vst [vmem:[#allocation91_spill] sm:$0xff] %v7545_v60  ;;  %v7547_v8 = vor.u32 %v6292_v43, %v4936_v17  ;;  %v5160_v61 = vld [vmem:[#allocation5 + $0x3b8] sm:$0xf0]  ;;  %v6248_v41 = vld [vmem:[#allocation5 + $0x74] sm:$0xf0] }
  0xab   :  { %9042 = vst [vmem:[#allocation92_spill] sm:$0xff] %v7550_v46  ;;  %1342 = vmatpush.bf16.msrb.mxu2 %v7542_v21  ;;  %v4998_v17 = vld [vmem:[#allocation5 + $0x258] sm:$0xf]  ;;  %v7564_v62 = vor.u32 %v6348_v47, %v5160_v61  ;;  %v7566_v50 = vor.u32 %v6248_v41, %v4742_v38  ;;  %v6276_v31 = vld [vmem:[#allocation5 + $0x15c] sm:$0xf] }
  0xac   :  { %1364 = vmatpush.bf16.msra.mxu0 %v7524_v49  ;;  %v6320_v49 = vld [vmem:[#allocation5 + $0x2b4] sm:$0xf0]  ;;  %9043 = vst [vmem:[#allocation93_spill] sm:$0xff] %v7552_v36  ;;  %v4872_v63 = vld [vmem:[#allocation5 + $0x178] sm:$0xf0] }
  0xad   :  { %1377 = vmatpush.bf16.msra.mxu1 %v7528_v45  ;;  %v6284_v45 = vld [vmem:[#allocation5 + $0x19c] sm:$0xf]  ;;  %v7556_v43 = vor.u32 %v6320_v49, %v5030_v30  ;;  %v6312_v22 = vld [vmem:[#allocation5 + $0x274] sm:$0xf0] }
  0xae   :  { %1355 = vmatpush.bf16.msrb.mxu3 %v7545_v60  ;;  %v7560_v35 = vor.u32 %v6284_v45, %v4904_v13  ;;  %v6340_v49 = vld [vmem:[#allocation5 + $0x35c] sm:$0xf]  ;;  %1343 = vmatmul.bf16.vlgmr.msrb.gmra.mxu2 %v9000_v1  ;;  %v6240_v60 = vld [vmem:[#allocation5 + $0x34] sm:$0xf0]  ;;  %v7571_v45 = vor.u32 %v6312_v22, %v4998_v17  ;;  %v7574_v13 = vor.u32 %v6276_v31, %v4872_v63 }
  0xaf   :  { %9044 = vst [vmem:[#allocation94_spill] sm:$0xff] %v7556_v43  ;;  %1387 = vmatpush.bf16.msra.mxu2 %v7547_v8  ;;  %v5128_v30 = vld [vmem:[#allocation5 + $0x378] sm:$0xf0]  ;;  %v4966_v47 = vld [vmem:[#allocation5 + $0x218] sm:$0xf] }
  0xb0   :  { %1365 = vmatpush.bf16.msra.mxu0 %v7536_v40  ;;  %v6304_v61 = vld [vmem:[#allocation5 + $0x234] sm:$0xf0]  ;;  %v7578_v38 = vor.u32 %v6340_v49, %v5128_v30  ;;  %v6332_v2 = vld [vmem:[#allocation5 + $0x31c] sm:$0xf] }
  0xb1   :  { %1378 = vmatpush.bf16.msra.mxu1 %v7540_v14  ;;  %v4710_v14 = vld [vmem:[#allocation5 + $0x18] sm:$0xf]  ;;  %1356 = vmatmul.bf16.vlgmr.msrb.gmra.mxu3 %v9000_v1  ;;  %v7583_v17 = vor.u32 %v6304_v61, %v4966_v47  ;;  %v6324_v63 = vld [vmem:[#allocation5 + $0x2dc] sm:$0xf] }
  0xb2   :  { %1400 = vmatpush.bf16.msra.mxu3 %v7550_v46  ;;  %v7580_v41 = vor.u32 %v6240_v60, %v4710_v14  ;;  %v6268_v46 = vld [vmem:[#allocation5 + $0x11c] sm:$0xf] }
  0xb3   :  { %1388 = vmatpush.bf16.msra.mxu2 %v7560_v35  ;;  %v6260_v14 = vld [vmem:[#allocation5 + $0xdc] sm:$0xf] }
  0xb4   :  { %1366 = vmatpush.bf16.msra.mxu0 %v7552_v36  ;;  %v4840_v36 = vld [vmem:[#allocation5 + $0x138] sm:$0xf0] }
  0xb5   :  { %1379 = vmatpush.bf16.msra.mxu1 %v7556_v43  ;;  %v5096_v43 = vld [vmem:[#allocation5 + $0x338] sm:$0xf0]  ;;  %v7586_v22 = vor.u32 %v6268_v46, %v4840_v36 }
  0xb6   :  { %1401 = vmatpush.bf16.msra.mxu3 %v7564_v62  ;;  %v7590_v31 = vor.u32 %v6332_v2, %v5096_v43  ;;  %v4808_v60 = vld [vmem:[#allocation5 + $0xf8] sm:$0xf0] }
  0xb7   :  { %1389 = vmatpush.bf16.msra.mxu2 %v7574_v13  ;;  %v5064_v49 = vld [vmem:[#allocation5 + $0x2f8] sm:$0xf0]  ;;  %v7596_v36 = vor.u32 %v6260_v14, %v4808_v60 }
  0xb8   :  { %1367 = vmatpush.bf16.msra.mxu0 %v7566_v50  ;;  %v7599_v46 = vor.u32 %v6324_v63, %v5064_v49  ;;  %v6252_v2 = vld [vmem:[#allocation5 + $0x9c] sm:$0xf] }
  0xb9   :  { %1380 = vmatpush.bf16.msra.mxu1 %v7571_v45  ;;  %v4776_v43 = vld [vmem:[#allocation5 + $0xb8] sm:$0xf0] }
  0xba   :  { %1402 = vmatpush.bf16.msra.mxu3 %v7578_v38  ;;  %v6316_v30 = vld [vmem:[#allocation5 + $0x29c] sm:$0xf]  ;;  %v7605_v47 = vor.u32 %v6252_v2, %v4776_v43 }
  0xbb   :  { %1390 = vmatpush.bf16.msra.mxu2 %v7586_v22  ;;  %v6244_v14 = vld [vmem:[#allocation5 + $0x5c] sm:$0xf] }
  0xbc   :  { %1368 = vmatpush.bf16.msra.mxu0 %v7580_v41  ;;  %v4744_v60 = vld [vmem:[#allocation5 + $0x78] sm:$0xf0] }
  0xbd   :  { %1381 = vmatpush.bf16.msra.mxu1 %v7583_v17  ;;  %v6308_v63 = vld [vmem:[#allocation5 + $0x25c] sm:$0xf]  ;;  %v7613_v49 = vor.u32 %v6244_v14, %v4744_v60 }
  0xbe   :  { %1403 = vmatpush.bf16.msra.mxu3 %v7590_v31  ;;  %v6236_v2 = vld [vmem:[#allocation5 + $0x1c] sm:$0xf] }
  0xbf   :  { %1369 = vmatmul.bf16.vlgmr.msra.gmra.mxu0 %v9000_v1  ;;  %1391 = vmatpush.bf16.msra.mxu2 %v7596_v36  ;;  %v4712_v43 = vld [vmem:[#allocation5 + $0x38] sm:$0xf0] }
  0xc0   :  { %1475 = vmatpush.bf16.msrb.mxu0 %v7177_v19  ;;  %1382 = vmatmul.bf16.vlgmr.msra.gmra.mxu1 %v9000_v1  ;;  %v5032_v19 = vld [vmem:[#allocation5 + $0x2b8] sm:$0xf0] }
  0xc1   :  { %1488 = vmatpush.bf16.msrb.mxu1 %v7180_v23  ;;  %v7608_v61 = vor.u32 %v6316_v30, %v5032_v19  ;;  %v5000_v23 = vld [vmem:[#allocation5 + $0x278] sm:$0xf0]  ;;  %v307_v14 = vpop.f32.mrf.mxu2  ;;  %v7628_v60 = vpop.f32.mrf.mxu3 }
  0xc2   :  { %1404 = vmatpush.bf16.msra.mxu3 %v7599_v46  ;;  %v6300_v30 = vld [vmem:[#allocation5 + $0x21c] sm:$0xf] }
  0xc3   :  { %1392 = vmatpush.bf16.msra.mxu2 %v7605_v47  ;;  %v4968_v19 = vld [vmem:[#allocation5 + $0x238] sm:$0xf0] }
  0xc4   :  { %1476 = vmatpush.bf16.msrb.mxu0 %v7183_v26  ;;  %v7616_v26 = vor.u32 %v6308_v63, %v5000_v23  ;;  %v9057_v63 = vld [vmem:[#allocation39_spill] sm:$0xff] }
  0xc5   :  { %1489 = vmatpush.bf16.msrb.mxu1 %v7188_v28  ;;  %v7621_v28 = vor.u32 %v6236_v2, %v4712_v43  ;;  %v9058_v2 = vld [vmem:[#allocation41_spill] sm:$0xff]  ;;  %v9059_v43 = vld [vmem:[#allocation40_spill] sm:$0xff] }
  0xc6   :  { %1405 = vmatpush.bf16.msra.mxu3 %v7608_v61 }
  0xc7   :  { %1393 = vmatpush.bf16.msra.mxu2 %v7613_v49 }
  0xc8   :  { %1477 = vmatpush.bf16.msrb.mxu0 %v7207_v37  ;;  %v7624_v37 = vor.u32 %v6300_v30, %v4968_v19  ;;  %v9060_v30 = vld [vmem:[#allocation38_spill] sm:$0xff]  ;;  %v9061_v19 = vld [vmem:[#allocation45_spill] sm:$0xff] }
  0xc9   :  { %1490 = vmatpush.bf16.msrb.mxu1 %v7213_v42  ;;  %v7633_v42 = vpop.f32.mrf.mxu0 }
  0xca   :  { %1406 = vmatpush.bf16.msra.mxu3 %v7616_v26 }
  0xcb   :  { %1394 = vmatpush.bf16.msra.mxu2 %v7621_v28 }
  0xcc   :  { %1478 = vmatpush.bf16.msrb.mxu0 %v7230_v53  ;;  %v7638_v53 = vpop.f32.mrf.mxu1 }
  0xcd   :  { %1491 = vmatpush.bf16.msrb.mxu1 %v7233_v55  ;;  %v7643_v55 = vpop.f32.mrf.mxu2 }
  0xce   :  { %1407 = vmatpush.bf16.msra.mxu3 %v7624_v37  ;;  %1395 = vmatmul.bf16.vlgmr.msra.gmra.mxu2 %v9000_v1 }
  0xcf   :  { %1501 = vmatpush.bf16.msrb.mxu2 %v7243_v6 }
  0xd0   :  { %1479 = vmatpush.bf16.msrb.mxu0 %v7238_v0  ;;  %v7647_v0 = vpop.f32.mrf.mxu3 }
  0xd1   :  { %1492 = vmatpush.bf16.msrb.mxu1 %v7241_v3  ;;  %1408 = vmatmul.bf16.vlgmr.msra.gmra.mxu3 %v9000_v1  ;;  %v7655_v3 = vpop.f32.mrf.mxu0 }
  0xd2   :  { %1514 = vmatpush.bf16.msrb.mxu3 %v7245_v9 }
  0xd3   :  { %1502 = vmatpush.bf16.msrb.mxu2 %v7258_v20 }
  0xd4   :  { %1480 = vmatpush.bf16.msrb.mxu0 %v7248_v12  ;;  %v7657_v6 = vpop.f32.mrf.mxu1 }
  0xd5   :  { %1493 = vmatpush.bf16.msrb.mxu1 %v7253_v15  ;;  %v7660_v9 = vpop.f32.mrf.mxu2  ;;  %v7671_v15 = vld [vmem:[%s9045_s26] sm:$0xff] }
  0xd6   :  { %1515 = vmatpush.bf16.msrb.mxu3 %v7261_v24  ;;  %v216_v20 = vperm.slane %v7671_v15, 0 }
  0xd7   :  { %1503 = vmatpush.bf16.msrb.mxu2 %v7270_v39 }
  0xd8   :  { %1481 = vmatpush.bf16.msrb.mxu0 %v7264_v29  ;;  %v7663_v12 = vpop.f32.mrf.mxu3 }
  0xd9   :  { %1494 = vmatpush.bf16.msrb.mxu1 %v7267_v33 }
  0xda   :  { %1516 = vmatpush.bf16.msrb.mxu3 %v7273_v44  ;;  %v308_v44 = vadd.f32 %v307_v14, %v216_v20  ;;  %v9062_v14 = vld [vmem:[#allocation46_spill] sm:$0xff] }
  0xdb   :  { %1504 = vmatpush.bf16.msrb.mxu2 %v7286_v56 }
  0xdc   :  { %1482 = vmatpush.bf16.msrb.mxu0 %v7276_v48  ;;  %v1214_v24 = vpop.f32.mrf.mxu0 }
  0xdd   :  { %1495 = vmatpush.bf16.msrb.mxu1 %v7279_v51  ;;  %v7679_v29 = vpop.f32.mrf.mxu2  ;;  %v1227_v33 = vpop.f32.mrf.mxu1 }
  0xde   :  { %1517 = vmatpush.bf16.msrb.mxu3 %v7289_v59  ;;  %v1228_v48 = vadd.f32 %v1227_v33, %v1214_v24  ;;  %v9063_v24 = vld [vmem:[#allocation42_spill] sm:$0xff]  ;;  %v217_v33 = vperm.slane %v7671_v15, 1 }
  0xdf   :  { %1505 = vmatpush.bf16.msrb.mxu2 %v7302_v10 }
  0xe0   :  { %1527 = vmatpush.bf16.msra.mxu0 %v7281_v52  ;;  %v7682_v39 = vpop.f32.mrf.mxu3  ;;  %v1413_v51 = vadd.f32 %v1228_v48, %v308_v44  ;;  %v9046_v52 = vld [vmem:[#allocation27_spill] sm:$0xff]  ;;  %v9064_v44 = vld [vmem:[#allocation49_spill] sm:$0xff] }
  0xe1   :  { %1540 = vmatpush.bf16.msra.mxu1 %v7284_v54  ;;  %v9047_v54 = vld [vmem:[#allocation29_spill] sm:$0xff] }
  0xe2   :  { %1518 = vmatpush.bf16.msrb.mxu3 %v7304_v11 }
  0xe3   :  { %1506 = vmatpush.bf16.msrb.mxu2 %v7319_v32  ;;  %v9052_v32 = vld [vmem:[#allocation28_spill] sm:$0xff] }
  0xe4   :  { %1528 = vmatpush.bf16.msra.mxu0 %v7294_v4  ;;  %v1216_v59 = vpop.f32.mrf.mxu0  ;;  %v9048_v4 = vld [vmem:[#allocation31_spill] sm:$0xff] }
  0xe5   :  { %1541 = vmatpush.bf16.msra.mxu1 %v7298_v5  ;;  %v7693_v56 = vpop.f32.mrf.mxu2  ;;  %v9049_v5 = vld [vmem:[#allocation30_spill] sm:$0xff]  ;;  %v1229_v11 = vpop.f32.mrf.mxu1  ;;  %v322_v59 = vadd.f32 %v7628_v60, %v217_v33 }
  0xe6   :  { %1519 = vmatpush.bf16.msrb.mxu3 %v7321_v34  ;;  %v9053_v34 = vld [vmem:[#allocation35_spill] sm:$0xff] }
  0xe7   :  { %1507 = vmatpush.bf16.msrb.mxu2 %v7331_v57  ;;  %v9055_v57 = vld [vmem:[#allocation36_spill] sm:$0xff] }
  0xe8   :  { %1529 = vmatpush.bf16.msra.mxu0 %v7310_v25  ;;  %v7697_v10 = vpop.f32.mrf.mxu3  ;;  %v9050_v25 = vld [vmem:[#allocation33_spill] sm:$0xff] }
  0xe9   :  { %1542 = vmatpush.bf16.msra.mxu1 %v7315_v27  ;;  %v9051_v27 = vld [vmem:[#allocation32_spill] sm:$0xff] }
  0xea   :  { %1520 = vmatpush.bf16.msrb.mxu3 %v7333_v58  ;;  %v9056_v58 = vld [vmem:[#allocation34_spill] sm:$0xff] }
  0xeb   :  { %1508 = vmatpush.bf16.msrb.mxu2 %v9047_v54 }
  0xec   :  { %1530 = vmatpush.bf16.msra.mxu0 %v7324_v16  ;;  %v9054_v16 = vld [vmem:[#allocation37_spill] sm:$0xff] }
  0xed   :  { %1543 = vmatpush.bf16.msra.mxu1 %v9046_v52  ;;  %v9065_v52 = vld [vmem:[#allocation50_spill] sm:$0xff] }
  0xee   :  { %1521 = vmatpush.bf16.msrb.mxu3 %v9049_v5  ;;  %v9066_v5 = vld [vmem:[#allocation53_spill] sm:$0xff] }
  0xef   :  { %1553 = vmatpush.bf16.msra.mxu2 %v9048_v4 }
  0xf0   :  { %1531 = vmatpush.bf16.msra.mxu0 %v7336_v7  ;;  %v7706_v7 = vpop.f32.mrf.mxu2  ;;  %v7709_v23 = vpop.f32.mrf.mxu3 }
  0xf1   :  { %1544 = vmatpush.bf16.msra.mxu1 %v9052_v32 }
  0xf2   :  { %1566 = vmatpush.bf16.msra.mxu3 %v9051_v27 }
  0xf3   :  { %1554 = vmatpush.bf16.msra.mxu2 %v9053_v34  ;;  %v9068_v34 = vld [vmem:[#allocation57_spill] sm:$0xff] }
  0xf4   :  { %1532 = vmatpush.bf16.msra.mxu0 %v9050_v25  ;;  %v9067_v25 = vld [vmem:[#allocation54_spill] sm:$0xff] }
  0xf5   :  { %1545 = vmatpush.bf16.msra.mxu1 %v9056_v58  ;;  %v9069_v58 = vld [vmem:[#allocation60_spill] sm:$0xff] }
  0xf6   :  { %1567 = vmatpush.bf16.msra.mxu3 %v9055_v57 }
  0xf7   :  { %1555 = vmatpush.bf16.msra.mxu2 %v9057_v63  ;;  %v9070_v63 = vld [vmem:[#allocation61_spill] sm:$0xff] }
  0xf8   :  { %1533 = vmatpush.bf16.msra.mxu0 %v9054_v16  ;;  %v1240_v48 = vpop.f32.mrf.mxu2  ;;  %v1253_v54 = vpop.f32.mrf.mxu3 }
  0xf9   :  { %1546 = vmatpush.bf16.msra.mxu1 %v9060_v30  ;;  %v1254_v4 = vadd.f32 %v1253_v54, %v1240_v48 }
  0xfa   :  { %1568 = vmatpush.bf16.msra.mxu3 %v9059_v43  ;;  %v218_v43 = vperm.slane %v7671_v15, 2 }
  0xfb   :  { %1556 = vmatpush.bf16.msra.mxu2 %v9061_v19  ;;  %v1414_v11 = vadd.f32 %v1254_v4, %v322_v59 }
  0xfc   :  { %1534 = vmatpush.bf16.msra.mxu0 %v9058_v2  ;;  %v336_v19 = vadd.f32 %v7660_v9, %v218_v43 }
  0xfd   :  { %1547 = vmatpush.bf16.msra.mxu1 %v9063_v24 }
  0xfe   :  { %1569 = vmatpush.bf16.msra.mxu3 %v9062_v14  ;;  %v1266_v27 = vpop.f32.mrf.mxu0 }
  0xff   :  { %1557 = vmatpush.bf16.msra.mxu2 %v9064_v44  ;;  %v1279_v32 = vpop.f32.mrf.mxu1  ;;  %v1421_v44 = vmul.f32 0.5, %v1413_v51  ;;  %v219_v51 = vperm.slane %v7671_v15, 3 }
 0x100   :  { %v1242_v16 = vpop.f32.mrf.mxu2  ;;  %v1255_v57 = vpop.f32.mrf.mxu3  ;;  %v1280_v30 = vadd.f32 %v1279_v32, %v1266_v27 }
 0x102   :  { %1570 = vmatpush.bf16.msra.mxu3 %v9065_v52  ;;  %v1415_v14 = vadd.f32 %v1280_v30, %v336_v19  ;;  %v350_v30 = vadd.f32 %v7663_v12, %v219_v51 }
 0x103   :  { %1558 = vmatpush.bf16.msra.mxu2 %v9066_v5 }
 0x104   :  { %v1423_v24 = vmul.f32 0.5, %v1415_v14 }
 0x106   :  { %1571 = vmatpush.bf16.msra.mxu3 %v9067_v25  ;;  %v1268_v2 = vpop.f32.mrf.mxu0  ;;  %6643 = vtanh.f32 %v1423_v24 }
 0x107   :  { %1559 = vmatpush.bf16.msra.mxu2 %v9068_v34  ;;  %v1281_v60 = vpop.f32.mrf.mxu1  ;;  %6645 = vtanh.f32 %v1421_v44 }
 0x10a   :  { %1572 = vmatpush.bf16.msra.mxu3 %v7433_v18  ;;  %v220_v18 = vperm.slane %v7671_v15, 4 }
 0x10b   :  { %1560 = vmatpush.bf16.msra.mxu2 %v9069_v58 }
 0x10c   :  { %v6644_v4 = vpop.eup %6643  ;;  %v364_v5 = vadd.f32 %v7633_v42, %v220_v18 }
 0x10d   :  { %v6646_v9 = vpop.eup %6645  ;;  %v1431_v16 = vadd.f32 1.0, %v6644_v4  ;;  %v1422_v4 = vmul.f32 0.5, %v1414_v11 }
 0x10e   :  { %1573 = vmatpush.bf16.msra.mxu3 %v9070_v63  ;;  %v1429_v57 = vadd.f32 1.0, %v6646_v9 }
 0x10f   :  { %v1435_v2 = vmul.f32 0.5, %v1431_v16 }
 0x110   :  { %v1433_v19 = vmul.f32 0.5, %v1429_v57 }
 0x111   :  { %v1292_v48 = vpop.f32.mrf.mxu2  ;;  %v1447_v24 = vmul.f32 0.0, %v1435_v2 }
 0x114   :  { %v1305_v52 = vpop.f32.mrf.mxu3 }
 0x115   :  { %v1306_v58 = vadd.f32 %v1305_v52, %v1292_v48 }
 0x117   :  { %v1416_v14 = vadd.f32 %v1306_v58, %v350_v30 }
 0x119   :  { %v1294_v27 = vpop.f32.mrf.mxu2 }
 0x11c   :  { %v1318_v54 = vpop.f32.mrf.mxu0  ;;  %v1307_v32 = vpop.f32.mrf.mxu3 }
 0x11d   :  { %v1331_v59 = vpop.f32.mrf.mxu1  ;;  %v222_v32 = vperm.slane %v7671_v15, 6 }
 0x11e   :  { %v1332_v25 = vadd.f32 %v1331_v59, %v1318_v54  ;;  %v1424_v59 = vmul.f32 0.5, %v1416_v14 }
 0x11f   :  { %v392_v58 = vadd.f32 %v7693_v56, %v222_v32 }
 0x120   :  { %v1417_v34 = vadd.f32 %v1332_v25, %v364_v5  ;;  %v221_v5 = vperm.slane %v7671_v15, 5 }
 0x122   :  { %6647 = vtanh.f32 %v1417_v34  ;;  %v378_v12 = vadd.f32 %v7638_v53, %v221_v5 }
 0x123   :  { %6649 = vtanh.f32 %v1424_v59 }
 0x124   :  { %v1320_v63 = vpop.f32.mrf.mxu0  ;;  %6651 = vtanh.f32 %v1422_v4 }
 0x125   :  { %v1333_v60 = vpop.f32.mrf.mxu1 }
 0x128   :  { %v6648_v42 = vpop.eup %6647 }
 0x129   :  { %v1449_v44 = vmul.f32 %v6648_v42, %v1433_v19  ;;  %v6650_v25 = vpop.eup %6649 }
 0x12a   :  { %v6652_v9 = vpop.eup %6651  ;;  %v1432_v57 = vadd.f32 1.0, %v6650_v25 }
 0x12b   :  { %v7741_v54 = vadd.f32 %v1449_v44, %v1447_v24  ;;  %v1430_v63 = vadd.f32 1.0, %v6652_v9 }
 0x12c   :  { %v1436_v30 = vmul.f32 0.5, %v1432_v57  ;;  %v9071_v57 = vld [vmem:[#allocation43_spill] sm:$0xff] }
 0x12d   :  { %v1434_v53 = vmul.f32 0.5, %v1430_v63 }
 0x12e   :  { %v1448_v59 = vmul.f32 0.0, %v1436_v30 }
 0x131   :  { %v1344_v48 = vpop.f32.mrf.mxu2 }
 0x134   :  { %v1357_v52 = vpop.f32.mrf.mxu3 }
 0x135   :  { %v1358_v27 = vadd.f32 %v1357_v52, %v1344_v48 }
 0x137   :  { %v1418_v34 = vadd.f32 %v1358_v27, %v378_v12 }
 0x139   :  { %6653 = vtanh.f32 %v1418_v34  ;;  %v1346_v60 = vpop.f32.mrf.mxu2 }
 0x13c   :  { %v1370_v16 = vpop.f32.mrf.mxu0  ;;  %v1359_v42 = vpop.f32.mrf.mxu3 }
 0x13d   :  { %v1383_v11 = vpop.f32.mrf.mxu1  ;;  %v9074_v42 = vld [vmem:[#allocation66_spill] sm:$0xff] }
 0x13e   :  { %v1384_v2 = vadd.f32 %v1383_v11, %v1370_v16  ;;  %v223_v16 = vperm.slane %v7671_v15, 7  ;;  %v9072_v11 = vld [vmem:[#allocation62_spill] sm:$0xff] }
 0x13f   :  { %v6654_v24 = vpop.eup %6653 }
 0x140   :  { %v1419_v19 = vadd.f32 %v1384_v2, %v392_v58  ;;  %v1450_v4 = vmul.f32 %v6654_v24, %v1434_v53  ;;  %v406_v2 = vadd.f32 %v7697_v10, %v223_v16  ;;  %v9076_v24 = vld [vmem:[#allocation70_spill] sm:$0xff] }
 0x142   :  { %v1439_v14 = vmul.f32 0.5, %v1419_v19  ;;  %v7751_v52 = vadd.f32 %v1450_v4, %v1448_v59  ;;  %v9073_v19 = vld [vmem:[#allocation47_spill] sm:$0xff] }
 0x143   :  { %v9077_v4 = vld [vmem:[#allocation55_spill] sm:$0xff] }
 0x144   :  { %v1372_v44 = vpop.f32.mrf.mxu0  ;;  %6655 = vtanh.f32 %v1439_v14  ;;  %v9075_v14 = vld [vmem:[#allocation51_spill] sm:$0xff] }
 0x145   :  { %v1385_v48 = vpop.f32.mrf.mxu1  ;;  %6657 = vtanh.f32 %v7741_v54 }
 0x146   :  { %v9078_v48 = vld [vmem:[#allocation76_spill] sm:$0xff] }
 0x14a   :  { %v6656_v25 = vpop.eup %6655 }
 0x14b   :  { %v1443_v56 = vadd.f32 1.0, %v6656_v25  ;;  %v6658_v27 = vpop.eup %6657 }
 0x14d   :  { %v1445_v12 = vmul.f32 0.5, %v1443_v56  ;;  %v9079_v56 = vld [vmem:[#allocation58_spill] sm:$0xff] }
 0x14f   :  { %v7754_v9 = vmul.f32 %v6658_v27, %v1445_v12  ;;  %v9080_v12 = vld [vmem:[#allocation80_spill] sm:$0xff] }
 0x151   :  { %v7758_v34 = vpack.c.bf16 %v7754_v9, %v7754_v9  ;;  %v1396_v58 = vpop.f32.mrf.mxu2 }
 0x153   :  { %1483 = vmatmul.bf16.vlgmr.msrb.gmra.mxu0 %v7758_v34  ;;  %1509 = vmatmul.bf16.vlgmr.msrb.gmra.mxu2 %v7758_v34 }
 0x154   :  { %1579 = vmatpush.bf16.msrb.mxu0 %v9071_v57  ;;  %1605 = vmatpush.bf16.msrb.mxu2 %v9072_v11  ;;  %v1409_v63 = vpop.f32.mrf.mxu3 }
 0x155   :  { %v1410_v60 = vadd.f32 %v1409_v63, %v1396_v58  ;;  %v9081_v58 = vld [vmem:[#allocation64_spill] sm:$0xff] }
 0x156   :  { %v9082_v63 = vld [vmem:[#allocation84_spill] sm:$0xff] }
 0x157   :  { %v1420_v30 = vadd.f32 %v1410_v60, %v406_v2  ;;  %v9083_v60 = vld [vmem:[#allocation68_spill] sm:$0xff] }
 0x158   :  { %1580 = vmatpush.bf16.msrb.mxu0 %v9073_v19  ;;  %1606 = vmatpush.bf16.msrb.mxu2 %v9074_v42  ;;  %v9085_v19 = vld [vmem:[#allocation88_spill] sm:$0xff]  ;;  %v9086_v42 = vld [vmem:[#allocation63_spill] sm:$0xff] }
 0x159   :  { %v1440_v53 = vmul.f32 0.5, %v1420_v30  ;;  %v1398_v44 = vpop.f32.mrf.mxu2  ;;  %v9084_v30 = vld [vmem:[#allocation44_spill] sm:$0xff] }
 0x15a   :  { %v9090_v44 = vld [vmem:[#allocation73_spill] sm:$0xff] }
 0x15b   :  { %6659 = vtanh.f32 %v1440_v53  ;;  %v9087_v53 = vld [vmem:[#allocation72_spill] sm:$0xff] }
 0x15c   :  { %1581 = vmatpush.bf16.msrb.mxu0 %v9075_v14  ;;  %1607 = vmatpush.bf16.msrb.mxu2 %v9076_v24  ;;  %v1411_v59 = vpop.f32.mrf.mxu3  ;;  %6661 = vtanh.f32 %v7751_v52  ;;  %v9088_v14 = vld [vmem:[#allocation48_spill] sm:$0xff]  ;;  %v9089_v24 = vld [vmem:[#allocation67_spill] sm:$0xff] }
 0x15d   :  { %v9091_v59 = vld [vmem:[#allocation52_spill] sm:$0xff] }
 0x160   :  { %1582 = vmatpush.bf16.msrb.mxu0 %v9077_v4  ;;  %1608 = vmatpush.bf16.msrb.mxu2 %v9078_v48  ;;  %v9092_v4 = vld [vmem:[#allocation71_spill] sm:$0xff]  ;;  %v9093_v48 = vld [vmem:[#allocation78_spill] sm:$0xff] }
 0x161   :  { %v6660_v10 = vpop.eup %6659 }
 0x162   :  { %v1444_v25 = vadd.f32 1.0, %v6660_v10  ;;  %v6662_v57 = vpop.eup %6661  ;;  %v9094_v10 = vld [vmem:[#allocation56_spill] sm:$0xff] }
 0x163   :  { %1535 = vmatmul.bf16.vlgmr.msra.gmra.mxu0 %v7758_v34  ;;  %1561 = vmatmul.bf16.vlgmr.msra.gmra.mxu2 %v7758_v34 }
 0x164   :  { %1583 = vmatpush.bf16.msrb.mxu0 %v9079_v56  ;;  %1609 = vmatpush.bf16.msrb.mxu2 %v9080_v12  ;;  %v1446_v27 = vmul.f32 0.5, %v1444_v25  ;;  %v9096_v25 = vld [vmem:[#allocation82_spill] sm:$0xff]  ;;  %v9098_v56 = vld [vmem:[#allocation81_spill] sm:$0xff] }
 0x165   :  { %v9099_v12 = vld [vmem:[#allocation86_spill] sm:$0xff] }
 0x166   :  { %v7779_v11 = vmul.f32 %v6662_v57, %v1446_v27  ;;  %v9101_v27 = vld [vmem:[#allocation85_spill] sm:$0xff] }
 0x167   :  { %v9103_v57 = vld [vmem:[#allocation89_spill] sm:$0xff] }
 0x168   :  { %1584 = vmatpush.bf16.msrb.mxu0 %v9081_v58  ;;  %1610 = vmatpush.bf16.msrb.mxu2 %v9082_v63  ;;  %v7785_v2 = vpack.c.bf16 %v7779_v11, %v7779_v11  ;;  %v9104_v58 = vld [vmem:[#allocation93_spill] sm:$0xff]  ;;  %v9105_v63 = vld [vmem:[#allocation74_spill] sm:$0xff] }
 0x16a   :  { %1496 = vmatmul.bf16.vlgmr.msrb.gmra.mxu1 %v7785_v2  ;;  %1522 = vmatmul.bf16.vlgmr.msrb.gmra.mxu3 %v7785_v2 }
 0x16b   :  { %1592 = vmatpush.bf16.msrb.mxu1 %v9084_v30  ;;  %1618 = vmatpush.bf16.msrb.mxu3 %v9086_v42  ;;  %v6417_v30 = vld [vmem:[#allocation8 + $0x1c4] sm:$0xf] }
 0x16c   :  { %1585 = vmatpush.bf16.msrb.mxu0 %v9083_v60  ;;  %1611 = vmatpush.bf16.msrb.mxu2 %v9085_v19  ;;  %v9106_v60 = vld [vmem:[#allocation91_spill] sm:$0xff]  ;;  %v5424_v19 = vld [vmem:[#allocation8 + $0x1e0] sm:$0xf0] }
 0x16d   :  { %v6409_v42 = vld [vmem:[#allocation8 + $0x184] sm:$0xf] }
 0x16f   :  { %1593 = vmatpush.bf16.msrb.mxu1 %v9088_v14  ;;  %1619 = vmatpush.bf16.msrb.mxu3 %v9089_v24  ;;  %v5392_v14 = vld [vmem:[#allocation8 + $0x1a0] sm:$0xf0] }
 0x170   :  { %1586 = vmatpush.bf16.msrb.mxu0 %v9087_v53  ;;  %1612 = vmatpush.bf16.msrb.mxu2 %v7542_v21  ;;  %v9095_v21 = vld [vmem:[#allocation77_spill] sm:$0xff]  ;;  %v5395_v24 = vor.u32 %v6409_v42, %v5392_v14  ;;  %v5616_v42 = vld [vmem:[#allocation8 + $0x360] sm:$0xf0] }
 0x173   :  { %1587 = vmatmul.bf16.vlgmr.msrb.gmra.mxu0 %v7758_v34  ;;  %1594 = vmatpush.bf16.msrb.mxu1 %v9091_v59  ;;  %v6485_v59 = vld [vmem:[#allocation8 + $0x3dc] sm:$0xf0] }
 0x174   :  { %1631 = vmatpush.bf16.msra.mxu0 %v9090_v44  ;;  %1657 = vmatpush.bf16.msra.mxu2 %v7547_v8  ;;  %v9097_v8 = vld [vmem:[#allocation59_spill] sm:$0xff]  ;;  %v5678_v44 = vld [vmem:[#allocation8 + $0x3c0] sm:$0xf] }
 0x175   :  { %1613 = vmatmul.bf16.vlgmr.msrb.gmra.mxu2 %v7758_v34  ;;  %1620 = vmatpush.bf16.msrb.mxu3 %v9092_v4  ;;  %v6481_v4 = vld [vmem:[#allocation8 + $0x3c4] sm:$0xf] }
 0x177   :  { %1595 = vmatpush.bf16.msrb.mxu1 %v9094_v10  ;;  %v5680_v10 = vld [vmem:[#allocation8 + $0x3e0] sm:$0xf0] }
 0x178   :  { %1632 = vmatpush.bf16.msra.mxu0 %v9093_v48  ;;  %1658 = vmatpush.bf16.msra.mxu2 %v7560_v35  ;;  %v9100_v35 = vld [vmem:[#allocation65_spill] sm:$0xff]  ;;  %v5679_v48 = vor.u32 %v6485_v59, %v5678_v44  ;;  %v5294_v44 = vld [vmem:[#allocation8 + $0xc0] sm:$0xf] }
 0x179   :  { %1621 = vmatpush.bf16.msrb.mxu3 %v9095_v21  ;;  %v6389_v59 = vld [vmem:[#allocation8 + $0xdc] sm:$0xf0] }
 0x17a   :  { %1548 = vmatmul.bf16.vlgmr.msra.gmra.mxu1 %v7785_v2  ;;  %1574 = vmatmul.bf16.vlgmr.msra.gmra.mxu3 %v7785_v2 }
 0x17b   :  { %1596 = vmatpush.bf16.msrb.mxu1 %v9097_v8  ;;  %v5683_v8 = vor.u32 %v6481_v4, %v5680_v10  ;;  %v6385_v4 = vld [vmem:[#allocation8 + $0xc4] sm:$0xf]  ;;  %v5295_v10 = vor.u32 %v6389_v59, %v5294_v44 }
 0x17c   :  { %1633 = vmatpush.bf16.msra.mxu0 %v9096_v25  ;;  %1659 = vmatpush.bf16.msra.mxu2 %v7574_v13  ;;  %v9102_v13 = vld [vmem:[#allocation69_spill] sm:$0xff]  ;;  %v5520_v44 = vld [vmem:[#allocation8 + $0x2a0] sm:$0xf0] }
 0x17d   :  { %1622 = vmatpush.bf16.msrb.mxu3 %v9098_v56  ;;  %v5358_v56 = vld [vmem:[#allocation8 + $0x140] sm:$0xf] }
 0x17f   :  { %1597 = vmatpush.bf16.msrb.mxu1 %v9100_v35  ;;  %v6401_v35 = vld [vmem:[#allocation8 + $0x144] sm:$0xf] }
 0x180   :  { %1634 = vmatpush.bf16.msra.mxu0 %v9099_v12  ;;  %1660 = vmatpush.bf16.msra.mxu2 %v7586_v22  ;;  %v9107_v22 = vld [vmem:[#allocation75_spill] sm:$0xff]  ;;  %v6405_v12 = vld [vmem:[#allocation8 + $0x15c] sm:$0xf0] }
 0x181   :  { %1623 = vmatpush.bf16.msrb.mxu3 %v9101_v27  ;;  %v310_v27 = vadd.f32 %v7643_v55, %v216_v20  ;;  %v5328_v20 = vld [vmem:[#allocation8 + $0x120] sm:$0xf0] }
 0x183   :  { %1598 = vmatpush.bf16.msrb.mxu1 %v9102_v13 }
 0x184   :  { %1635 = vmatpush.bf16.msra.mxu0 %v7536_v40  ;;  %1661 = vmatpush.bf16.msra.mxu2 %v7596_v36  ;;  %v9108_v40 = vld [vmem:[#allocation92_spill] sm:$0xff]  ;;  %v9109_v36 = vld [vmem:[#allocation79_spill] sm:$0xff] }
 0x185   :  { %1624 = vmatpush.bf16.msrb.mxu3 %v9103_v57  ;;  %v5359_v57 = vor.u32 %v6405_v12, %v5358_v56  ;;  %v5584_v56 = vld [vmem:[#allocation8 + $0x320] sm:$0xf0] }
 0x187   :  { %1599 = vmatpush.bf16.msrb.mxu1 %v9105_v63 }
 0x188   :  { %1636 = vmatpush.bf16.msra.mxu0 %v9104_v58  ;;  %1662 = vmatpush.bf16.msra.mxu2 %v7605_v47  ;;  %v9111_v47 = vld [vmem:[#allocation87_spill] sm:$0xff]  ;;  %v5360_v58 = vld [vmem:[#allocation8 + $0x160] sm:$0xf0] }
 0x189   :  { %1625 = vmatpush.bf16.msrb.mxu3 %v9106_v60  ;;  %v5363_v63 = vor.u32 %v6401_v35, %v5360_v58  ;;  %v5646_v60 = vld [vmem:[#allocation8 + $0x380] sm:$0xf]  ;;  %v5264_v58 = vld [vmem:[#allocation8 + $0xa0] sm:$0xf0] }
 0x18a   :  { %1600 = vmatmul.bf16.vlgmr.msrb.gmra.mxu1 %v7785_v2  ;;  %v5262_v35 = vld [vmem:[#allocation8 + $0x80] sm:$0xf] }
 0x18b   :  { %1644 = vmatpush.bf16.msra.mxu1 %v9107_v22  ;;  %v6477_v22 = vld [vmem:[#allocation8 + $0x39c] sm:$0xf0] }
 0x18c   :  { %1637 = vmatpush.bf16.msra.mxu0 %v7566_v50  ;;  %1663 = vmatpush.bf16.msra.mxu2 %v7613_v49  ;;  %v9110_v50 = vld [vmem:[#allocation83_spill] sm:$0xff]  ;;  %v9112_v49 = vld [vmem:[#allocation90_spill] sm:$0xff] }
 0x18d   :  { %1670 = vmatpush.bf16.msra.mxu3 %v9108_v40  ;;  %v6473_v40 = vld [vmem:[#allocation8 + $0x384] sm:$0xf] }
 0x18e   :  { %1626 = vmatmul.bf16.vlgmr.msrb.gmra.mxu3 %v7785_v2 }
 0x18f   :  { %1645 = vmatpush.bf16.msra.mxu1 %v9109_v36 }
 0x190   :  { %1638 = vmatpush.bf16.msra.mxu0 %v7580_v41  ;;  %1664 = vmatpush.bf16.msra.mxu2 %v7621_v28  ;;  %v9113_v41 = vld [vmem:[#allocation94_spill] sm:$0xff] }
 0x191   :  { %1671 = vmatpush.bf16.msra.mxu3 %v7564_v62 }
 0x193   :  { %1639 = vmatmul.bf16.vlgmr.msra.gmra.mxu0 %v7758_v34  ;;  %1665 = vmatmul.bf16.vlgmr.msra.gmra.mxu2 %v7758_v34  ;;  %v5422_v34 = vld [vmem:[#allocation8 + $0x1c0] sm:$0xf] }
 0x194   :  { %1646 = vmatpush.bf16.msra.mxu1 %v9110_v50  ;;  %v5647_v50 = vor.u32 %v6477_v22, %v5646_v60  ;;  %v5550_v22 = vld [vmem:[#allocation8 + $0x2c0] sm:$0xf] }
 0x195   :  { %1672 = vmatpush.bf16.msra.mxu3 %v7578_v38 }
 0x198   :  { %1647 = vmatpush.bf16.msra.mxu1 %v9111_v47  ;;  %v5648_v47 = vld [vmem:[#allocation8 + $0x3a0] sm:$0xf0] }
 0x199   :  { %1673 = vmatpush.bf16.msra.mxu3 %v7590_v31 }
 0x19c   :  { %1648 = vmatpush.bf16.msra.mxu1 %v9112_v49  ;;  %v5651_v49 = vor.u32 %v6473_v40, %v5648_v47  ;;  %v6453_v40 = vld [vmem:[#allocation8 + $0x2dc] sm:$0xf0] }
 0x19d   :  { %1674 = vmatpush.bf16.msra.mxu3 %v7599_v46  ;;  %v5551_v47 = vor.u32 %v6453_v40, %v5550_v22  ;;  %v6433_v22 = vld [vmem:[#allocation8 + $0x244] sm:$0xf] }
 0x19e   :  { %v5488_v40 = vld [vmem:[#allocation8 + $0x260] sm:$0xf0] }
 0x1a0   :  { %1649 = vmatpush.bf16.msra.mxu1 %v9113_v41  ;;  %v5326_v41 = vld [vmem:[#allocation8 + $0x100] sm:$0xf] }
 0x1a1   :  { %1675 = vmatpush.bf16.msra.mxu3 %v7608_v61  ;;  %v6421_v61 = vld [vmem:[#allocation8 + $0x1dc] sm:$0xf0] }
 0x1a4   :  { %1650 = vmatpush.bf16.msra.mxu1 %v7571_v45  ;;  %v5423_v45 = vor.u32 %v6421_v61, %v5422_v34 }
 0x1a5   :  { %1676 = vmatpush.bf16.msra.mxu3 %v7616_v26  ;;  %v5427_v26 = vor.u32 %v6417_v30, %v5424_v19  ;;  %v5614_v30 = vld [vmem:[#allocation8 + $0x340] sm:$0xf]  ;;  %v6465_v19 = vld [vmem:[#allocation8 + $0x344] sm:$0xf] }
 0x1a6   :  { %2524 = vmatpush.bf16.msrb.mxu0 %v5423_v45  ;;  %v6469_v45 = vld [vmem:[#allocation8 + $0x35c] sm:$0xf0] }
 0x1a7   :  { %2552 = vmatpush.bf16.msrb.mxu2 %v5427_v26  ;;  %v324_v26 = vadd.f32 %v7647_v0, %v217_v33  ;;  %v6461_v0 = vld [vmem:[#allocation8 + $0x31c] sm:$0xf0]  ;;  %v6457_v33 = vld [vmem:[#allocation8 + $0x304] sm:$0xf] }
 0x1a8   :  { %1651 = vmatpush.bf16.msra.mxu1 %v7583_v17  ;;  %v5390_v17 = vld [vmem:[#allocation8 + $0x180] sm:$0xf]  ;;  %v5587_v12 = vor.u32 %v6457_v33, %v5584_v56  ;;  %v6422_v56 = vld [vmem:[#allocation8 + $0x1e4] sm:$0xf0] }
 0x1a9   :  { %1677 = vmatpush.bf16.msra.mxu3 %v7624_v37  ;;  %v6413_v37 = vld [vmem:[#allocation8 + $0x19c] sm:$0xf0] }
 0x1aa   :  { %v5391_v53 = vor.u32 %v6413_v37, %v5390_v17  ;;  %v5615_v37 = vor.u32 %v6469_v45, %v5614_v30  ;;  %v6369_v45 = vld [vmem:[#allocation8 + $0x44] sm:$0xf] }
 0x1ab   :  { %1652 = vmatmul.bf16.vlgmr.msra.gmra.mxu1 %v7785_v2  ;;  %2553 = vmatpush.bf16.msrb.mxu2 %v5395_v24  ;;  %v5619_v24 = vor.u32 %v6465_v19, %v5616_v42  ;;  %v5232_v19 = vld [vmem:[#allocation8 + $0x60] sm:$0xf0] }
 0x1ac   :  { %1678 = vmatmul.bf16.vlgmr.msra.gmra.mxu3 %v7785_v2  ;;  %2525 = vmatpush.bf16.msrb.mxu0 %v5391_v53  ;;  %v6441_v42 = vld [vmem:[#allocation8 + $0x284] sm:$0xf] }
 0x1ad   :  { %2538 = vmatpush.bf16.msrb.mxu1 %v5679_v48  ;;  %2566 = vmatpush.bf16.msrb.mxu3 %v5683_v8  ;;  %v5582_v8 = vld [vmem:[#allocation8 + $0x300] sm:$0xf]  ;;  %v5523_v59 = vor.u32 %v6441_v42, %v5520_v44  ;;  %v6406_v44 = vld [vmem:[#allocation8 + $0x164] sm:$0xf0] }
 0x1af   :  { %2554 = vmatpush.bf16.msrb.mxu2 %v5363_v63 }
 0x1b0   :  { %2526 = vmatpush.bf16.msrb.mxu0 %v5359_v57 }
 0x1b1   :  { %2539 = vmatpush.bf16.msrb.mxu1 %v5647_v50  ;;  %2567 = vmatpush.bf16.msrb.mxu3 %v5651_v49  ;;  %v6449_v49 = vld [vmem:[#allocation8 + $0x2c4] sm:$0xf] }
 0x1b5   :  { %2540 = vmatpush.bf16.msrb.mxu1 %v5615_v37  ;;  %2568 = vmatpush.bf16.msrb.mxu3 %v5619_v24  ;;  %v6445_v37 = vld [vmem:[#allocation8 + $0x29c] sm:$0xf0] }
 0x1b9   :  { %2569 = vmatpush.bf16.msrb.mxu3 %v5587_v12  ;;  %v352_v12 = vadd.f32 %v7682_v39, %v219_v51  ;;  %v6414_v39 = vld [vmem:[#allocation8 + $0x1a4] sm:$0xf0]  ;;  %v6410_v51 = vld [vmem:[#allocation8 + $0x18c] sm:$0xf] }
 0x1d0   :  { %v1484_v62 = vpop.f32.mrf.mxu0 }
 0x1d6   :  { %v1510_v38 = vpop.f32.mrf.mxu2 }
 0x1d8   :  { %v1486_v31 = vpop.f32.mrf.mxu0 }
 0x1d9   :  { %v6397_v31 = vld [vmem:[#allocation8 + $0x11c] sm:$0xf0] }
 0x1da   :  { %v5327_v55 = vor.u32 %v6397_v31, %v5326_v41  ;;  %v5552_v41 = vld [vmem:[#allocation8 + $0x2e0] sm:$0xf0] }
 0x1dc   :  { %2527 = vmatpush.bf16.msrb.mxu0 %v5327_v55  ;;  %v5555_v55 = vor.u32 %v6449_v49, %v5552_v41  ;;  %v5491_v41 = vor.u32 %v6433_v22, %v5488_v40  ;;  %v5622_v40 = vld [vmem:[#allocation8 + $0x348] sm:$0xf] }
 0x1de   :  { %v1512_v46 = vpop.f32.mrf.mxu2  ;;  %2570 = vmatpush.bf16.msrb.mxu3 %v5555_v55  ;;  %v5454_v55 = vld [vmem:[#allocation8 + $0x200] sm:$0xf] }
 0x1df   :  { %v6393_v46 = vld [vmem:[#allocation8 + $0x104] sm:$0xf] }
 0x1e0   :  { %v7851_v28 = vpop.f32.mrf.mxu0  ;;  %v5331_v61 = vor.u32 %v6393_v46, %v5328_v20  ;;  %2528 = vmatpush.bf16.msrb.mxu0 %v5295_v10  ;;  %v5230_v20 = vld [vmem:[#allocation8 + $0x40] sm:$0xf] }
 0x1e1   :  { %v6365_v10 = vld [vmem:[#allocation8 + $0x1c] sm:$0xf0] }
 0x1e2   :  { %2555 = vmatpush.bf16.msrb.mxu2 %v5331_v61  ;;  %2571 = vmatpush.bf16.msrb.mxu3 %v5523_v59 }
 0x1e6   :  { %v7853_v2 = vpop.f32.mrf.mxu2  ;;  %2572 = vmatpush.bf16.msrb.mxu3 %v5491_v41 }
 0x1e7   :  { %v1497_v21 = vpop.f32.mrf.mxu1 }
 0x1e8   :  { %v1538_v25 = vpop.f32.mrf.mxu0  ;;  %v1498_v13 = vadd.f32 %v1497_v21, %v1484_v62  ;;  %v5296_v21 = vld [vmem:[#allocation8 + $0xe0] sm:$0xf0] }
 0x1e9   :  { %v5299_v25 = vor.u32 %v6385_v4, %v5296_v21  ;;  %v5198_v4 = vld [vmem:[#allocation8] sm:$0xf]  ;;  %v5200_v21 = vld [vmem:[#allocation8 + $0x20] sm:$0xf0] }
 0x1ea   :  { %v7858_v36 = vadd.f32 %v1498_v13, %v310_v27  ;;  %v6381_v27 = vld [vmem:[#allocation8 + $0x9c] sm:$0xf0]  ;;  %v6377_v13 = vld [vmem:[#allocation8 + $0x84] sm:$0xf] }
 0x1eb   :  { %2556 = vmatpush.bf16.msrb.mxu2 %v5299_v25  ;;  %v5263_v57 = vor.u32 %v6381_v27, %v5262_v35  ;;  %v5267_v60 = vor.u32 %v6377_v13, %v5264_v58  ;;  %v6418_v13 = vld [vmem:[#allocation8 + $0x1cc] sm:$0xf]  ;;  %v5486_v58 = vld [vmem:[#allocation8 + $0x240] sm:$0xf] }
 0x1ed   :  { %v1523_v62 = vpop.f32.mrf.mxu3  ;;  %2529 = vmatpush.bf16.msrb.mxu0 %v5263_v57  ;;  %v5432_v57 = vld [vmem:[#allocation8 + $0x1e8] sm:$0xf0] }
 0x1ee   :  { %v1564_v34 = vpop.f32.mrf.mxu2  ;;  %v1524_v17 = vadd.f32 %v1523_v62, %v1510_v38  ;;  %v5583_v38 = vor.u32 %v6461_v0, %v5582_v8  ;;  %v6373_v62 = vld [vmem:[#allocation8 + $0x5c] sm:$0xf0] }
 0x1ef   :  { %v1499_v53 = vpop.f32.mrf.mxu1  ;;  %2557 = vmatpush.bf16.msrb.mxu2 %v5267_v60  ;;  %v338_v34 = vadd.f32 %v7679_v29, %v218_v43  ;;  %v5231_v30 = vor.u32 %v6373_v62, %v5230_v20  ;;  %v1691_v29 = vmul.f32 0.5, %v7858_v36  ;;  %v5199_v43 = vor.u32 %v6365_v10, %v5198_v4  ;;  %v6437_v60 = vld [vmem:[#allocation8 + $0x25c] sm:$0xf0] }
 0x1f0   :  { %v7863_v14 = vpop.f32.mrf.mxu0  ;;  %v1684_v48 = vadd.f32 %v1524_v17, %v324_v26  ;;  %2541 = vmatpush.bf16.msrb.mxu1 %v5583_v38  ;;  %v5235_v26 = vor.u32 %v6369_v45, %v5232_v19  ;;  %v5518_v17 = vld [vmem:[#allocation8 + $0x280] sm:$0xf]  ;;  %v5430_v38 = vld [vmem:[#allocation8 + $0x1c8] sm:$0xf]  ;;  %v5487_v49 = vor.u32 %v6437_v60, %v5486_v58  ;;  %v5456_v45 = vld [vmem:[#allocation8 + $0x220] sm:$0xf0] }
 0x1f1   :  { %2530 = vmatpush.bf16.msrb.mxu0 %v5231_v30  ;;  %v5519_v24 = vor.u32 %v6445_v37, %v5518_v17  ;;  %v5431_v36 = vor.u32 %v6422_v56, %v5430_v38  ;;  %6663 = vtanh.f32 %v1691_v29  ;;  %v6429_v20 = vld [vmem:[#allocation8 + $0x21c] sm:$0xf0]  ;;  %v6425_v30 = vld [vmem:[#allocation8 + $0x204] sm:$0xf]  ;;  %v6486_v17 = vld [vmem:[#allocation8 + $0x3e4] sm:$0xf0] }
 0x1f2   :  { %v7872_v25 = vmul.f32 0.5, %v1684_v48  ;;  %v5459_v19 = vor.u32 %v6425_v30, %v5456_v45  ;;  %v6482_v37 = vld [vmem:[#allocation8 + $0x3cc] sm:$0xf]  ;;  %v6398_v58 = vld [vmem:[#allocation8 + $0x124] sm:$0xf0] }
 0x1f3   :  { %2558 = vmatpush.bf16.msrb.mxu2 %v5235_v26  ;;  %v5686_v26 = vld [vmem:[#allocation8 + $0x3c8] sm:$0xf]  ;;  %v6402_v29 = vld [vmem:[#allocation8 + $0x14c] sm:$0xf] }
 0x1f4   :  { %2542 = vmatpush.bf16.msrb.mxu1 %v5551_v47  ;;  %v5687_v42 = vor.u32 %v6486_v17, %v5686_v26  ;;  %2573 = vmatpush.bf16.msrb.mxu3 %v5459_v19  ;;  %v5590_v19 = vld [vmem:[#allocation8 + $0x308] sm:$0xf]  ;;  %v6458_v17 = vld [vmem:[#allocation8 + $0x30c] sm:$0xf] }
 0x1f5   :  { %v1525_v63 = vpop.f32.mrf.mxu3  ;;  %2531 = vmatpush.bf16.msrb.mxu0 %v5199_v43  ;;  %v5368_v43 = vld [vmem:[#allocation8 + $0x168] sm:$0xf0]  ;;  %v6462_v26 = vld [vmem:[#allocation8 + $0x324] sm:$0xf0] }
 0x1f6   :  { %v5435_v63 = vor.u32 %v6418_v13, %v5432_v57  ;;  %v5334_v57 = vld [vmem:[#allocation8 + $0x108] sm:$0xf] }
 0x1f7   :  { %v1549_v31 = vpop.f32.mrf.mxu1 }
 0x1f8   :  { %v7865_v50 = vpop.f32.mrf.mxu2  ;;  %v1590_v46 = vpop.f32.mrf.mxu0  ;;  %v1550_v61 = vadd.f32 %v1549_v31, %v7851_v28  ;;  %2543 = vmatpush.bf16.msrb.mxu1 %v5519_v24  ;;  %v6361_v28 = vld [vmem:[#allocation8 + $0x4] sm:$0xf]  ;;  %v5398_v31 = vld [vmem:[#allocation8 + $0x188] sm:$0xf] }
 0x1f9   :  { %v5203_v33 = vor.u32 %v6361_v28, %v5200_v21  ;;  %2580 = vmatpush.bf16.msra.mxu0 %v5431_v36  ;;  %v5400_v46 = vld [vmem:[#allocation8 + $0x1a8] sm:$0xf0]  ;;  %v5366_v24 = vld [vmem:[#allocation8 + $0x148] sm:$0xf]  ;;  %v5371_v28 = vor.u32 %v6402_v29, %v5368_v43 }
 0x1fa   :  { %v1685_v53 = vadd.f32 %v1550_v61, %v338_v34  ;;  %v5403_v34 = vor.u32 %v6410_v51, %v5400_v46  ;;  %v5455_v61 = vor.u32 %v6429_v20, %v5454_v55  ;;  %v5367_v10 = vor.u32 %v6406_v44, %v5366_v24  ;;  %v5654_v21 = vld [vmem:[#allocation8 + $0x388] sm:$0xf]  ;;  %v6378_v43 = vld [vmem:[#allocation8 + $0x8c] sm:$0xf] }
 0x1fb   :  { %2559 = vmatpush.bf16.msrb.mxu2 %v5203_v33  ;;  %v6664_v33 = vpop.eup %6663  ;;  %v6390_v51 = vld [vmem:[#allocation8 + $0xe4] sm:$0xf0]  ;;  %v5591_v44 = vor.u32 %v6462_v26, %v5590_v19 }
 0x1fc   :  { %v1693_v8 = vmul.f32 0.5, %v1685_v53  ;;  %2544 = vmatpush.bf16.msrb.mxu1 %v5487_v49  ;;  %v5688_v53 = vld [vmem:[#allocation8 + $0x3e8] sm:$0xf0]  ;;  %v1699_v41 = vadd.f32 1.0, %v6664_v33  ;;  %v6382_v29 = vld [vmem:[#allocation8 + $0xa4] sm:$0xf0] }
 0x1fd   :  { %v1575_v0 = vpop.f32.mrf.mxu3  ;;  %v5691_v4 = vor.u32 %v6482_v37, %v5688_v53  ;;  %v6466_v49 = vld [vmem:[#allocation8 + $0x34c] sm:$0xf]  ;;  %v5494_v26 = vld [vmem:[#allocation8 + $0x248] sm:$0xf] }
 0x1fe   :  { %v1576_v35 = vadd.f32 %v1575_v0, %v7853_v2  ;;  %v5399_v2 = vor.u32 %v6414_v39, %v5398_v31  ;;  %6665 = vtanh.f32 %v1693_v8  ;;  %v6478_v8 = vld [vmem:[#allocation8 + $0x3a4] sm:$0xf0]  ;;  %v6474_v0 = vld [vmem:[#allocation8 + $0x38c] sm:$0xf]  ;;  %v1703_v37 = vmul.f32 0.5, %v1699_v41 }
 0x1ff   :  { %v1551_v48 = vpop.f32.mrf.mxu1  ;;  %2608 = vmatpush.bf16.msra.mxu2 %v5435_v63  ;;  %6667 = vtanh.f32 %v7872_v25  ;;  %2622 = vmatpush.bf16.msra.mxu3 %v5691_v4  ;;  %v5655_v56 = vor.u32 %v6478_v8, %v5654_v21  ;;  %v5335_v25 = vor.u32 %v6398_v58, %v5334_v57  ;;  %v5336_v63 = vld [vmem:[#allocation8 + $0x128] sm:$0xf0]  ;;  %v5302_v39 = vld [vmem:[#allocation8 + $0xc8] sm:$0xf] }
 0x200   :  { %v1616_v27 = vpop.f32.mrf.mxu2  ;;  %v1686_v47 = vadd.f32 %v1576_v35, %v352_v12  ;;  %2581 = vmatpush.bf16.msra.mxu0 %v5399_v2  ;;  %2545 = vmatpush.bf16.msrb.mxu1 %v5455_v61  ;;  %v5656_v12 = vld [vmem:[#allocation8 + $0x3a8] sm:$0xf0]  ;;  %v5303_v20 = vor.u32 %v6390_v51, %v5302_v39  ;;  %v380_v61 = vadd.f32 %v7657_v6, %v221_v5  ;;  %v5238_v58 = vld [vmem:[#allocation8 + $0x48] sm:$0xf] }
 0x201   :  { %v366_v27 = vadd.f32 %v7655_v3, %v220_v18  ;;  %v5659_v13 = vor.u32 %v6474_v0, %v5656_v12  ;;  %v6394_v48 = vld [vmem:[#allocation8 + $0x10c] sm:$0xf]  ;;  %v5526_v41 = vld [vmem:[#allocation8 + $0x288] sm:$0xf] }
 0x202   :  { %v1694_v62 = vmul.f32 0.5, %v1686_v47  ;;  %v5339_v22 = vor.u32 %v6394_v48, %v5336_v63  ;;  %v6470_v47 = vld [vmem:[#allocation8 + $0x364] sm:$0xf0]  ;;  %v5624_v18 = vld [vmem:[#allocation8 + $0x368] sm:$0xf0] }
 0x203   :  { %2609 = vmatpush.bf16.msra.mxu2 %v5403_v34  ;;  %2623 = vmatpush.bf16.msra.mxu3 %v5659_v13  ;;  %v5623_v3 = vor.u32 %v6470_v47, %v5622_v40  ;;  %v6386_v2 = vld [vmem:[#allocation8 + $0xcc] sm:$0xf]  ;;  %v6374_v48 = vld [vmem:[#allocation8 + $0x64] sm:$0xf0] }
 0x204   :  { %2594 = vmatpush.bf16.msra.mxu1 %v5687_v42  ;;  %v6666_v35 = vpop.eup %6665  ;;  %6669 = vtanh.f32 %v1694_v62  ;;  %2582 = vmatpush.bf16.msra.mxu0 %v5367_v10  ;;  %v5304_v62 = vld [vmem:[#allocation8 + $0xe8] sm:$0xf0]  ;;  %v5270_v10 = vld [vmem:[#allocation8 + $0x88] sm:$0xf]  ;;  %v5239_v40 = vor.u32 %v6374_v48, %v5238_v58  ;;  %v6419_v58 = vld [vmem:[#allocation8 + $0x1d4] sm:$0xf] }
 0x205   :  { %v1577_v59 = vpop.f32.mrf.mxu3  ;;  %v1701_v31 = vadd.f32 1.0, %v6666_v35  ;;  %v6668_v46 = vpop.eup %6667  ;;  %v5307_v45 = vor.u32 %v6386_v2, %v5304_v62  ;;  %v5271_v21 = vor.u32 %v6382_v29, %v5270_v10  ;;  %v5272_v8 = vld [vmem:[#allocation8 + $0xa8] sm:$0xf0]  ;;  %v5206_v2 = vld [vmem:[#allocation8 + $0x8] sm:$0xf] }
 0x206   :  { %v5592_v59 = vld [vmem:[#allocation8 + $0x328] sm:$0xf0]  ;;  %v1700_v6 = vadd.f32 1.0, %v6668_v46  ;;  %v5275_v33 = vor.u32 %v6378_v43, %v5272_v8  ;;  %v6366_v46 = vld [vmem:[#allocation8 + $0x24] sm:$0xf0] }
 0x207   :  { %v1601_v38 = vpop.f32.mrf.mxu1  ;;  %2610 = vmatpush.bf16.msra.mxu2 %v5371_v28  ;;  %v1705_v42 = vmul.f32 0.5, %v1701_v31  ;;  %v5595_v4 = vor.u32 %v6458_v17, %v5592_v59  ;;  %v5560_v13 = vld [vmem:[#allocation8 + $0x2e8] sm:$0xf0]  ;;  %v6446_v31 = vld [vmem:[#allocation8 + $0x2a4] sm:$0xf0] }
 0x208   :  { %v1602_v36 = vadd.f32 %v1601_v38, %v7863_v14  ;;  %2595 = vmatpush.bf16.msra.mxu1 %v5655_v56  ;;  %2583 = vmatpush.bf16.msra.mxu0 %v5335_v25  ;;  %v5627_v14 = vor.u32 %v6466_v49, %v5624_v18  ;;  %v5558_v38 = vld [vmem:[#allocation8 + $0x2c8] sm:$0xf]  ;;  %v6450_v56 = vld [vmem:[#allocation8 + $0x2cc] sm:$0xf]  ;;  %v1704_v18 = vmul.f32 0.5, %v1700_v6 }
 0x209   :  { %v1717_v12 = vmul.f32 %v1705_v42, %v7741_v54  ;;  %v5563_v57 = vor.u32 %v6450_v56, %v5560_v13  ;;  %v6370_v25 = vld [vmem:[#allocation8 + $0x4c] sm:$0xf]  ;;  %v6430_v10 = vld [vmem:[#allocation8 + $0x224] sm:$0xf0]  ;;  %v5440_v48 = vld [vmem:[#allocation8 + $0x1f0] sm:$0xf0] }
 0x20a   :  { %v1687_v60 = vadd.f32 %v1602_v36, %v366_v27  ;;  %v6670_v34 = vpop.eup %6669  ;;  %2624 = vmatpush.bf16.msra.mxu3 %v5627_v14  ;;  %v5240_v47 = vld [vmem:[#allocation8 + $0x68] sm:$0xf0]  ;;  %v5527_v14 = vor.u32 %v6446_v31, %v5526_v41  ;;  %v6487_v41 = vld [vmem:[#allocation8 + $0x3ec] sm:$0xf0]  ;;  %v6483_v31 = vld [vmem:[#allocation8 + $0x3d4] sm:$0xf] }
 0x20b   :  { %2611 = vmatpush.bf16.msra.mxu2 %v5339_v22  ;;  %v1702_v5 = vadd.f32 1.0, %v6670_v34  ;;  %v5243_v49 = vor.u32 %v6370_v25, %v5240_v47  ;;  %v5528_v39 = vld [vmem:[#allocation8 + $0x2a8] sm:$0xf0]  ;;  %v5207_v34 = vor.u32 %v6366_v46, %v5206_v2  ;;  %v5408_v47 = vld [vmem:[#allocation8 + $0x1b0] sm:$0xf0] }
 0x20c   :  { %6671 = vtanh.f32 %v1687_v60  ;;  %2596 = vmatpush.bf16.msra.mxu1 %v5623_v3  ;;  %2584 = vmatpush.bf16.msra.mxu0 %v5303_v20  ;;  %v6442_v3 = vld [vmem:[#allocation8 + $0x28c] sm:$0xf]  ;;  %v6407_v2 = vld [vmem:[#allocation8 + $0x16c] sm:$0xf0]  ;;  %v6403_v46 = vld [vmem:[#allocation8 + $0x154] sm:$0xf] }
 0x20d   :  { %v1706_v63 = vmul.f32 0.5, %v1702_v5  ;;  %v5531_v51 = vor.u32 %v6442_v3, %v5528_v39  ;;  %v6362_v20 = vld [vmem:[#allocation8 + $0xc] sm:$0xf]  ;;  %v5696_v39 = vld [vmem:[#allocation8 + $0x3f0] sm:$0xf0] }
 0x20e   :  { %2625 = vmatpush.bf16.msra.mxu3 %v5595_v4  ;;  %v6434_v42 = vld [vmem:[#allocation8 + $0x24c] sm:$0xf]  ;;  %v5462_v4 = vld [vmem:[#allocation8 + $0x208] sm:$0xf] }
 0x20f   :  { %v1603_v24 = vpop.f32.mrf.mxu1  ;;  %2612 = vmatpush.bf16.msra.mxu2 %v5307_v45  ;;  %v5463_v29 = vor.u32 %v6430_v10, %v5462_v4  ;;  %v5464_v43 = vld [vmem:[#allocation8 + $0x228] sm:$0xf0] }
 0x210   :  { %v7883_v55 = vpop.f32.mrf.mxu0  ;;  %2597 = vmatpush.bf16.msra.mxu1 %v5591_v44  ;;  %2585 = vmatpush.bf16.msra.mxu0 %v5271_v21 }
 0x211   :  { %v1627_v30 = vpop.f32.mrf.mxu3 }
 0x212   :  { %v1628_v53 = vadd.f32 %v1627_v30, %v7865_v50  ;;  %v6672_v0 = vpop.eup %6671  ;;  %v6454_v50 = vld [vmem:[#allocation8 + $0x2e4] sm:$0xf0]  ;;  %2626 = vmatpush.bf16.msra.mxu3 %v5563_v57  ;;  %v1718_v30 = vmul.f32 %v1706_v63, %v7751_v52  ;;  %v6426_v52 = vld [vmem:[#allocation8 + $0x20c] sm:$0xf] }
 0x213   :  { %v1719_v35 = vmul.f32 %v6672_v0, %v1703_v37  ;;  %v5559_v36 = vor.u32 %v6454_v50, %v5558_v38  ;;  %2613 = vmatpush.bf16.msra.mxu2 %v5275_v33  ;;  %v6438_v37 = vld [vmem:[#allocation8 + $0x264] sm:$0xf0]  ;;  %v5467_v6 = vor.u32 %v6426_v52, %v5464_v43  ;;  %v408_v38 = vadd.f32 %v7709_v23, %v223_v16  ;;  %v5406_v16 = vld [vmem:[#allocation8 + $0x190] sm:$0xf] }
 0x214   :  { %v1688_v28 = vadd.f32 %v1628_v53, %v380_v61  ;;  %2586 = vmatpush.bf16.msra.mxu0 %v5239_v40  ;;  %v5208_v61 = vld [vmem:[#allocation8 + $0x28] sm:$0xf0]  ;;  %v5495_v44 = vor.u32 %v6438_v37, %v5494_v26  ;;  %v5443_v23 = vor.u32 %v6419_v58, %v5440_v48  ;;  %v6411_v40 = vld [vmem:[#allocation8 + $0x194] sm:$0xf]  ;;  %v6471_v43 = vld [vmem:[#allocation8 + $0x36c] sm:$0xf0] }
 0x215   :  { %v1721_v60 = vadd.f32 %v1719_v35, %v1717_v12  ;;  %2598 = vmatpush.bf16.msra.mxu1 %v5559_v36  ;;  %v5211_v19 = vor.u32 %v6362_v20, %v5208_v61  ;;  %v5496_v53 = vld [vmem:[#allocation8 + $0x268] sm:$0xf0]  ;;  %v5376_v20 = vld [vmem:[#allocation8 + $0x170] sm:$0xf0]  ;;  %v5699_v61 = vor.u32 %v6483_v31, %v5696_v39  ;;  %v5534_v31 = vld [vmem:[#allocation8 + $0x290] sm:$0xf] }
 0x216   :  { %6673 = vtanh.f32 %v1688_v28  ;;  %v7890_v27 = vpop.f32.mrf.mxu2  ;;  %2627 = vmatpush.bf16.msra.mxu3 %v5531_v51  ;;  %v5499_v59 = vor.u32 %v6434_v42, %v5496_v53  ;;  %v394_v28 = vadd.f32 %v7706_v7, %v222_v32  ;;  %v5438_v32 = vld [vmem:[#allocation8 + $0x1d0] sm:$0xf]  ;;  %v6475_v37 = vld [vmem:[#allocation8 + $0x394] sm:$0xf] }
 0x217   :  { %2614 = vmatpush.bf16.msra.mxu2 %v5243_v49  ;;  %v5694_v49 = vld [vmem:[#allocation8 + $0x3d0] sm:$0xf]  ;;  %v5664_v42 = vld [vmem:[#allocation8 + $0x3b0] sm:$0xf0] }
 0x218   :  { %v1642_v22 = vpop.f32.mrf.mxu0  ;;  %2587 = vmatpush.bf16.msra.mxu0 %v5207_v34  ;;  %v5374_v51 = vld [vmem:[#allocation8 + $0x150] sm:$0xf]  ;;  %v5695_v34 = vor.u32 %v6487_v41, %v5694_v49  ;;  %v5667_v10 = vor.u32 %v6475_v37, %v5664_v42  ;;  %v6435_v42 = vld [vmem:[#allocation8 + $0x254] sm:$0xf] }
 0x219   :  { %v1629_v54 = vpop.f32.mrf.mxu3  ;;  %2599 = vmatpush.bf16.msra.mxu1 %v5527_v14  ;;  %v5411_v14 = vor.u32 %v6411_v40, %v5408_v47  ;;  %v5375_v26 = vor.u32 %v6407_v2, %v5374_v51  ;;  %v5342_v53 = vld [vmem:[#allocation8 + $0x110] sm:$0xf]  ;;  %v6371_v47 = vld [vmem:[#allocation8 + $0x54] sm:$0xf] }
 0x21a   :  { %2628 = vmatpush.bf16.msra.mxu3 %v5499_v59  ;;  %v5344_v59 = vld [vmem:[#allocation8 + $0x130] sm:$0xf0]  ;;  %v6375_v40 = vld [vmem:[#allocation8 + $0x6c] sm:$0xf0] }
 0x21b   :  { %2615 = vmatpush.bf16.msra.mxu2 %v5211_v19  ;;  %v6367_v2 = vld [vmem:[#allocation8 + $0x2c] sm:$0xf0] }
 0x21c   :  { %v6674_v62 = vpop.eup %6673  ;;  %v6439_v37 = vld [vmem:[#allocation8 + $0x26c] sm:$0xf0] }
 0x21d   :  { %v1720_v45 = vmul.f32 %v6674_v62, %v1704_v18  ;;  %2600 = vmatpush.bf16.msra.mxu1 %v5495_v44  ;;  %v6395_v44 = vld [vmem:[#allocation8 + $0x114] sm:$0xf] }
 0x21e   :  { %v1668_v17 = vpop.f32.mrf.mxu2  ;;  %2629 = vmatpush.bf16.msra.mxu3 %v5467_v6  ;;  %v5347_v52 = vor.u32 %v6395_v44, %v5344_v59  ;;  %v6467_v6 = vld [vmem:[#allocation8 + $0x354] sm:$0xf] }
 0x21f   :  { %v1722_v24 = vadd.f32 %v1720_v45, %v1718_v30  ;;  %v5662_v30 = vld [vmem:[#allocation8 + $0x390] sm:$0xf]  ;;  %v5379_v17 = vor.u32 %v6403_v46, %v5376_v20  ;;  %v6363_v46 = vld [vmem:[#allocation8 + $0x14] sm:$0xf] }
 0x220   :  { %v6479_v45 = vld [vmem:[#allocation8 + $0x3ac] sm:$0xf0]  ;;  %v5216_v20 = vld [vmem:[#allocation8 + $0x30] sm:$0xf0] }
 0x221   :  { %2601 = vmatpush.bf16.msra.mxu1 %v5463_v29  ;;  %v5663_v4 = vor.u32 %v6479_v45, %v5662_v30  ;;  %v6420_v45 = vld [vmem:[#allocation8 + $0x1dc] sm:$0xf]  ;;  %v5219_v44 = vor.u32 %v6363_v46, %v5216_v20 }
 0x222   :  { %v5320_v46 = vld [vmem:[#allocation8 + $0xf8] sm:$0xf0] }
 0x228   :  { %v1653_v5 = vpop.f32.mrf.mxu1 }
 0x229   :  { %v1654_v21 = vadd.f32 %v1653_v5, %v7883_v55  ;;  %v6423_v55 = vld [vmem:[#allocation8 + $0x1ec] sm:$0xf0]  ;;  %v5632_v5 = vld [vmem:[#allocation8 + $0x370] sm:$0xf0] }
 0x22a   :  { %v5439_v63 = vor.u32 %v6423_v55, %v5438_v32  ;;  %v6383_v32 = vld [vmem:[#allocation8 + $0xac] sm:$0xf0]  ;;  %v6379_v55 = vld [vmem:[#allocation8 + $0x94] sm:$0xf] }
 0x22b   :  { %v1689_v8 = vadd.f32 %v1654_v21, %v394_v28  ;;  %v5310_v28 = vld [vmem:[#allocation8 + $0xd0] sm:$0xf] }
 0x22c   :  { %v6391_v21 = vld [vmem:[#allocation8 + $0xec] sm:$0xf0] }
 0x22d   :  { %v1709_v0 = vmul.f32 0.5, %v1689_v8  ;;  %v6387_v8 = vld [vmem:[#allocation8 + $0xd4] sm:$0xf] }
 0x22f   :  { %6675 = vtanh.f32 %v1709_v0  ;;  %v1679_v33 = vpop.f32.mrf.mxu3  ;;  %v5312_v0 = vld [vmem:[#allocation8 + $0xf0] sm:$0xf0] }
 0x230   :  { %v1680_v50 = vadd.f32 %v1679_v33, %v7890_v27  ;;  %v1655_v56 = vpop.f32.mrf.mxu1  ;;  %6677 = vtanh.f32 %v1721_v60  ;;  %v6415_v60 = vld [vmem:[#allocation8 + $0x1ac] sm:$0xf0] }
 0x231   :  { %v5407_v18 = vor.u32 %v6415_v60, %v5406_v16  ;;  %v6463_v56 = vld [vmem:[#allocation8 + $0x32c] sm:$0xf0] }
 0x232   :  { %v1690_v12 = vadd.f32 %v1680_v50, %v408_v38  ;;  %v5635_v38 = vor.u32 %v6467_v6, %v5632_v5  ;;  %v5598_v50 = vld [vmem:[#allocation8 + $0x310] sm:$0xf]  ;;  %v5416_v6 = vld [vmem:[#allocation8 + $0x1b8] sm:$0xf0] }
 0x233   :  { %v5599_v58 = vor.u32 %v6463_v56, %v5598_v50  ;;  %v5246_v60 = vld [vmem:[#allocation8 + $0x50] sm:$0xf]  ;;  %v5704_v50 = vld [vmem:[#allocation8 + $0x3f8] sm:$0xf0] }
 0x234   :  { %v1710_v35 = vmul.f32 0.5, %v1690_v12  ;;  %v6459_v12 = vld [vmem:[#allocation8 + $0x314] sm:$0xf]  ;;  %v5247_v39 = vor.u32 %v6375_v40, %v5246_v60  ;;  %v5470_v5 = vld [vmem:[#allocation8 + $0x210] sm:$0xf] }
 0x235   :  { %v6676_v36 = vpop.eup %6675  ;;  %v6400_v60 = vld [vmem:[#allocation8 + $0x134] sm:$0xf0]  ;;  %v6396_v40 = vld [vmem:[#allocation8 + $0x11c] sm:$0xf] }
 0x236   :  { %v1713_v13 = vadd.f32 1.0, %v6676_v36  ;;  %6679 = vtanh.f32 %v1710_v35  ;;  %v6678_v25 = vpop.eup %6677  ;;  %v5600_v35 = vld [vmem:[#allocation8 + $0x330] sm:$0xf0]  ;;  %v5311_v36 = vor.u32 %v6391_v21, %v5310_v28  ;;  %v6431_v28 = vld [vmem:[#allocation8 + $0x22c] sm:$0xf0] }
 0x237   :  { %v1681_v7 = vpop.f32.mrf.mxu3  ;;  %6681 = vtanh.f32 %v1722_v24  ;;  %v6399_v24 = vld [vmem:[#allocation8 + $0x12c] sm:$0xf0]  ;;  %v5603_v48 = vor.u32 %v6459_v12, %v5600_v35  ;;  %v6427_v21 = vld [vmem:[#allocation8 + $0x214] sm:$0xf]  ;;  %v5382_v35 = vld [vmem:[#allocation8 + $0x158] sm:$0xf] }
 0x238   :  { %v1715_v57 = vmul.f32 0.5, %v1713_v13  ;;  %v5343_v29 = vor.u32 %v6399_v24, %v5342_v53  ;;  %v5315_v13 = vor.u32 %v6387_v8, %v5312_v0  ;;  %v5278_v7 = vld [vmem:[#allocation8 + $0x90] sm:$0xf]  ;;  %v5504_v53 = vld [vmem:[#allocation8 + $0x270] sm:$0xf0] }
 0x239   :  { %v5279_v16 = vor.u32 %v6383_v32, %v5278_v7  ;;  %v5472_v8 = vld [vmem:[#allocation8 + $0x230] sm:$0xf0]  ;;  %v5702_v0 = vld [vmem:[#allocation8 + $0x3d8] sm:$0xf]  ;;  %v6404_v32 = vld [vmem:[#allocation8 + $0x15c] sm:$0xf] }
 0x23a   :  { %v1725_v15 = vmul.f32 %v6678_v25, %v1715_v57  ;;  %v5280_v57 = vld [vmem:[#allocation8 + $0xb0] sm:$0xf0]  ;;  %v5566_v25 = vld [vmem:[#allocation8 + $0x2d0] sm:$0xf]  ;;  %v6408_v7 = vld [vmem:[#allocation8 + $0x174] sm:$0xf0] }
 0x23c   :  { %v6680_v27 = vpop.eup %6679  ;;  %v7902_v22 = vpack.c.bf16 %v1725_v15, %v7754_v9  ;;  %v6455_v15 = vld [vmem:[#allocation8 + $0x2ec] sm:$0xf0] }
 0x23d   :  { %v1714_v54 = vadd.f32 1.0, %v6680_v27  ;;  %v6682_v9 = vpop.eup %6681  ;;  %v5283_v27 = vor.u32 %v6379_v55, %v5280_v57  ;;  %v5567_v49 = vor.u32 %v6455_v15, %v5566_v25  ;;  %v5384_v55 = vld [vmem:[#allocation8 + $0x178] sm:$0xf0]  ;;  %v6480_v25 = vld [vmem:[#allocation8 + $0x3b4] sm:$0xf0] }
 0x23e   :  { %2532 = vmatmul.bf16.vlgmr.msrb.gmra.mxu0 %v7902_v22  ;;  %2560 = vmatmul.bf16.vlgmr.msrb.gmra.mxu2 %v7902_v22  ;;  %v6476_v15 = vld [vmem:[#allocation8 + $0x39c] sm:$0xf] }
 0x23f   :  { %v1716_v3 = vmul.f32 0.5, %v1714_v54  ;;  %2636 = vmatpush.bf16.msrb.mxu0 %v5439_v63  ;;  %2664 = vmatpush.bf16.msrb.mxu2 %v5443_v23  ;;  %v6451_v63 = vld [vmem:[#allocation8 + $0x2d4] sm:$0xf] }
 0x240   :  { %v5568_v23 = vld [vmem:[#allocation8 + $0x2f0] sm:$0xf0] }
 0x241   :  { %v1726_v62 = vmul.f32 %v6682_v9, %v1716_v3  ;;  %v5248_v54 = vld [vmem:[#allocation8 + $0x70] sm:$0xf0]  ;;  %v5571_v41 = vor.u32 %v6451_v63, %v5568_v23  ;;  %v6447_v3 = vld [vmem:[#allocation8 + $0x2ac] sm:$0xf0]  ;;  %v5672_v63 = vld [vmem:[#allocation8 + $0x3b8] sm:$0xf0]  ;;  %v5383_v23 = vor.u32 %v6408_v7, %v5382_v35 }
 0x242   :  { %v5251_v51 = vor.u32 %v6371_v47, %v5248_v54  ;;  %v5214_v9 = vld [vmem:[#allocation8 + $0x10] sm:$0xf]  ;;  %v5352_v47 = vld [vmem:[#allocation8 + $0x138] sm:$0xf0] }
 0x243   :  { %v7907_v19 = vpack.c.bf16 %v1726_v62, %v7779_v11  ;;  %2637 = vmatpush.bf16.msrb.mxu0 %v5407_v18  ;;  %2665 = vmatpush.bf16.msrb.mxu2 %v5411_v14  ;;  %v5630_v11 = vld [vmem:[#allocation8 + $0x350] sm:$0xf]  ;;  %v6443_v18 = vld [vmem:[#allocation8 + $0x294] sm:$0xf]  ;;  %v5446_v62 = vld [vmem:[#allocation8 + $0x1d8] sm:$0xf]  ;;  %v5215_v24 = vor.u32 %v6367_v2, %v5214_v9 }
 0x244   :  { %v5631_v33 = vor.u32 %v6471_v43, %v5630_v11  ;;  %v5536_v14 = vld [vmem:[#allocation8 + $0x2b0] sm:$0xf0]  ;;  %v6416_v11 = vld [vmem:[#allocation8 + $0x1b4] sm:$0xf0]  ;;  %v5507_v43 = vor.u32 %v6435_v42, %v5504_v53  ;;  %v6388_v2 = vld [vmem:[#allocation8 + $0xdc] sm:$0xf] }
 0x245   :  { %2546 = vmatmul.bf16.vlgmr.msrb.gmra.mxu1 %v7907_v19  ;;  %2574 = vmatmul.bf16.vlgmr.msrb.gmra.mxu3 %v7907_v19  ;;  %v5539_v30 = vor.u32 %v6443_v18, %v5536_v14  ;;  %v5640_v18 = vld [vmem:[#allocation8 + $0x378] sm:$0xf0]  ;;  %v6392_v9 = vld [vmem:[#allocation8 + $0xf4] sm:$0xf0] }
 0x246   :  { %2650 = vmatpush.bf16.msrb.mxu1 %v5695_v34  ;;  %2678 = vmatpush.bf16.msrb.mxu3 %v5699_v61  ;;  %v6424_v34 = vld [vmem:[#allocation8 + $0x1f4] sm:$0xf0]  ;;  %v5535_v61 = vor.u32 %v6447_v3, %v5534_v31  ;;  %v6468_v3 = vld [vmem:[#allocation8 + $0x35c] sm:$0xf] }
 0x247   :  { %2638 = vmatpush.bf16.msrb.mxu0 %v5375_v26  ;;  %2666 = vmatpush.bf16.msrb.mxu2 %v5379_v17  ;;  %v5448_v26 = vld [vmem:[#allocation8 + $0x1f8] sm:$0xf0]  ;;  %v5502_v17 = vld [vmem:[#allocation8 + $0x250] sm:$0xf]  ;;  %v5447_v59 = vor.u32 %v6424_v34, %v5446_v62  ;;  %v6472_v31 = vld [vmem:[#allocation8 + $0x374] sm:$0xf0]  ;;  %v5643_v62 = vor.u32 %v6468_v3, %v5640_v18 }
 0x248   :  { %v5606_v34 = vld [vmem:[#allocation8 + $0x318] sm:$0xf]  ;;  %v6380_v53 = vld [vmem:[#allocation8 + $0x9c] sm:$0xf] }
 0x249   :  { %v6384_v42 = vld [vmem:[#allocation8 + $0xb4] sm:$0xf0]  ;;  %v6364_v7 = vld [vmem:[#allocation8 + $0x1c] sm:$0xf] }
 0x24a   :  { %2651 = vmatpush.bf16.msrb.mxu1 %v5663_v4  ;;  %2679 = vmatpush.bf16.msrb.mxu3 %v5667_v10  ;;  %v5451_v4 = vor.u32 %v6420_v45, %v5448_v26  ;;  %v5414_v10 = vld [vmem:[#allocation8 + $0x198] sm:$0xf]  ;;  %v5608_v45 = vld [vmem:[#allocation8 + $0x338] sm:$0xf0] }
 0x24b   :  { %2639 = vmatpush.bf16.msrb.mxu0 %v5343_v29  ;;  %2667 = vmatpush.bf16.msrb.mxu2 %v5347_v52  ;;  %v6412_v29 = vld [vmem:[#allocation8 + $0x19c] sm:$0xf]  ;;  %v5503_v52 = vor.u32 %v6439_v37, %v5502_v17  ;;  %v5415_v56 = vor.u32 %v6416_v11, %v5414_v10  ;;  %v5323_v17 = vor.u32 %v6388_v2, %v5320_v46  ;;  %v5286_v37 = vld [vmem:[#allocation8 + $0x98] sm:$0xf]  ;;  %v6190_v46 = vld [vmem:[#allocation10 + $0x3c0] sm:$0xf] }
 0x24c   :  { %v5419_v12 = vor.u32 %v6412_v29, %v5416_v6  ;;  %v6456_v10 = vld [vmem:[#allocation8 + $0x2f4] sm:$0xf0]  ;;  %v6452_v11 = vld [vmem:[#allocation8 + $0x2dc] sm:$0xf] }
 0x24d   :  { %v5576_v29 = vld [vmem:[#allocation8 + $0x2f8] sm:$0xf0]  ;;  %v5254_v6 = vld [vmem:[#allocation8 + $0x58] sm:$0xf] }
 0x24e   :  { %2652 = vmatpush.bf16.msrb.mxu1 %v5631_v33  ;;  %2680 = vmatpush.bf16.msrb.mxu3 %v5635_v38  ;;  %v6488_v33 = vld [vmem:[#allocation8 + $0x3f4] sm:$0xf0]  ;;  %v6484_v38 = vld [vmem:[#allocation8 + $0x3dc] sm:$0xf] }
 0x24f   :  { %2588 = vmatmul.bf16.vlgmr.msra.gmra.mxu0 %v7902_v22  ;;  %2616 = vmatmul.bf16.vlgmr.msra.gmra.mxu2 %v7902_v22  ;;  %v5703_v57 = vor.u32 %v6488_v33, %v5702_v0  ;;  %v5579_v0 = vor.u32 %v6452_v11, %v5576_v29  ;;  %v5542_v33 = vld [vmem:[#allocation8 + $0x298] sm:$0xf]  ;;  %v5480_v2 = vld [vmem:[#allocation8 + $0x238] sm:$0xf0]  ;;  %v6160_v11 = vld [vmem:[#allocation10 + $0x3a0] sm:$0xf0] }
 0x250   :  { %2640 = vmatpush.bf16.msrb.mxu0 %v5311_v36  ;;  %2668 = vmatpush.bf16.msrb.mxu2 %v5315_v13  ;;  %v5471_v36 = vor.u32 %v6431_v28, %v5470_v5  ;;  %v5475_v13 = vor.u32 %v6427_v21, %v5472_v8  ;;  %v6376_v5 = vld [vmem:[#allocation8 + $0x74] sm:$0xf0]  ;;  %v6372_v28 = vld [vmem:[#allocation8 + $0x5c] sm:$0xf] }
 0x251   :  { %v5256_v21 = vld [vmem:[#allocation8 + $0x78] sm:$0xf0] }
 0x252   :  { %2653 = vmatpush.bf16.msrb.mxu1 %v5599_v58  ;;  %2681 = vmatpush.bf16.msrb.mxu3 %v5603_v48  ;;  %v5707_v58 = vor.u32 %v6484_v38, %v5704_v50  ;;  %v5670_v48 = vld [vmem:[#allocation8 + $0x398] sm:$0xf]  ;;  %v6444_v50 = vld [vmem:[#allocation8 + $0x29c] sm:$0xf]  ;;  %v5259_v35 = vor.u32 %v6372_v28, %v5256_v21  ;;  %v6126_v28 = vld [vmem:[#allocation10 + $0x340] sm:$0xf] }
 0x253   :  { %v5671_v54 = vor.u32 %v6480_v25, %v5670_v48  ;;  %v6448_v38 = vld [vmem:[#allocation8 + $0x2b4] sm:$0xf0]  ;;  %v6521_v21 = vld [vmem:[#allocation10 + $0x104] sm:$0xf] }
 0x254   :  { %2641 = vmatpush.bf16.msrb.mxu0 %v5279_v16  ;;  %2669 = vmatpush.bf16.msrb.mxu2 %v5283_v27  ;;  %v5387_v16 = vor.u32 %v6404_v32, %v5384_v55  ;;  %v5350_v27 = vld [vmem:[#allocation8 + $0x118] sm:$0xf]  ;;  %v5224_v32 = vld [vmem:[#allocation8 + $0x38] sm:$0xf0]  ;;  %v5934_v55 = vld [vmem:[#allocation10 + $0x1c0] sm:$0xf] }
 0x255   :  { %2602 = vmatmul.bf16.vlgmr.msra.gmra.mxu1 %v7907_v19  ;;  %2630 = vmatmul.bf16.vlgmr.msra.gmra.mxu3 %v7907_v19  ;;  %v5351_v14 = vor.u32 %v6400_v60, %v5350_v27  ;;  %v5510_v25 = vld [vmem:[#allocation8 + $0x258] sm:$0xf]  ;;  %v5512_v27 = vld [vmem:[#allocation8 + $0x278] sm:$0xf0] }
 0x256   :  { %2654 = vmatpush.bf16.msrb.mxu1 %v5567_v49  ;;  %2682 = vmatpush.bf16.msrb.mxu3 %v5571_v41  ;;  %v5675_v49 = vor.u32 %v6476_v15, %v5672_v63  ;;  %v5638_v41 = vld [vmem:[#allocation8 + $0x358] sm:$0xf]  ;;  %v6545_v15 = vld [vmem:[#allocation10 + $0x1c4] sm:$0xf] }
 0x257   :  { %v5639_v20 = vor.u32 %v6472_v31, %v5638_v41  ;;  %v5936_v63 = vld [vmem:[#allocation10 + $0x1e0] sm:$0xf0]  ;;  %v5478_v41 = vld [vmem:[#allocation8 + $0x218] sm:$0xf] }
 0x258   :  { %2642 = vmatpush.bf16.msrb.mxu0 %v5247_v39  ;;  %2670 = vmatpush.bf16.msrb.mxu2 %v5251_v51  ;;  %v5355_v39 = vor.u32 %v6396_v40, %v5352_v47  ;;  %v5318_v51 = vld [vmem:[#allocation8 + $0xd8] sm:$0xf]  ;;  %v5227_v40 = vor.u32 %v6364_v7, %v5224_v32  ;;  %v7921_v31 = vor.u32 %v6545_v15, %v5936_v63  ;;  %v6094_v7 = vld [vmem:[#allocation10 + $0x300] sm:$0xf]  ;;  %v5808_v32 = vld [vmem:[#allocation10 + $0xe0] sm:$0xf0] }
 0x259   :  { %v5319_v26 = vor.u32 %v6392_v9, %v5318_v51  ;;  %v5904_v51 = vld [vmem:[#allocation10 + $0x1a0] sm:$0xf0]  ;;  %v6428_v9 = vld [vmem:[#allocation8 + $0x21c] sm:$0xf]  ;;  %v6509_v15 = vld [vmem:[#allocation10 + $0x9c] sm:$0xf0] }
 0x25a   :  { %2655 = vmatpush.bf16.msrb.mxu1 %v5535_v61  ;;  %2683 = vmatpush.bf16.msrb.mxu3 %v5539_v30  ;;  %v6464_v61 = vld [vmem:[#allocation8 + $0x334] sm:$0xf0]  ;;  %v6460_v30 = vld [vmem:[#allocation8 + $0x31c] sm:$0xf] }
 0x25c   :  { %2643 = vmatpush.bf16.msrb.mxu0 %v5215_v24  ;;  %2671 = vmatpush.bf16.msrb.mxu2 %v5219_v44  ;;  %v5288_v24 = vld [vmem:[#allocation8 + $0xb8] sm:$0xf0]  ;;  %v5607_v44 = vor.u32 %v6464_v61, %v5606_v34  ;;  %v6192_v34 = vld [vmem:[#allocation10 + $0x3e0] sm:$0xf0] }
 0x25e   :  { %2656 = vmatpush.bf16.msrb.mxu1 %v5503_v52  ;;  %2684 = vmatpush.bf16.msrb.mxu3 %v5507_v43  ;;  %v5287_v52 = vor.u32 %v6384_v42, %v5286_v37  ;;  %v5291_v43 = vor.u32 %v6380_v53, %v5288_v24  ;;  %v6533_v37 = vld [vmem:[#allocation10 + $0x15c] sm:$0xf0] }
 0x25f   :  { %2644 = vmatmul.bf16.vlgmr.msrb.gmra.mxu0 %v7902_v22  ;;  %2672 = vmatmul.bf16.vlgmr.msrb.gmra.mxu2 %v7902_v22  ;;  %v6158_v24 = vld [vmem:[#allocation10 + $0x380] sm:$0xf] }
 0x260   :  { %2692 = vmatpush.bf16.msra.mxu0 %v5447_v59  ;;  %2720 = vmatpush.bf16.msra.mxu2 %v5451_v4  ;;  %v5611_v59 = vor.u32 %v6460_v30, %v5608_v45  ;;  %v5574_v4 = vld [vmem:[#allocation8 + $0x2d8] sm:$0xf] }
 0x261   :  { %v5575_v8 = vor.u32 %v6456_v10, %v5574_v4  ;;  %v6605_v4 = vld [vmem:[#allocation10 + $0x39c] sm:$0xf0]  ;;  %v6601_v10 = vld [vmem:[#allocation10 + $0x384] sm:$0xf] }
 0x262   :  { %2657 = vmatpush.bf16.msrb.mxu1 %v5471_v36  ;;  %2685 = vmatpush.bf16.msrb.mxu3 %v5475_v13  ;;  %v5222_v36 = vld [vmem:[#allocation8 + $0x18] sm:$0xf] }
 0x263   :  { %v6368_v13 = vld [vmem:[#allocation8 + $0x34] sm:$0xf0] }
 0x264   :  { %2693 = vmatpush.bf16.msra.mxu0 %v5415_v56  ;;  %2721 = vmatpush.bf16.msra.mxu2 %v5419_v12  ;;  %v5544_v56 = vld [vmem:[#allocation8 + $0x2b8] sm:$0xf0]  ;;  %v5255_v12 = vor.u32 %v6376_v5, %v5254_v6  ;;  %v5223_v60 = vor.u32 %v6368_v13, %v5222_v36  ;;  %v7943_v6 = vor.u32 %v6605_v4, %v6158_v24  ;;  %v5942_v24 = vld [vmem:[#allocation10 + $0x1c8] sm:$0xf] }
 0x265   :  { %2658 = vmatmul.bf16.vlgmr.msrb.gmra.mxu1 %v7907_v19  ;;  %2686 = vmatmul.bf16.vlgmr.msrb.gmra.mxu3 %v7907_v19  ;;  %v5547_v48 = vor.u32 %v6444_v50, %v5544_v56  ;;  %v7945_v5 = vor.u32 %v6601_v10, %v6160_v11  ;;  %v5806_v56 = vld [vmem:[#allocation10 + $0xc0] sm:$0xf]  ;;  %v6550_v10 = vld [vmem:[#allocation10 + $0x1e4] sm:$0xf0]  ;;  %v6489_v11 = vld [vmem:[#allocation10 + $0x4] sm:$0xf] }
 0x266   :  { %2706 = vmatpush.bf16.msra.mxu1 %v5703_v57  ;;  %2734 = vmatpush.bf16.msra.mxu3 %v5707_v58  ;;  %v6549_v57 = vld [vmem:[#allocation10 + $0x1dc] sm:$0xf0]  ;;  %v5543_v58 = vor.u32 %v6448_v38, %v5542_v33  ;;  %v6593_v33 = vld [vmem:[#allocation10 + $0x344] sm:$0xf] }
 0x267   :  { %v7919_v47 = vor.u32 %v6549_v57, %v5934_v55  ;;  %v6128_v38 = vld [vmem:[#allocation10 + $0x360] sm:$0xf0]  ;;  %v6589_v55 = vld [vmem:[#allocation10 + $0x31c] sm:$0xf0] }
 0x268   :  { %2694 = vmatpush.bf16.msra.mxu0 %v5383_v23  ;;  %2722 = vmatpush.bf16.msra.mxu2 %v5387_v16  ;;  %v6440_v23 = vld [vmem:[#allocation8 + $0x274] sm:$0xf0]  ;;  %v6436_v16 = vld [vmem:[#allocation8 + $0x25c] sm:$0xf]  ;;  %v7959_v13 = vor.u32 %v6593_v33, %v6128_v38  ;;  %v6585_v57 = vld [vmem:[#allocation10 + $0x304] sm:$0xf] }
 0x269   :  { %v5511_v3 = vor.u32 %v6440_v23, %v5510_v25  ;;  %v5515_v18 = vor.u32 %v6436_v16, %v5512_v27  ;;  %v5774_v25 = vld [vmem:[#allocation10 + $0x80] sm:$0xf]  ;;  %v7969_v23 = vor.u32 %v6589_v55, %v6094_v7  ;;  %v5944_v33 = vld [vmem:[#allocation10 + $0x1e8] sm:$0xf0] }
 0x26a   :  { %2707 = vmatpush.bf16.msra.mxu1 %v5671_v54  ;;  %2735 = vmatpush.bf16.msra.mxu3 %v5675_v49  ;;  %v5902_v54 = vld [vmem:[#allocation10 + $0x180] sm:$0xf] }
 0x26b   :  { %v6541_v49 = vld [vmem:[#allocation10 + $0x19c] sm:$0xf0] }
 0x26c   :  { %2695 = vmatpush.bf16.msra.mxu0 %v5351_v14  ;;  %2723 = vmatpush.bf16.msra.mxu2 %v5355_v39  ;;  %v6432_v14 = vld [vmem:[#allocation8 + $0x234] sm:$0xf0]  ;;  %v6537_v39 = vld [vmem:[#allocation10 + $0x184] sm:$0xf]  ;;  %v7924_v61 = vor.u32 %v6541_v49, %v5902_v54  ;;  %v6062_v27 = vld [vmem:[#allocation10 + $0x2c0] sm:$0xf] }
 0x26d   :  { %v7927_v30 = vor.u32 %v6537_v39, %v5904_v51  ;;  %v5479_v45 = vor.u32 %v6432_v14, %v5478_v41  ;;  %v6581_v54 = vld [vmem:[#allocation10 + $0x2dc] sm:$0xf0]  ;;  %v6577_v49 = vld [vmem:[#allocation10 + $0x2c4] sm:$0xf] }
 0x26e   :  { %2708 = vmatpush.bf16.msra.mxu1 %v5639_v20  ;;  %2736 = vmatpush.bf16.msra.mxu3 %v5643_v62  ;;  %v6613_v20 = vld [vmem:[#allocation10 + $0x3dc] sm:$0xf0]  ;;  %v6609_v62 = vld [vmem:[#allocation10 + $0x3c4] sm:$0xf]  ;;  %v7981_v51 = vor.u32 %v6581_v54, %v6062_v27  ;;  %v6610_v54 = vld [vmem:[#allocation10 + $0x3cc] sm:$0xf] }
 0x26f   :  { %v7931_v42 = vor.u32 %v6613_v20, %v6190_v46  ;;  %v7933_v53 = vor.u32 %v6609_v62, %v6192_v34  ;;  %v6064_v41 = vld [vmem:[#allocation10 + $0x2e0] sm:$0xf0]  ;;  %v6501_v14 = vld [vmem:[#allocation10 + $0x5c] sm:$0xf0] }
 0x270   :  { %2696 = vmatpush.bf16.msra.mxu0 %v5319_v26  ;;  %2724 = vmatpush.bf16.msra.mxu2 %v5323_v17  ;;  %v5483_v26 = vor.u32 %v6428_v9, %v5480_v2  ;;  %v5870_v17 = vld [vmem:[#allocation10 + $0x140] sm:$0xf]  ;;  %v7983_v9 = vor.u32 %v6577_v49, %v6064_v41  ;;  %v6497_v46 = vld [vmem:[#allocation10 + $0x44] sm:$0xf]  ;;  %v6200_v49 = vld [vmem:[#allocation10 + $0x3e8] sm:$0xf0] }
 0x271   :  { %v7937_v29 = vor.u32 %v6533_v37, %v5870_v17  ;;  %v6030_v2 = vld [vmem:[#allocation10 + $0x280] sm:$0xf]  ;;  %v5744_v20 = vld [vmem:[#allocation10 + $0x60] sm:$0xf0]  ;;  %v6538_v41 = vld [vmem:[#allocation10 + $0x18c] sm:$0xf] }
 0x272   :  { %2709 = vmatpush.bf16.msra.mxu1 %v5607_v44  ;;  %2737 = vmatpush.bf16.msra.mxu3 %v5611_v59  ;;  %v6529_v44 = vld [vmem:[#allocation10 + $0x144] sm:$0xf]  ;;  %v6573_v62 = vld [vmem:[#allocation10 + $0x29c] sm:$0xf0] }
 0x273   :  { %v5872_v59 = vld [vmem:[#allocation10 + $0x160] sm:$0xf0]  ;;  %v5710_v17 = vld [vmem:[#allocation10] sm:$0xf] }
 0x274   :  { %2697 = vmatpush.bf16.msra.mxu0 %v5287_v52  ;;  %2725 = vmatpush.bf16.msra.mxu2 %v5291_v43  ;;  %v5838_v52 = vld [vmem:[#allocation10 + $0x100] sm:$0xf]  ;;  %v7939_v43 = vor.u32 %v6529_v44, %v5872_v59  ;;  %v6569_v34 = vld [vmem:[#allocation10 + $0x284] sm:$0xf]  ;;  %v7989_v44 = vor.u32 %v6497_v46, %v5744_v20  ;;  %v7993_v59 = vor.u32 %v6573_v62, %v6030_v2  ;;  %v5878_v62 = vld [vmem:[#allocation10 + $0x148] sm:$0xf] }
 0x275   :  { %v6493_v37 = vld [vmem:[#allocation10 + $0x1c] sm:$0xf0] }
 0x276   :  { %2710 = vmatpush.bf16.msra.mxu1 %v5575_v8  ;;  %2738 = vmatpush.bf16.msra.mxu3 %v5579_v0  ;;  %v5840_v8 = vld [vmem:[#allocation10 + $0x120] sm:$0xf0]  ;;  %v6597_v0 = vld [vmem:[#allocation10 + $0x35c] sm:$0xf0]  ;;  %v7998_v38 = vor.u32 %v6493_v37, %v5710_v17  ;;  %v6166_v17 = vld [vmem:[#allocation10 + $0x388] sm:$0xf] }
 0x277   :  { %v7957_v36 = vor.u32 %v6597_v0, %v6126_v28  ;;  %v6565_v28 = vld [vmem:[#allocation10 + $0x25c] sm:$0xf0]  ;;  %v6546_v0 = vld [vmem:[#allocation10 + $0x1cc] sm:$0xf]  ;;  %v6606_v37 = vld [vmem:[#allocation10 + $0x3a4] sm:$0xf0] }
 0x278   :  { %2698 = vmatpush.bf16.msra.mxu0 %v5255_v12  ;;  %2726 = vmatpush.bf16.msra.mxu2 %v5259_v35  ;;  %v6517_v12 = vld [vmem:[#allocation10 + $0xdc] sm:$0xf0]  ;;  %v7953_v35 = vor.u32 %v6521_v21, %v5840_v8  ;;  %v6561_v21 = vld [vmem:[#allocation10 + $0x244] sm:$0xf]  ;;  %v8011_v27 = vor.u32 %v6546_v0, %v5944_v33  ;;  %v6526_v0 = vld [vmem:[#allocation10 + $0x124] sm:$0xf0] }
 0x279   :  { %v6000_v8 = vld [vmem:[#allocation10 + $0x260] sm:$0xf0]  ;;  %v5966_v55 = vld [vmem:[#allocation10 + $0x200] sm:$0xf] }
 0x27a   :  { %2711 = vmatpush.bf16.msra.mxu1 %v5543_v58  ;;  %2739 = vmatpush.bf16.msra.mxu3 %v5547_v48  ;;  %v6096_v58 = vld [vmem:[#allocation10 + $0x320] sm:$0xf0]  ;;  %v7962_v48 = vor.u32 %v6517_v12, %v5806_v56  ;;  %v8005_v12 = vor.u32 %v6550_v10, %v5942_v24  ;;  %v6602_v10 = vld [vmem:[#allocation10 + $0x38c] sm:$0xf] }
 0x27b   :  { %v7971_v16 = vor.u32 %v6585_v57, %v6096_v58  ;;  %v8009_v57 = vor.u32 %v6561_v21, %v6000_v8  ;;  %v6557_v58 = vld [vmem:[#allocation10 + $0x21c] sm:$0xf0]  ;;  %v8039_v21 = vor.u32 %v6606_v37, %v6166_v17  ;;  %v5846_v8 = vld [vmem:[#allocation10 + $0x108] sm:$0xf]  ;;  %v6586_v37 = vld [vmem:[#allocation10 + $0x30c] sm:$0xf] }
 0x27c   :  { %2699 = vmatpush.bf16.msra.mxu0 %v5223_v60  ;;  %2727 = vmatpush.bf16.msra.mxu2 %v5227_v40  ;;  %v6505_v60 = vld [vmem:[#allocation10 + $0x84] sm:$0xf]  ;;  %v8019_v2 = vor.u32 %v6557_v58, %v5966_v55  ;;  %v6594_v58 = vld [vmem:[#allocation10 + $0x34c] sm:$0xf] }
 0x27d   :  { %v5776_v40 = vld [vmem:[#allocation10 + $0xa0] sm:$0xf0]  ;;  %9116 = vst [vmem:[#allocation31_spill] sm:$0xff] %v8039_v21 }
 0x27e   :  { %2712 = vmatpush.bf16.msra.mxu1 %v5511_v3  ;;  %2740 = vmatpush.bf16.msra.mxu3 %v5515_v18  ;;  %v7974_v3 = vor.u32 %v6509_v15, %v5774_v25  ;;  %v5742_v18 = vld [vmem:[#allocation10 + $0x40] sm:$0xf]  ;;  %v7977_v39 = vor.u32 %v6505_v60, %v5776_v40  ;;  %v6553_v25 = vld [vmem:[#allocation10 + $0x204] sm:$0xf]  ;;  %v6198_v60 = vld [vmem:[#allocation10 + $0x3c8] sm:$0xf] }
 0x27f   :  { %2700 = vmatmul.bf16.vlgmr.msra.gmra.mxu0 %v7902_v22  ;;  %2728 = vmatmul.bf16.vlgmr.msra.gmra.mxu2 %v7902_v22  ;;  %v6525_v22 = vld [vmem:[#allocation10 + $0x11c] sm:$0xf0]  ;;  %v5968_v15 = vld [vmem:[#allocation10 + $0x220] sm:$0xf0]  ;;  %v6614_v40 = vld [vmem:[#allocation10 + $0x3e4] sm:$0xf0] }
 0x280   :  { %3540 = vmatpush.bf16.msrb.mxu0 %v7919_v47  ;;  %3566 = vmatpush.bf16.msrb.mxu2 %v7921_v31  ;;  %v7950_v50 = vor.u32 %v6525_v22, %v5838_v52  ;;  %v5712_v52 = vld [vmem:[#allocation10 + $0x20] sm:$0xf0]  ;;  %v5998_v22 = vld [vmem:[#allocation10 + $0x240] sm:$0xf]  ;;  %v8022_v46 = vor.u32 %v6553_v25, %v5968_v15  ;;  %v8024_v20 = vor.u32 %v6614_v40, %v6198_v60  ;;  %v6136_v25 = vld [vmem:[#allocation10 + $0x368] sm:$0xf0] }
 0x281   :  { %v8001_v56 = vor.u32 %v6489_v11, %v5712_v52  ;;  %v8007_v7 = vor.u32 %v6565_v28, %v5998_v22  ;;  %v6168_v11 = vld [vmem:[#allocation10 + $0x3a8] sm:$0xf0]  ;;  %v8050_v40 = vor.u32 %v6526_v0, %v5846_v8  ;;  %v5782_v0 = vld [vmem:[#allocation10 + $0x88] sm:$0xf] }
 0x282   :  { %2713 = vmatpush.bf16.msra.mxu1 %v5479_v45  ;;  %2741 = vmatpush.bf16.msra.mxu3 %v5483_v26  ;;  %v6032_v45 = vld [vmem:[#allocation10 + $0x2a0] sm:$0xf0]  ;;  %v7986_v26 = vor.u32 %v6501_v14, %v5742_v18  ;;  %v5912_v18 = vld [vmem:[#allocation10 + $0x1a8] sm:$0xf0]  ;;  %v8043_v33 = vor.u32 %v6602_v10, %v6168_v11 }
 0x283   :  { %v7995_v4 = vor.u32 %v6569_v34, %v6032_v45  ;;  %v6534_v34 = vld [vmem:[#allocation10 + $0x164] sm:$0xf0]  ;;  %v8027_v45 = vor.u32 %v6610_v54, %v6200_v49  ;;  %v8031_v24 = vor.u32 %v6538_v41, %v5912_v18  ;;  %v6530_v52 = vld [vmem:[#allocation10 + $0x14c] sm:$0xf]  ;;  %9119 = vst [vmem:[#allocation32_spill] sm:$0xff] %v8050_v40  ;;  %v8057_v18 = vor.u32 %v6594_v58, %v6136_v25 }
 0x284   :  { %3541 = vmatpush.bf16.msrb.mxu0 %v7924_v61  ;;  %3567 = vmatpush.bf16.msrb.mxu2 %v7927_v30  ;;  %v5880_v22 = vld [vmem:[#allocation10 + $0x168] sm:$0xf0]  ;;  %v8035_v28 = vor.u32 %v6534_v34, %v5878_v62  ;;  %9117 = vst [vmem:[#allocation30_spill] sm:$0xff] %v8043_v33  ;;  %v5814_v49 = vld [vmem:[#allocation10 + $0xc8] sm:$0xf] }
 0x285   :  { %2714 = vmatmul.bf16.vlgmr.msra.gmra.mxu1 %v7907_v19  ;;  %2742 = vmatmul.bf16.vlgmr.msra.gmra.mxu3 %v7907_v19  ;;  %v6513_v19 = vld [vmem:[#allocation10 + $0xc4] sm:$0xf]  ;;  %9114 = vst [vmem:[#allocation27_spill] sm:$0xff] %v8031_v24  ;;  %v8045_v55 = vor.u32 %v6530_v52, %v5880_v22  ;;  %v6522_v15 = vld [vmem:[#allocation10 + $0x10c] sm:$0xf] }
 0x286   :  { %3553 = vmatpush.bf16.msrb.mxu1 %v7931_v42  ;;  %3579 = vmatpush.bf16.msrb.mxu3 %v7933_v53  ;;  %v7965_v63 = vor.u32 %v6513_v19, %v5808_v32  ;;  %v5910_v19 = vld [vmem:[#allocation10 + $0x188] sm:$0xf]  ;;  %9115 = vst [vmem:[#allocation29_spill] sm:$0xff] %v8035_v28  ;;  %v5848_v60 = vld [vmem:[#allocation10 + $0x128] sm:$0xf0] }
 0x287   :  { %v6542_v32 = vld [vmem:[#allocation10 + $0x1a4] sm:$0xf0]  ;;  %9118 = vst [vmem:[#allocation33_spill] sm:$0xff] %v8045_v55  ;;  %v8059_v17 = vor.u32 %v6522_v15, %v5848_v60  ;;  %v6104_v10 = vld [vmem:[#allocation10 + $0x328] sm:$0xf0] }
 0x288   :  { %3542 = vmatpush.bf16.msrb.mxu0 %v7937_v29  ;;  %3568 = vmatpush.bf16.msrb.mxu2 %v7939_v43  ;;  %v8017_v14 = vor.u32 %v6542_v32, %v5910_v19  ;;  %v6134_v19 = vld [vmem:[#allocation10 + $0x348] sm:$0xf]  ;;  %9121 = vst [vmem:[#allocation35_spill] sm:$0xff] %v8057_v18  ;;  %v6514_v11 = vld [vmem:[#allocation10 + $0xcc] sm:$0xf] }
 0x289   :  { %v6598_v32 = vld [vmem:[#allocation10 + $0x364] sm:$0xf0]  ;;  %9122 = vst [vmem:[#allocation37_spill] sm:$0xff] %v8059_v17  ;;  %v5816_v52 = vld [vmem:[#allocation10 + $0xe8] sm:$0xf0] }
 0x28a   :  { %3554 = vmatpush.bf16.msrb.mxu1 %v7943_v6  ;;  %3580 = vmatpush.bf16.msrb.mxu3 %v7945_v5  ;;  %v8053_v54 = vor.u32 %v6598_v32, %v6134_v19  ;;  %v6518_v41 = vld [vmem:[#allocation10 + $0xe4] sm:$0xf0]  ;;  %v8069_v32 = vor.u32 %v6586_v37, %v6104_v10  ;;  %v8071_v15 = vor.u32 %v6514_v11, %v5816_v52  ;;  %v6578_v60 = vld [vmem:[#allocation10 + $0x2cc] sm:$0xf] }
 0x28b   :  { %v6102_v62 = vld [vmem:[#allocation10 + $0x308] sm:$0xf]  ;;  %v8062_v22 = vor.u32 %v6518_v41, %v5814_v49  ;;  %v6506_v49 = vld [vmem:[#allocation10 + $0x8c] sm:$0xf] }
 0x28c   :  { %3543 = vmatpush.bf16.msrb.mxu0 %v7950_v50  ;;  %3569 = vmatpush.bf16.msrb.mxu2 %v7953_v35  ;;  %9120 = vst [vmem:[#allocation28_spill] sm:$0xff] %v8053_v54  ;;  %v6590_v34 = vld [vmem:[#allocation10 + $0x324] sm:$0xf0]  ;;  %v5784_v41 = vld [vmem:[#allocation10 + $0xa8] sm:$0xf0] }
 0x28d   :  { %9123 = vst [vmem:[#allocation36_spill] sm:$0xff] %v8062_v22  ;;  %v8065_v8 = vor.u32 %v6590_v34, %v6102_v62  ;;  %v6510_v19 = vld [vmem:[#allocation10 + $0xa4] sm:$0xf0]  ;;  %v8083_v52 = vor.u32 %v6506_v49, %v5784_v41 }
 0x28e   :  { %3555 = vmatpush.bf16.msrb.mxu1 %v7957_v36  ;;  %3581 = vmatpush.bf16.msrb.mxu3 %v7959_v13  ;;  %9125 = vst [vmem:[#allocation39_spill] sm:$0xff] %v8069_v32  ;;  %v6070_v58 = vld [vmem:[#allocation10 + $0x2c8] sm:$0xf]  ;;  %v8074_v62 = vor.u32 %v6510_v19, %v5782_v0  ;;  %v6498_v0 = vld [vmem:[#allocation10 + $0x4c] sm:$0xf] }
 0x28f   :  { %9124 = vst [vmem:[#allocation34_spill] sm:$0xff] %v8065_v8  ;;  %v6582_v25 = vld [vmem:[#allocation10 + $0x2e4] sm:$0xf0]  ;;  %v5752_v19 = vld [vmem:[#allocation10 + $0x68] sm:$0xf0] }
 0x290   :  { %3544 = vmatpush.bf16.msrb.mxu0 %v7962_v48  ;;  %3570 = vmatpush.bf16.msrb.mxu2 %v7965_v63  ;;  %9126 = vst [vmem:[#allocation41_spill] sm:$0xff] %v8071_v15  ;;  %v8077_v34 = vor.u32 %v6582_v25, %v6070_v58  ;;  %v6038_v10 = vld [vmem:[#allocation10 + $0x288] sm:$0xf] }
 0x291   :  { %9127 = vst [vmem:[#allocation40_spill] sm:$0xff] %v8074_v62  ;;  %v6574_v11 = vld [vmem:[#allocation10 + $0x2a4] sm:$0xf0] }
 0x292   :  { %3556 = vmatpush.bf16.msrb.mxu1 %v7969_v23  ;;  %3582 = vmatpush.bf16.msrb.mxu3 %v7971_v16  ;;  %9128 = vst [vmem:[#allocation38_spill] sm:$0xff] %v8077_v34  ;;  %v5718_v25 = vld [vmem:[#allocation10 + $0x8] sm:$0xf] }
 0x293   :  { %9130 = vst [vmem:[#allocation46_spill] sm:$0xff] %v8083_v52  ;;  %v6006_v41 = vld [vmem:[#allocation10 + $0x248] sm:$0xf] }
 0x294   :  { %3545 = vmatpush.bf16.msrb.mxu0 %v7974_v3  ;;  %3571 = vmatpush.bf16.msrb.mxu2 %v7977_v39 }
 0x296   :  { %3557 = vmatpush.bf16.msrb.mxu1 %v7981_v51  ;;  %3583 = vmatpush.bf16.msrb.mxu3 %v7983_v9 }
 0x298   :  { %3546 = vmatpush.bf16.msrb.mxu0 %v7986_v26  ;;  %3572 = vmatpush.bf16.msrb.mxu2 %v7989_v44 }
 0x29a   :  { %3558 = vmatpush.bf16.msrb.mxu1 %v7993_v59  ;;  %3584 = vmatpush.bf16.msrb.mxu3 %v7995_v4 }
 0x29c   :  { %3547 = vmatpush.bf16.msrb.mxu0 %v7998_v38  ;;  %3573 = vmatpush.bf16.msrb.mxu2 %v8001_v56 }
 0x29e   :  { %3559 = vmatpush.bf16.msrb.mxu1 %v8007_v7  ;;  %3585 = vmatpush.bf16.msrb.mxu3 %v8009_v57 }
 0x29f   :  { %3548 = vmatmul.bf16.vlgmr.msrb.gmra.mxu0 %v9000_v1  ;;  %3574 = vmatmul.bf16.vlgmr.msrb.gmra.mxu2 %v9000_v1 }
 0x2a0   :  { %3592 = vmatpush.bf16.msra.mxu0 %v8005_v12  ;;  %3618 = vmatpush.bf16.msra.mxu2 %v8011_v27 }
 0x2a2   :  { %3560 = vmatpush.bf16.msrb.mxu1 %v8019_v2  ;;  %3586 = vmatpush.bf16.msrb.mxu3 %v8022_v46 }
 0x2a4   :  { %3593 = vmatpush.bf16.msra.mxu0 %v8017_v14  ;;  %3619 = vmatpush.bf16.msra.mxu2 %v8031_v24  ;;  %v5800_v24 = vld [vmem:[#allocation10 + $0xb8] sm:$0xf0] }
 0x2a5   :  { %3561 = vmatmul.bf16.vlgmr.msrb.gmra.mxu1 %v9000_v1  ;;  %3587 = vmatmul.bf16.vlgmr.msrb.gmra.mxu3 %v9000_v1 }
 0x2a6   :  { %3605 = vmatpush.bf16.msra.mxu1 %v8024_v20  ;;  %3631 = vmatpush.bf16.msra.mxu3 %v8027_v45 }
 0x2a8   :  { %3594 = vmatpush.bf16.msra.mxu0 %v8035_v28  ;;  %3620 = vmatpush.bf16.msra.mxu2 %v8045_v55  ;;  %v8095_v55 = vor.u32 %v6498_v0, %v5752_v19  ;;  %v5974_v19 = vld [vmem:[#allocation10 + $0x208] sm:$0xf]  ;;  %v6206_v28 = vld [vmem:[#allocation10 + $0x3d0] sm:$0xf] }
 0x2aa   :  { %3606 = vmatpush.bf16.msra.mxu1 %v8039_v21  ;;  %3632 = vmatpush.bf16.msra.mxu3 %v8043_v33  ;;  %9134 = vst [vmem:[#allocation53_spill] sm:$0xff] %v8095_v55  ;;  %v5720_v33 = vld [vmem:[#allocation10 + $0x28] sm:$0xf0] }
 0x2ab   :  { %v5976_v21 = vld [vmem:[#allocation10 + $0x228] sm:$0xf0] }
 0x2ac   :  { %3595 = vmatpush.bf16.msra.mxu0 %v8050_v40  ;;  %3621 = vmatpush.bf16.msra.mxu2 %v8059_v17  ;;  %v6072_v40 = vld [vmem:[#allocation10 + $0x2e8] sm:$0xf0]  ;;  %v6502_v17 = vld [vmem:[#allocation10 + $0x64] sm:$0xf0] }
 0x2ad   :  { %v8081_v37 = vor.u32 %v6578_v60, %v6072_v40  ;;  %v5950_v40 = vld [vmem:[#allocation10 + $0x1d0] sm:$0xf] }
 0x2ae   :  { %3607 = vmatpush.bf16.msra.mxu1 %v8053_v54  ;;  %3633 = vmatpush.bf16.msra.mxu3 %v8057_v18  ;;  %v5750_v18 = vld [vmem:[#allocation10 + $0x48] sm:$0xf]  ;;  %v6570_v54 = vld [vmem:[#allocation10 + $0x28c] sm:$0xf]  ;;  %v6551_v60 = vld [vmem:[#allocation10 + $0x1ec] sm:$0xf0] }
 0x2af   :  { %9129 = vst [vmem:[#allocation45_spill] sm:$0xff] %v8081_v37  ;;  %v8086_v58 = vor.u32 %v6502_v17, %v5750_v18  ;;  %v6562_v18 = vld [vmem:[#allocation10 + $0x24c] sm:$0xf] }
 0x2b0   :  { %3596 = vmatpush.bf16.msra.mxu0 %v8062_v22  ;;  %3622 = vmatpush.bf16.msra.mxu2 %v8071_v15  ;;  %v6040_v22 = vld [vmem:[#allocation10 + $0x2a8] sm:$0xf0]  ;;  %v6494_v15 = vld [vmem:[#allocation10 + $0x24] sm:$0xf0] }
 0x2b1   :  { %9131 = vst [vmem:[#allocation42_spill] sm:$0xff] %v8086_v58  ;;  %v8093_v49 = vor.u32 %v6570_v54, %v6040_v22  ;;  %v6008_v17 = vld [vmem:[#allocation10 + $0x268] sm:$0xf0]  ;;  %v5918_v22 = vld [vmem:[#allocation10 + $0x190] sm:$0xf] }
 0x2b2   :  { %3608 = vmatpush.bf16.msra.mxu1 %v8065_v8  ;;  %3634 = vmatpush.bf16.msra.mxu3 %v8069_v32  ;;  %v8089_v32 = vor.u32 %v6574_v11, %v6038_v10  ;;  %v6566_v8 = vld [vmem:[#allocation10 + $0x264] sm:$0xf0]  ;;  %v8098_v10 = vor.u32 %v6494_v15, %v5718_v25  ;;  %v6547_v11 = vld [vmem:[#allocation10 + $0x1d4] sm:$0xf]  ;;  %v8107_v0 = vor.u32 %v6562_v18, %v6008_v17  ;;  %v6554_v25 = vld [vmem:[#allocation10 + $0x20c] sm:$0xf] }
 0x2b3   :  { %9133 = vst [vmem:[#allocation50_spill] sm:$0xff] %v8093_v49  ;;  %v8103_v54 = vor.u32 %v6566_v8, %v6006_v41  ;;  %v6611_v8 = vld [vmem:[#allocation10 + $0x3d4] sm:$0xf] }
 0x2b4   :  { %3597 = vmatpush.bf16.msra.mxu0 %v8074_v62  ;;  %9132 = vst [vmem:[#allocation49_spill] sm:$0xff] %v8089_v32  ;;  %3623 = vmatpush.bf16.msra.mxu2 %v8083_v52  ;;  %v6490_v62 = vld [vmem:[#allocation10 + $0xc] sm:$0xf]  ;;  %v6543_v52 = vld [vmem:[#allocation10 + $0x1ac] sm:$0xf0] }
 0x2b5   :  { %9135 = vst [vmem:[#allocation54_spill] sm:$0xff] %v8098_v10  ;;  %v8109_v15 = vor.u32 %v6490_v62, %v5720_v33  ;;  %v8116_v41 = vor.u32 %v6543_v52, %v5918_v22  ;;  %v6539_v33 = vld [vmem:[#allocation10 + $0x194] sm:$0xf]  ;;  %v6174_v52 = vld [vmem:[#allocation10 + $0x390] sm:$0xf] }
 0x2b6   :  { %3609 = vmatpush.bf16.msra.mxu1 %v8077_v34  ;;  %3635 = vmatpush.bf16.msra.mxu3 %v8081_v37  ;;  %v5952_v34 = vld [vmem:[#allocation10 + $0x1f0] sm:$0xf0]  ;;  %v8101_v37 = vor.u32 %v6551_v60, %v5950_v40  ;;  %9137 = vst [vmem:[#allocation60_spill] sm:$0xff] %v8103_v54 }
 0x2b7   :  { %9138 = vst [vmem:[#allocation61_spill] sm:$0xff] %v8107_v0  ;;  %v8111_v40 = vor.u32 %v6547_v11, %v5952_v34  ;;  %v6208_v60 = vld [vmem:[#allocation10 + $0x3f0] sm:$0xf0]  ;;  %v8122_v34 = vor.u32 %v6554_v25, %v5976_v21  ;;  %v5886_v11 = vld [vmem:[#allocation10 + $0x150] sm:$0xf] }
 0x2b8   :  { %3598 = vmatpush.bf16.msra.mxu0 %v8086_v58  ;;  %9136 = vst [vmem:[#allocation57_spill] sm:$0xff] %v8101_v37  ;;  %3624 = vmatpush.bf16.msra.mxu2 %v8095_v55  ;;  %v6558_v58 = vld [vmem:[#allocation10 + $0x224] sm:$0xf0]  ;;  %v5920_v62 = vld [vmem:[#allocation10 + $0x1b0] sm:$0xf0] }
 0x2b9   :  { %9139 = vst [vmem:[#allocation43_spill] sm:$0xff] %v8109_v15  ;;  %v8118_v18 = vor.u32 %v6558_v58, %v5974_v19  ;;  %v6607_v58 = vld [vmem:[#allocation10 + $0x3ac] sm:$0xf0]  ;;  %v8130_v22 = vor.u32 %v6539_v33, %v5920_v62  ;;  %v6603_v19 = vld [vmem:[#allocation10 + $0x394] sm:$0xf] }
 0x2ba   :  { %3610 = vmatpush.bf16.msra.mxu1 %v8089_v32  ;;  %3636 = vmatpush.bf16.msra.mxu3 %v8093_v49  ;;  %v6615_v32 = vld [vmem:[#allocation10 + $0x3ec] sm:$0xf0]  ;;  %9140 = vst [vmem:[#allocation62_spill] sm:$0xff] %v8111_v40  ;;  %v6531_v21 = vld [vmem:[#allocation10 + $0x154] sm:$0xf]  ;;  %v8138_v25 = vor.u32 %v6607_v58, %v6174_v52 }
 0x2bb   :  { %9141 = vst [vmem:[#allocation47_spill] sm:$0xff] %v8116_v41  ;;  %v8124_v17 = vor.u32 %v6615_v32, %v6206_v28  ;;  %v5888_v32 = vld [vmem:[#allocation10 + $0x170] sm:$0xf0]  ;;  %v8142_v33 = vpop.f32.mrf.mxu0 }
 0x2bc   :  { %3599 = vmatpush.bf16.msra.mxu0 %v8098_v10  ;;  %9142 = vst [vmem:[#allocation66_spill] sm:$0xff] %v8118_v18  ;;  %3625 = vmatpush.bf16.msra.mxu2 %v8109_v15  ;;  %v6535_v10 = vld [vmem:[#allocation10 + $0x16c] sm:$0xf0]  ;;  %v6595_v52 = vld [vmem:[#allocation10 + $0x354] sm:$0xf] }
 0x2bd   :  { %9143 = vst [vmem:[#allocation51_spill] sm:$0xff] %v8122_v34  ;;  %v8134_v28 = vor.u32 %v6535_v10, %v5886_v11  ;;  %v6142_v10 = vld [vmem:[#allocation10 + $0x350] sm:$0xf]  ;;  %v6144_v58 = vld [vmem:[#allocation10 + $0x370] sm:$0xf0] }
 0x2be   :  { %3611 = vmatpush.bf16.msra.mxu1 %v8103_v54  ;;  %3637 = vmatpush.bf16.msra.mxu3 %v8107_v0  ;;  %9144 = vst [vmem:[#allocation70_spill] sm:$0xff] %v8124_v17  ;;  %v6176_v0 = vld [vmem:[#allocation10 + $0x3b0] sm:$0xf0]  ;;  %v6599_v11 = vld [vmem:[#allocation10 + $0x36c] sm:$0xf0] }
 0x2bf   :  { %3600 = vmatmul.bf16.vlgmr.msra.gmra.mxu0 %v9000_v1  ;;  %9146 = vst [vmem:[#allocation76_spill] sm:$0xff] %v8130_v22  ;;  %3626 = vmatmul.bf16.vlgmr.msra.gmra.mxu2 %v9000_v1  ;;  %v8144_v62 = vor.u32 %v6603_v19, %v6176_v0  ;;  %v8155_v0 = vor.u32 %v6599_v11, %v6142_v10  ;;  %v5822_v19 = vld [vmem:[#allocation10 + $0xd0] sm:$0xf]  ;;  %v6515_v11 = vld [vmem:[#allocation10 + $0xd4] sm:$0xf] }
 0x2c0   :  { %3644 = vmatpush.bf16.msrb.mxu0 %v8101_v37  ;;  %3670 = vmatpush.bf16.msrb.mxu2 %v8111_v40  ;;  %v8127_v37 = vor.u32 %v6611_v8, %v6208_v60  ;;  %9147 = vst [vmem:[#allocation58_spill] sm:$0xff] %v8134_v28  ;;  %v5854_v8 = vld [vmem:[#allocation10 + $0x110] sm:$0xf]  ;;  %v5856_v40 = vld [vmem:[#allocation10 + $0x130] sm:$0xf0] }
 0x2c1   :  { %9148 = vst [vmem:[#allocation80_spill] sm:$0xff] %v8138_v25  ;;  %v6527_v60 = vld [vmem:[#allocation10 + $0x12c] sm:$0xf0]  ;;  %v6491_v15 = vld [vmem:[#allocation10 + $0x14] sm:$0xf] }
 0x2c2   :  { %9145 = vst [vmem:[#allocation55_spill] sm:$0xff] %v8127_v37  ;;  %3612 = vmatpush.bf16.msra.mxu1 %v8118_v18  ;;  %3638 = vmatpush.bf16.msra.mxu3 %v8122_v34  ;;  %v6014_v18 = vld [vmem:[#allocation10 + $0x250] sm:$0xf]  ;;  %v6548_v54 = vld [vmem:[#allocation10 + $0x1dc] sm:$0xf] }
 0x2c3   :  { %9149 = vst [vmem:[#allocation64_spill] sm:$0xff] %v8142_v33  ;;  %v6519_v33 = vld [vmem:[#allocation10 + $0xec] sm:$0xf0] }
 0x2c4   :  { %3645 = vmatpush.bf16.msrb.mxu0 %v8116_v41  ;;  %9150 = vst [vmem:[#allocation84_spill] sm:$0xff] %v8144_v62  ;;  %3671 = vmatpush.bf16.msrb.mxu2 %v8130_v22  ;;  %v8148_v41 = vor.u32 %v6531_v21, %v5888_v32  ;;  %v8158_v21 = vor.u32 %v6595_v52, %v6144_v58  ;;  %v6110_v32 = vld [vmem:[#allocation10 + $0x310] sm:$0xf]  ;;  %v8169_v52 = vpop.f32.mrf.mxu1 }
 0x2c5   :  { %3613 = vmatmul.bf16.vlgmr.msra.gmra.mxu1 %v9000_v1  ;;  %3639 = vmatmul.bf16.vlgmr.msra.gmra.mxu3 %v9000_v1  ;;  %9153 = vst [vmem:[#allocation88_spill] sm:$0xff] %v8155_v0  ;;  %v6591_v22 = vld [vmem:[#allocation10 + $0x32c] sm:$0xf0]  ;;  %v8166_v10 = vor.u32 %v6519_v33, %v5822_v19  ;;  %v6579_v19 = vld [vmem:[#allocation10 + $0x2d4] sm:$0xf] }
 0x2c6   :  { %3657 = vmatpush.bf16.msrb.mxu1 %v8124_v17  ;;  %3683 = vmatpush.bf16.msrb.mxu3 %v8127_v37  ;;  %9151 = vst [vmem:[#allocation68_spill] sm:$0xff] %v8148_v41  ;;  %v8152_v37 = vor.u32 %v6527_v60, %v5854_v8  ;;  %v6523_v17 = vld [vmem:[#allocation10 + $0x114] sm:$0xf]  ;;  %v8171_v58 = vor.u32 %v6591_v22, %v6110_v32 }
 0x2c7   :  { %9154 = vst [vmem:[#allocation63_spill] sm:$0xff] %v8158_v21  ;;  %v8161_v34 = vor.u32 %v6523_v17, %v5856_v40  ;;  %v6587_v8 = vld [vmem:[#allocation10 + $0x314] sm:$0xf]  ;;  %v8174_v40 = vpop.f32.mrf.mxu0 }
 0x2c8   :  { %3646 = vmatpush.bf16.msrb.mxu0 %v8134_v28  ;;  %9152 = vst [vmem:[#allocation44_spill] sm:$0xff] %v8152_v37  ;;  %3672 = vmatpush.bf16.msrb.mxu2 %v8148_v41  ;;  %v6112_v60 = vld [vmem:[#allocation10 + $0x330] sm:$0xf0]  ;;  %v8164_v28 = vpop.f32.mrf.mxu2  ;;  %v6511_v41 = vld [vmem:[#allocation10 + $0xac] sm:$0xf0] }
 0x2c9   :  { %9155 = vst [vmem:[#allocation72_spill] sm:$0xff] %v8161_v34  ;;  %v8176_v17 = vor.u32 %v6587_v8, %v6112_v60  ;;  %v6507_v32 = vld [vmem:[#allocation10 + $0x94] sm:$0xf]  ;;  %v5758_v8 = vld [vmem:[#allocation10 + $0x50] sm:$0xf] }
 0x2ca   :  { %3658 = vmatpush.bf16.msrb.mxu1 %v8138_v25  ;;  %3684 = vmatpush.bf16.msrb.mxu3 %v8144_v62  ;;  %9156 = vst [vmem:[#allocation48_spill] sm:$0xff] %v8164_v28  ;;  %v5824_v25 = vld [vmem:[#allocation10 + $0xf0] sm:$0xf0]  ;;  %v5790_v62 = vld [vmem:[#allocation10 + $0x90] sm:$0xf] }
 0x2cb   :  { %9157 = vst [vmem:[#allocation67_spill] sm:$0xff] %v8166_v10  ;;  %v6583_v28 = vld [vmem:[#allocation10 + $0x2ec] sm:$0xf0]  ;;  %v8179_v33 = vor.u32 %v6515_v11, %v5824_v25  ;;  %v8182_v22 = vor.u32 %v6511_v41, %v5790_v62  ;;  %v6571_v62 = vld [vmem:[#allocation10 + $0x294] sm:$0xf] }
 0x2cc   :  { %3647 = vmatpush.bf16.msrb.mxu0 %v8152_v37  ;;  %9158 = vst [vmem:[#allocation73_spill] sm:$0xff] %v8169_v52  ;;  %v6078_v37 = vld [vmem:[#allocation10 + $0x2d0] sm:$0xf]  ;;  %3673 = vmatpush.bf16.msrb.mxu2 %v8161_v34  ;;  %v5792_v52 = vld [vmem:[#allocation10 + $0xb0] sm:$0xf0]  ;;  %v8190_v34 = vpop.f32.mrf.mxu3 }
 0x2cd   :  { %9159 = vst [vmem:[#allocation52_spill] sm:$0xff] %v8171_v58  ;;  %v6503_v60 = vld [vmem:[#allocation10 + $0x6c] sm:$0xf0]  ;;  %v8193_v41 = vor.u32 %v6507_v32, %v5792_v52  ;;  %v5958_v52 = vld [vmem:[#allocation10 + $0x1d8] sm:$0xf] }
 0x2ce   :  { %3659 = vmatpush.bf16.msrb.mxu1 %v8155_v0  ;;  %3685 = vmatpush.bf16.msrb.mxu3 %v8158_v21  ;;  %9160 = vst [vmem:[#allocation71_spill] sm:$0xff] %v8174_v40  ;;  %v6080_v0 = vld [vmem:[#allocation10 + $0x2f0] sm:$0xf0]  ;;  %v8185_v21 = vor.u32 %v6583_v28, %v6078_v37  ;;  %v6046_v25 = vld [vmem:[#allocation10 + $0x290] sm:$0xf]  ;;  %v8198_v28 = vor.u32 %v6503_v60, %v5758_v8 }
 0x2cf   :  { %9161 = vst [vmem:[#allocation78_spill] sm:$0xff] %v8176_v17  ;;  %v8188_v40 = vor.u32 %v6579_v19, %v6080_v0  ;;  %v6575_v11 = vld [vmem:[#allocation10 + $0x2ac] sm:$0xf0]  ;;  %v8201_v0 = vpop.f32.mrf.mxu1  ;;  %v8208_v8 = vpop.f32.mrf.mxu0 }
 0x2d0   :  { %9162 = vst [vmem:[#allocation56_spill] sm:$0xff] %v8179_v33  ;;  %3648 = vmatpush.bf16.msrb.mxu0 %v8166_v10  ;;  %3674 = vmatpush.bf16.msrb.mxu2 %v8179_v33  ;;  %v6048_v10 = vld [vmem:[#allocation10 + $0x2b0] sm:$0xf0]  ;;  %v8196_v37 = vpop.f32.mrf.mxu2  ;;  %v8203_v19 = vor.u32 %v6575_v11, %v6046_v25  ;;  %v6495_v33 = vld [vmem:[#allocation10 + $0x2c] sm:$0xf0] }
 0x2d1   :  { %9163 = vst [vmem:[#allocation77_spill] sm:$0xff] %v8182_v22  ;;  %v8206_v32 = vor.u32 %v6571_v62, %v6048_v10  ;;  %v5926_v11 = vld [vmem:[#allocation10 + $0x198] sm:$0xf] }
 0x2d2   :  { %3660 = vmatpush.bf16.msrb.mxu1 %v8171_v58  ;;  %9164 = vst [vmem:[#allocation82_spill] sm:$0xff] %v8185_v21  ;;  %3686 = vmatpush.bf16.msrb.mxu3 %v8176_v17  ;;  %v6499_v58 = vld [vmem:[#allocation10 + $0x54] sm:$0xf] }
 0x2d3   :  { %9165 = vst [vmem:[#allocation59_spill] sm:$0xff] %v8188_v40  ;;  %v5760_v17 = vld [vmem:[#allocation10 + $0x70] sm:$0xf0] }
 0x2d4   :  { %9166 = vst [vmem:[#allocation81_spill] sm:$0xff] %v8190_v34  ;;  %3649 = vmatpush.bf16.msrb.mxu0 %v8182_v22  ;;  %v5726_v34 = vld [vmem:[#allocation10 + $0x10] sm:$0xf]  ;;  %v6552_v22 = vld [vmem:[#allocation10 + $0x1f4] sm:$0xf0]  ;;  %3675 = vmatpush.bf16.msrb.mxu2 %v8193_v41  ;;  %v8211_v60 = vor.u32 %v6499_v58, %v5760_v17 }
 0x2d5   :  { %9167 = vst [vmem:[#allocation86_spill] sm:$0xff] %v8193_v41  ;;  %v8214_v25 = vor.u32 %v6495_v33, %v5726_v34  ;;  %v8217_v10 = vor.u32 %v6552_v22, %v5958_v52  ;;  %v5960_v41 = vld [vmem:[#allocation10 + $0x1f8] sm:$0xf0]  ;;  %v5982_v17 = vld [vmem:[#allocation10 + $0x210] sm:$0xf]  ;;  %v8224_v33 = vpop.f32.mrf.mxu3 }
 0x2d6   :  { %9168 = vst [vmem:[#allocation65_spill] sm:$0xff] %v8196_v37  ;;  %3661 = vmatpush.bf16.msrb.mxu1 %v8185_v21  ;;  %3687 = vmatpush.bf16.msrb.mxu3 %v8188_v40  ;;  %v6567_v37 = vld [vmem:[#allocation10 + $0x26c] sm:$0xf0]  ;;  %v6563_v21 = vld [vmem:[#allocation10 + $0x254] sm:$0xf] }
 0x2d7   :  { %9169 = vst [vmem:[#allocation85_spill] sm:$0xff] %v8198_v28  ;;  %v5728_v40 = vld [vmem:[#allocation10 + $0x30] sm:$0xf0]  ;;  %v8219_v62 = vor.u32 %v6567_v37, %v6014_v18  ;;  %v6214_v52 = vld [vmem:[#allocation10 + $0x3d8] sm:$0xf]  ;;  %v8230_v37 = vor.u32 %v6548_v54, %v5960_v41  ;;  %v8247_v49 = vpop.f32.mrf.mxu0 }
 0x2d8   :  { %9170 = vst [vmem:[#allocation69_spill] sm:$0xff] %v8201_v0  ;;  %v6016_v0 = vld [vmem:[#allocation10 + $0x270] sm:$0xf0]  ;;  %3650 = vmatpush.bf16.msrb.mxu0 %v8198_v28  ;;  %v6559_v28 = vld [vmem:[#allocation10 + $0x22c] sm:$0xf0]  ;;  %3676 = vmatpush.bf16.msrb.mxu2 %v8211_v60  ;;  %v8227_v55 = vor.u32 %v6491_v15, %v5728_v40 }
 0x2d9   :  { %9171 = vst [vmem:[#allocation89_spill] sm:$0xff] %v8203_v19  ;;  %v8222_v58 = vor.u32 %v6563_v21, %v6016_v0  ;;  %v6555_v34 = vld [vmem:[#allocation10 + $0x214] sm:$0xf]  ;;  %v6616_v18 = vld [vmem:[#allocation10 + $0x3f4] sm:$0xf0]  ;;  %v8234_v21 = vpop.f32.mrf.mxu1  ;;  %v8236_v0 = vpop.f32.mrf.mxu2  ;;  %v8240_v15 = vor.u32 %v6559_v28, %v5982_v17 }
 0x2da   :  { %9172 = vst [vmem:[#allocation93_spill] sm:$0xff] %v8206_v32  ;;  %3662 = vmatpush.bf16.msrb.mxu1 %v8203_v19  ;;  %3688 = vmatpush.bf16.msrb.mxu3 %v8206_v32  ;;  %v5984_v22 = vld [vmem:[#allocation10 + $0x230] sm:$0xf0]  ;;  %v6612_v19 = vld [vmem:[#allocation10 + $0x3dc] sm:$0xf]  ;;  %v8245_v41 = vor.u32 %v6616_v18, %v6214_v52 }
 0x2db   :  { %9173 = vst [vmem:[#allocation74_spill] sm:$0xff] %v8208_v8  ;;  %v6544_v8 = vld [vmem:[#allocation10 + $0x1b4] sm:$0xf0]  ;;  %v6216_v32 = vld [vmem:[#allocation10 + $0x3f8] sm:$0xf0]  ;;  %v8243_v54 = vor.u32 %v6555_v34, %v5984_v22 }
 0x2dc   :  { %9174 = vst [vmem:[#allocation91_spill] sm:$0xff] %v8211_v60  ;;  %3651 = vmatpush.bf16.msrb.mxu0 %v8214_v25  ;;  %v6540_v40 = vld [vmem:[#allocation10 + $0x19c] sm:$0xf]  ;;  %3677 = vmatpush.bf16.msrb.mxu2 %v8227_v55  ;;  %v6182_v28 = vld [vmem:[#allocation10 + $0x398] sm:$0xf] }
 0x2dd   :  { %9175 = vst [vmem:[#allocation75_spill] sm:$0xff] %v8214_v25  ;;  %v5928_v60 = vld [vmem:[#allocation10 + $0x1b8] sm:$0xf0]  ;;  %v5894_v25 = vld [vmem:[#allocation10 + $0x158] sm:$0xf] }
 0x2de   :  { %9176 = vst [vmem:[#allocation92_spill] sm:$0xff] %v8217_v10  ;;  %3663 = vmatpush.bf16.msrb.mxu1 %v8219_v62  ;;  %3689 = vmatpush.bf16.msrb.mxu3 %v8222_v58  ;;  %v6604_v17 = vld [vmem:[#allocation10 + $0x39c] sm:$0xf] }
 0x2df   :  { %9177 = vst [vmem:[#allocation79_spill] sm:$0xff] %v8219_v62  ;;  %v8250_v62 = vor.u32 %v6612_v19, %v6216_v32  ;;  %3652 = vmatmul.bf16.vlgmr.msrb.gmra.mxu0 %v9000_v1  ;;  %v6184_v34 = vld [vmem:[#allocation10 + $0x3b8] sm:$0xf0]  ;;  %v5862_v32 = vld [vmem:[#allocation10 + $0x118] sm:$0xf]  ;;  %3678 = vmatmul.bf16.vlgmr.msrb.gmra.mxu2 %v9000_v1 }
 0x2e0   :  { %9178 = vst [vmem:[#allocation83_spill] sm:$0xff] %v8222_v58  ;;  %3696 = vmatpush.bf16.msra.mxu0 %v8217_v10  ;;  %v6536_v10 = vld [vmem:[#allocation10 + $0x174] sm:$0xf0]  ;;  %3722 = vmatpush.bf16.msra.mxu2 %v8230_v37  ;;  %v6532_v52 = vld [vmem:[#allocation10 + $0x15c] sm:$0xf] }
 0x2e1   :  { %9179 = vst [vmem:[#allocation87_spill] sm:$0xff] %v8224_v33  ;;  %v8238_v33 = vor.u32 %v6544_v8, %v5926_v11  ;;  %v6608_v8 = vld [vmem:[#allocation10 + $0x3b4] sm:$0xf0]  ;;  %v8254_v11 = vor.u32 %v6540_v40, %v5928_v60  ;;  %v8258_v22 = vor.u32 %v6536_v10, %v5894_v25  ;;  %v5896_v18 = vld [vmem:[#allocation10 + $0x178] sm:$0xf0]  ;;  %v8270_v40 = vpop.f32.mrf.mxu3  ;;  %v8273_v25 = vor.u32 %v6604_v17, %v6184_v34  ;;  %v2619_v17 = vpop.f32.mrf.mxu2 }
 0x2e2   :  { %9180 = vst [vmem:[#allocation90_spill] sm:$0xff] %v8227_v55  ;;  %3664 = vmatpush.bf16.msrb.mxu1 %v8240_v15  ;;  %3690 = vmatpush.bf16.msrb.mxu3 %v8243_v54  ;;  %v8262_v19 = vor.u32 %v6608_v8, %v6182_v28  ;;  %v8267_v60 = vld [vmem:[%s8798_s7] sm:$0xff]  ;;  %v8278_v8 = vor.u32 %v6532_v52, %v5896_v18  ;;  %v5864_v58 = vld [vmem:[#allocation10 + $0x138] sm:$0xf0]  ;;  %v2645_v55 = vpop.f32.mrf.mxu0 }
 0x2e3   :  { %9181 = vst [vmem:[#allocation94_spill] sm:$0xff] %v8230_v37  ;;  %v6150_v10 = vld [vmem:[#allocation10 + $0x358] sm:$0xf]  ;;  %v8949_v28 = vperm.slane %v8267_v60, 3 }
 0x2e4   :  { %9182 = vst [vmem:[#allocation95_spill] sm:$0xff] %v8234_v21  ;;  %3697 = vmatpush.bf16.msra.mxu0 %v8238_v33  ;;  %3723 = vmatpush.bf16.msra.mxu2 %v8254_v11  ;;  %v5830_v18 = vld [vmem:[#allocation10 + $0xd8] sm:$0xf] }
 0x2e5   :  { %9183 = vst [vmem:[#allocation96_spill] sm:$0xff] %v8236_v0  ;;  %3665 = vmatmul.bf16.vlgmr.msrb.gmra.mxu1 %v9000_v1  ;;  %3691 = vmatmul.bf16.vlgmr.msrb.gmra.mxu3 %v9000_v1  ;;  %v2620_v37 = vadd.f32 %v2619_v17, %v8949_v28  ;;  %v6120_v0 = vld [vmem:[#allocation10 + $0x338] sm:$0xf0]  ;;  %v1872_v17 = vperm.slane %v8267_v60, 4 }
 0x2e6   :  { %9184 = vst [vmem:[#allocation97_spill] sm:$0xff] %v8238_v33  ;;  %3709 = vmatpush.bf16.msra.mxu1 %v8245_v41  ;;  %3735 = vmatpush.bf16.msra.mxu3 %v8250_v62  ;;  %v6524_v33 = vld [vmem:[#allocation10 + $0x11c] sm:$0xf] }
 0x2e7   :  { %9185 = vst [vmem:[#allocation98_spill] sm:$0xff] %v8240_v15  ;;  %v6152_v15 = vld [vmem:[#allocation10 + $0x378] sm:$0xf0] }
 0x2e8   :  { %9186 = vst [vmem:[#allocation99_spill] sm:$0xff] %v8243_v54  ;;  %v6600_v54 = vld [vmem:[#allocation10 + $0x374] sm:$0xf0]  ;;  %3698 = vmatpush.bf16.msra.mxu0 %v8258_v22  ;;  %3724 = vmatpush.bf16.msra.mxu2 %v8278_v8  ;;  %v5832_v28 = vld [vmem:[#allocation10 + $0xf8] sm:$0xf0] }
 0x2e9   :  { %9187 = vst [vmem:[#allocation100_spill] sm:$0xff] %v8245_v41  ;;  %v6596_v41 = vld [vmem:[#allocation10 + $0x35c] sm:$0xf]  ;;  %v8289_v52 = vor.u32 %v6600_v54, %v6150_v10 }
 0x2ea   :  { %9188 = vst [vmem:[#allocation101_spill] sm:$0xff] %v8247_v49  ;;  %v6528_v49 = vld [vmem:[#allocation10 + $0x134] sm:$0xf0]  ;;  %3710 = vmatpush.bf16.msra.mxu1 %v8262_v19  ;;  %3736 = vmatpush.bf16.msra.mxu3 %v8273_v25  ;;  %v6516_v10 = vld [vmem:[#allocation10 + $0xdc] sm:$0xf] }
 0x2eb   :  { %9189 = vst [vmem:[#allocation102_spill] sm:$0xff] %v8250_v62  ;;  %v8282_v62 = vpop.f32.mrf.mxu1  ;;  %v8284_v34 = vor.u32 %v6528_v49, %v5862_v32  ;;  %v8295_v49 = vor.u32 %v6524_v33, %v5864_v58  ;;  %v6588_v32 = vld [vmem:[#allocation10 + $0x31c] sm:$0xf]  ;;  %v2633_v58 = vpop.f32.mrf.mxu3 }
 0x2ec   :  { %9190 = vst [vmem:[#allocation103_spill] sm:$0xff] %v8254_v11  ;;  %v6520_v11 = vld [vmem:[#allocation10 + $0xf4] sm:$0xf0]  ;;  %v8305_v33 = vor.u32 %v6588_v32, %v6120_v0  ;;  %v8307_v21 = vadd.f32 %v2633_v58, %v2620_v37 }
 0x2ed   :  { %9191 = vst [vmem:[#allocation104_spill] sm:$0xff] %v8258_v22  ;;  %v8292_v22 = vor.u32 %v6596_v41, %v6152_v15  ;;  %3699 = vmatpush.bf16.msra.mxu0 %v8284_v34  ;;  %v8299_v54 = vor.u32 %v6520_v11, %v5830_v18  ;;  %v5798_v41 = vld [vmem:[#allocation10 + $0x98] sm:$0xf]  ;;  %3725 = vmatpush.bf16.msra.mxu2 %v8295_v49  ;;  %v6580_v18 = vld [vmem:[#allocation10 + $0x2dc] sm:$0xf] }
 0x2ee   :  { %9192 = vst [vmem:[#allocation105_spill] sm:$0xff] %v8262_v19  ;;  %3711 = vmatpush.bf16.msra.mxu1 %v8289_v52  ;;  %v6086_v19 = vld [vmem:[#allocation10 + $0x2d8] sm:$0xf]  ;;  %v8310_v11 = vor.u32 %v6516_v10, %v5832_v28  ;;  %v1873_v28 = vperm.slane %v8267_v60, 5 }
 0x2ef   :  { %9193 = vst [vmem:[#allocation106_spill] sm:$0xff] %v8270_v40  ;;  %v6592_v40 = vld [vmem:[#allocation10 + $0x334] sm:$0xf0]  ;;  %3737 = vmatpush.bf16.msra.mxu3 %v8292_v22 }
 0x2f0   :  { %9194 = vst [vmem:[#allocation107_spill] sm:$0xff] %v8273_v25  ;;  %v6512_v25 = vld [vmem:[#allocation10 + $0xb4] sm:$0xf0] }
 0x2f1   :  { %9195 = vst [vmem:[#allocation108_spill] sm:$0xff] %v8278_v8  ;;  %v6584_v8 = vld [vmem:[#allocation10 + $0x2f4] sm:$0xf0]  ;;  %3700 = vmatpush.bf16.msra.mxu0 %v8299_v54  ;;  %3726 = vmatpush.bf16.msra.mxu2 %v8310_v11 }
 0x2f2   :  { %9196 = vst [vmem:[#allocation109_spill] sm:$0xff] %v8282_v62  ;;  %v6118_v62 = vld [vmem:[#allocation10 + $0x318] sm:$0xf]  ;;  %v8316_v32 = vor.u32 %v6584_v8, %v6086_v19  ;;  %v6572_v19 = vld [vmem:[#allocation10 + $0x29c] sm:$0xf] }
 0x2f3   :  { %9197 = vst [vmem:[#allocation110_spill] sm:$0xff] %v8284_v34  ;;  %v8302_v15 = vor.u32 %v6592_v40, %v6118_v62  ;;  %v6088_v34 = vld [vmem:[#allocation10 + $0x2f8] sm:$0xf0]  ;;  %v2673_v62 = vpop.f32.mrf.mxu2  ;;  %v8313_v40 = vor.u32 %v6512_v25, %v5798_v41  ;;  %v2659_v0 = vpop.f32.mrf.mxu1  ;;  %v5766_v37 = vld [vmem:[#allocation10 + $0x58] sm:$0xf]  ;;  %3738 = vmatpush.bf16.msra.mxu3 %v8305_v33 }
 0x2f4   :  { %9198 = vst [vmem:[#allocation111_spill] sm:$0xff] %v8289_v52  ;;  %v2646_v52 = vadd.f32 %v2645_v55, %v1872_v17  ;;  %v6504_v58 = vld [vmem:[#allocation10 + $0x74] sm:$0xf0]  ;;  %v2647_v55 = vpop.f32.mrf.mxu0  ;;  %v8322_v10 = vor.u32 %v6580_v18, %v6088_v34  ;;  %v6056_v8 = vld [vmem:[#allocation10 + $0x2b8] sm:$0xf0] }
 0x2f5   :  { %9199 = vst [vmem:[#allocation112_spill] sm:$0xff] %v8292_v22  ;;  %v6508_v22 = vld [vmem:[#allocation10 + $0x9c] sm:$0xf]  ;;  %3712 = vmatpush.bf16.msra.mxu1 %v8302_v15  ;;  %v6054_v25 = vld [vmem:[#allocation10 + $0x298] sm:$0xf]  ;;  %3701 = vmatpush.bf16.msra.mxu0 %v8313_v40 }
 0x2f6   :  { %9200 = vst [vmem:[#allocation113_spill] sm:$0xff] %v8295_v49  ;;  %v6576_v41 = vld [vmem:[#allocation10 + $0x2b4] sm:$0xf0]  ;;  %v8325_v49 = vor.u32 %v6508_v22, %v5800_v24 }
 0x2f7   :  { %9201 = vst [vmem:[#allocation114_spill] sm:$0xff] %v8299_v54  ;;  %v2648_v54 = vadd.f32 %v2647_v55, %v1872_v17  ;;  %v5734_v34 = vld [vmem:[#allocation10 + $0x18] sm:$0xf]  ;;  %3739 = vmatpush.bf16.msra.mxu3 %v8322_v10  ;;  %v8334_v17 = vor.u32 %v6572_v19, %v6056_v8  ;;  %v2687_v55 = vpop.f32.mrf.mxu3 }
 0x2f8   :  { %9202 = vst [vmem:[#allocation115_spill] sm:$0xff] %v8302_v15  ;;  %v5768_v15 = vld [vmem:[#allocation10 + $0x78] sm:$0xf0]  ;;  %v6496_v18 = vld [vmem:[#allocation10 + $0x34] sm:$0xf0]  ;;  %3727 = vmatpush.bf16.msra.mxu2 %v8325_v49 }
 0x2f9   :  { %9203 = vst [vmem:[#allocation116_spill] sm:$0xff] %v8305_v33  ;;  %3713 = vmatpush.bf16.msra.mxu1 %v8316_v32  ;;  %v8331_v33 = vor.u32 %v6576_v41, %v6054_v25  ;;  %v6022_v24 = vld [vmem:[#allocation10 + $0x258] sm:$0xf]  ;;  %v8342_v41 = vor.u32 %v6496_v18, %v5734_v34  ;;  %v6556_v18 = vld [vmem:[#allocation10 + $0x21c] sm:$0xf] }
 0x2fa   :  { %9204 = vst [vmem:[#allocation117_spill] sm:$0xff] %v8307_v21  ;;  %v8318_v21 = vadd.f32 %v2659_v0, %v2646_v52  ;;  %v8328_v52 = vor.u32 %v6504_v58, %v5766_v37  ;;  %v6500_v0 = vld [vmem:[#allocation10 + $0x5c] sm:$0xf]  ;;  %v6568_v22 = vld [vmem:[#allocation10 + $0x274] sm:$0xf0] }
 0x2fb   :  { %9205 = vst [vmem:[#allocation118_spill] sm:$0xff] %v8310_v11  ;;  %v8337_v37 = vor.u32 %v6500_v0, %v5768_v15  ;;  %v6564_v58 = vld [vmem:[#allocation10 + $0x25c] sm:$0xf]  ;;  %v2675_v25 = vpop.f32.mrf.mxu2  ;;  %v2661_v19 = vpop.f32.mrf.mxu1  ;;  %3740 = vmatpush.bf16.msra.mxu3 %v8334_v17  ;;  %v6560_v0 = vld [vmem:[#allocation10 + $0x234] sm:$0xf0] }
 0x2fc   :  { %9206 = vst [vmem:[#allocation119_spill] sm:$0xff] %v8313_v40  ;;  %v6024_v40 = vld [vmem:[#allocation10 + $0x278] sm:$0xf0]  ;;  %3702 = vmatpush.bf16.msra.mxu0 %v8328_v52  ;;  %v2676_v8 = vadd.f32 %v2675_v25, %v1873_v28 }
 0x2fd   :  { %9207 = vst [vmem:[#allocation120_spill] sm:$0xff] %v8316_v32  ;;  %3714 = vmatpush.bf16.msra.mxu1 %v8331_v33  ;;  %v8345_v32 = vor.u32 %v6568_v22, %v6022_v24  ;;  %v8350_v15 = vor.u32 %v6564_v58, %v6024_v40  ;;  %3728 = vmatpush.bf16.msra.mxu2 %v8337_v37  ;;  %v9226_v24 = vld [vmem:[#allocation45_spill] sm:$0xff]  ;;  %v9227_v58 = vld [vmem:[#allocation46_spill] sm:$0xff] }
 0x2fe   :  { %9208 = vst [vmem:[#allocation121_spill] sm:$0xff] %v8318_v21  ;;  %v2674_v21 = vadd.f32 %v2673_v62, %v1873_v28  ;;  %v6492_v62 = vld [vmem:[#allocation10 + $0x1c] sm:$0xf] }
 0x2ff   :  { %9209 = vst [vmem:[#allocation122_spill] sm:$0xff] %v8322_v10  ;;  %v5736_v10 = vld [vmem:[#allocation10 + $0x38] sm:$0xf0]  ;;  %3741 = vmatpush.bf16.msra.mxu3 %v8350_v15  ;;  %v2689_v40 = vpop.f32.mrf.mxu3 }
 0x300   :  { %9210 = vst [vmem:[#allocation123_spill] sm:$0xff] %v8325_v49  ;;  %v8339_v11 = vadd.f32 %v2687_v55, %v2674_v21  ;;  %v8347_v49 = vadd.f32 %v2661_v19, %v2648_v54  ;;  %v5990_v21 = vld [vmem:[#allocation10 + $0x218] sm:$0xf]  ;;  %v8353_v34 = vor.u32 %v6492_v62, %v5736_v10  ;;  %v5992_v55 = vld [vmem:[#allocation10 + $0x238] sm:$0xf0]  ;;  %3703 = vmatpush.bf16.msra.mxu0 %v8342_v41  ;;  %v9228_v19 = vld [vmem:[#allocation42_spill] sm:$0xff] }
 0x301   :  { %3715 = vmatpush.bf16.msra.mxu1 %v8345_v32  ;;  %v8357_v28 = vor.u32 %v6560_v0, %v5990_v21  ;;  %v8361_v54 = vor.u32 %v6556_v18, %v5992_v55  ;;  %v8365_v10 = vadd.f32 %v2689_v40, %v2676_v8  ;;  %v9229_v21 = vld [vmem:[#allocation49_spill] sm:$0xff]  ;;  %v9230_v0 = vld [vmem:[#allocation50_spill] sm:$0xff]  ;;  %v4076_v55 = vld [vmem:[%s9232_s30] sm:$0x3] }
 0x302   :  { %3729 = vmatpush.bf16.msra.mxu2 %v8353_v34  ;;  %v9231_v18 = vld [vmem:[#allocation53_spill] sm:$0xff]  ;;  %v9233_v40 = vld [vmem:[#allocation54_spill] sm:$0xff]  ;;  %4080 = vperm.xlu0 %6635, %v4076_v55  }
 0x303   :  { %3704 = vmatmul.bf16.vlgmr.msra.gmra.mxu0 %v9000_v1  ;;  %3742 = vmatpush.bf16.msra.mxu3 %v8361_v54 }
 0x304   :  { %3814 = vmatpush.bf16.msrb.mxu0 %v7919_v47  ;;  %v2701_v47 = vpop.f32.mrf.mxu0 }
 0x305   :  { %3716 = vmatpush.bf16.msra.mxu1 %v8357_v28  ;;  %3730 = vmatmul.bf16.vlgmr.msra.gmra.mxu2 %v9000_v1 }
 0x306   :  { %3840 = vmatpush.bf16.msrb.mxu2 %v7921_v31  ;;  %3743 = vmatmul.bf16.vlgmr.msra.gmra.mxu3 %v9000_v1  ;;  %v1874_v31 = vperm.slane %v8267_v60, 6 }
 0x307   :  { %3853 = vmatpush.bf16.msrb.mxu3 %v7933_v53  ;;  %v1875_v53 = vperm.slane %v8267_v60, 7 }
 0x308   :  { %3815 = vmatpush.bf16.msrb.mxu0 %v7924_v61  ;;  %3717 = vmatmul.bf16.vlgmr.msra.gmra.mxu1 %v9000_v1  ;;  %v2702_v61 = vadd.f32 %v2701_v47, %v1874_v31  ;;  %v2715_v1 = vpop.f32.mrf.mxu1  ;;  %v9234_v47 = vld [vmem:[#allocation60_spill] sm:$0xff] }
 0x309   :  { %3827 = vmatpush.bf16.msrb.mxu1 %v7931_v42 }
 0x30a   :  { %3841 = vmatpush.bf16.msrb.mxu2 %v7927_v30  ;;  %v2729_v30 = vpop.f32.mrf.mxu2  ;;  %v8387_v42 = vadd.f32 %v2715_v1, %v2702_v61  ;;  %v9236_v1 = vld [vmem:[#allocation43_spill] sm:$0xff] }
 0x30b   :  { %3854 = vmatpush.bf16.msrb.mxu3 %v7945_v5  ;;  %v2743_v5 = vpop.f32.mrf.mxu3 }
 0x30c   :  { %3816 = vmatpush.bf16.msrb.mxu0 %v7937_v29  ;;  %v2703_v29 = vpop.f32.mrf.mxu0 }
 0x30d   :  { %3828 = vmatpush.bf16.msrb.mxu1 %v7943_v6  ;;  %v2730_v6 = vadd.f32 %v2729_v30, %v1875_v53  ;;  %v9237_v30 = vld [vmem:[#allocation66_spill] sm:$0xff] }
 0x30e   :  { %3842 = vmatpush.bf16.msrb.mxu2 %v7939_v43  ;;  %v2704_v43 = vadd.f32 %v2703_v29, %v1874_v31  ;;  %v9235_v31 = vld [vmem:[#allocation61_spill] sm:$0xff]  ;;  %v6991_v29 = vmov 1  }
 0x30f   :  { %3855 = vmatpush.bf16.msrb.mxu3 %v7959_v13  ;;  %6636 = vset.pattern.permute.xlu0 %v6991_v29  ;;  %v9246_v29 = vperm.slane %v8267_v60, 3 }
 0x310   :  { %3817 = vmatpush.bf16.msrb.mxu0 %v7950_v50  ;;  %v8396_v50 = vadd.f32 %v2743_v5, %v2730_v6  ;;  %4087 = vperm.xlu0 %6636, %v4076_v55  }
 0x311   :  { %3829 = vmatpush.bf16.msrb.mxu1 %v7957_v36 }
 0x312   :  { %3843 = vmatpush.bf16.msrb.mxu2 %v7953_v35  ;;  %v2717_v35 = vpop.f32.mrf.mxu1  ;;  %v2731_v36 = vpop.f32.mrf.mxu2 }
 0x313   :  { %3856 = vmatpush.bf16.msrb.mxu3 %v7971_v16  ;;  %v8400_v13 = vadd.f32 %v2717_v35, %v2704_v43  ;;  %v9211_v16 = vld [vmem:[#allocation27_spill] sm:$0xff] }
 0x314   :  { %3818 = vmatpush.bf16.msrb.mxu0 %v7962_v48  ;;  %v2732_v48 = vadd.f32 %v2731_v36, %v1875_v53  ;;  %v9238_v53 = vld [vmem:[#allocation51_spill] sm:$0xff] }
 0x315   :  { %3830 = vmatpush.bf16.msrb.mxu1 %v7969_v23 }
 0x316   :  { %3844 = vmatpush.bf16.msrb.mxu2 %v7965_v63  ;;  %v2745_v63 = vpop.f32.mrf.mxu3 }
 0x317   :  { %3857 = vmatpush.bf16.msrb.mxu3 %v7983_v9  ;;  %v8409_v23 = vadd.f32 %v2745_v63, %v2732_v48  ;;  %v1868_v63 = vperm.slane %v8267_v60, 0 }
 0x318   :  { %3819 = vmatpush.bf16.msrb.mxu0 %v7974_v3  ;;  %v9212_v3 = vld [vmem:[#allocation29_spill] sm:$0xff] }
 0x319   :  { %3831 = vmatpush.bf16.msrb.mxu1 %v7981_v51  ;;  %v9214_v51 = vld [vmem:[#allocation30_spill] sm:$0xff] }
 0x31a   :  { %3845 = vmatpush.bf16.msrb.mxu2 %v7977_v39  ;;  %v9213_v39 = vld [vmem:[#allocation31_spill] sm:$0xff] }
 0x31b   :  { %3858 = vmatpush.bf16.msrb.mxu3 %v7995_v4  ;;  %v9218_v4 = vld [vmem:[#allocation35_spill] sm:$0xff] }
 0x31c   :  { %3820 = vmatpush.bf16.msrb.mxu0 %v7986_v26  ;;  %v3549_v9 = vpop.f32.mrf.mxu0  ;;  %v9215_v26 = vld [vmem:[#allocation33_spill] sm:$0xff] }
 0x31d   :  { %3832 = vmatpush.bf16.msrb.mxu1 %v7993_v59  ;;  %v9217_v59 = vld [vmem:[#allocation28_spill] sm:$0xff] }
 0x31e   :  { %3846 = vmatpush.bf16.msrb.mxu2 %v7989_v44  ;;  %v9216_v44 = vld [vmem:[#allocation32_spill] sm:$0xff] }
 0x31f   :  { %3859 = vmatpush.bf16.msrb.mxu3 %v8009_v57 }
 0x320   :  { %3821 = vmatpush.bf16.msrb.mxu0 %v7998_v38  ;;  %v9219_v38 = vld [vmem:[#allocation37_spill] sm:$0xff] }
 0x321   :  { %3833 = vmatpush.bf16.msrb.mxu1 %v8007_v7 }
 0x322   :  { %3847 = vmatpush.bf16.msrb.mxu2 %v8001_v56  ;;  %v3562_v56 = vpop.f32.mrf.mxu1  ;;  %v3575_v57 = vpop.f32.mrf.mxu2 }
 0x323   :  { %3860 = vmatpush.bf16.msrb.mxu3 %v8022_v46  ;;  %v3563_v7 = vadd.f32 %v3562_v56, %v3549_v9  ;;  %v9223_v46 = vld [vmem:[#allocation41_spill] sm:$0xff] }
 0x324   :  { %3866 = vmatpush.bf16.msra.mxu0 %v8005_v12  ;;  %v9220_v12 = vld [vmem:[#allocation36_spill] sm:$0xff]  ;;  %v9240_v9 = vld [vmem:[#allocation73_spill] sm:$0xff] }
 0x325   :  { %3834 = vmatpush.bf16.msrb.mxu1 %v8019_v2  ;;  %v3551_v2 = vpop.f32.mrf.mxu0 }
 0x326   :  { %3892 = vmatpush.bf16.msra.mxu2 %v8011_v27  ;;  %v9221_v27 = vld [vmem:[#allocation34_spill] sm:$0xff] }
 0x327   :  { %3905 = vmatpush.bf16.msra.mxu3 %v8027_v45  ;;  %v9225_v45 = vld [vmem:[#allocation38_spill] sm:$0xff] }
 0x328   :  { %3867 = vmatpush.bf16.msra.mxu0 %v8017_v14  ;;  %v9222_v14 = vld [vmem:[#allocation39_spill] sm:$0xff]  ;;  %v3588_v22 = vpop.f32.mrf.mxu3 }
 0x329   :  { %3879 = vmatpush.bf16.msra.mxu1 %v8024_v20  ;;  %v9224_v20 = vld [vmem:[#allocation40_spill] sm:$0xff]  ;;  %v3589_v25 = vadd.f32 %v3588_v22, %v3575_v57  ;;  %v9243_v22 = vld [vmem:[#allocation121_spill] sm:$0xff] }
 0x32a   :  { %3893 = vmatpush.bf16.msra.mxu2 %v9211_v16  ;;  %v3564_v62 = vpop.f32.mrf.mxu1  ;;  %v3577_v8 = vpop.f32.mrf.mxu2 }
 0x32b   :  { %3906 = vmatpush.bf16.msra.mxu3 %v9214_v51 }
 0x32c   :  { %3868 = vmatpush.bf16.msra.mxu0 %v9212_v3  ;;  %v9239_v3 = vld [vmem:[#allocation64_spill] sm:$0xff] }
 0x32d   :  { %3880 = vmatpush.bf16.msra.mxu1 %v9213_v39  ;;  %v2534_v39 = vadd.f32 %v9239_v3, %v1868_v63 }
 0x32e   :  { %3894 = vmatpush.bf16.msra.mxu2 %v9215_v26 }
 0x32f   :  { %3907 = vmatpush.bf16.msra.mxu3 %v9218_v4  ;;  %v2548_v26 = vadd.f32 %v9240_v9, %v2534_v39  ;;  %v9241_v4 = vld [vmem:[#allocation48_spill] sm:$0xff] }
 0x330   :  { %3869 = vmatpush.bf16.msra.mxu0 %v9216_v44  ;;  %v3590_v61 = vpop.f32.mrf.mxu3  ;;  %v1869_v44 = vperm.slane %v8267_v60, 1 }
 0x331   :  { %3881 = vmatpush.bf16.msra.mxu1 %v9217_v59  ;;  %v3748_v59 = vadd.f32 %v3563_v7, %v2548_v26  ;;  %v9244_v7 = vld [vmem:[#allocation74_spill] sm:$0xff] }
 0x332   :  { %3895 = vmatpush.bf16.msra.mxu2 %v9219_v38  ;;  %v2562_v38 = vadd.f32 %v9241_v4, %v1869_v44 }
 0x333   :  { %3908 = vmatpush.bf16.msra.mxu3 %v9222_v14  ;;  %v3756_v56 = vmul.f32 0.5, %v3748_v59 }
 0x334   :  { %3870 = vmatpush.bf16.msra.mxu0 %v9220_v12  ;;  %v9242_v12 = vld [vmem:[#allocation81_spill] sm:$0xff] }
 0x335   :  { %3882 = vmatpush.bf16.msra.mxu1 %v9221_v27  ;;  %v2576_v57 = vadd.f32 %v9242_v12, %v2562_v38  ;;  %6683 = vtanh.f32 %v3756_v56 }
 0x336   :  { %3896 = vmatpush.bf16.msra.mxu2 %v9223_v46 }
 0x337   :  { %3909 = vmatpush.bf16.msra.mxu3 %v9226_v24  ;;  %v3749_v14 = vadd.f32 %v3589_v25, %v2576_v57  ;;  %v9245_v25 = vld [vmem:[#allocation95_spill] sm:$0xff] }
 0x338   :  { %3871 = vmatpush.bf16.msra.mxu0 %v9224_v20  ;;  %v1870_v20 = vperm.slane %v8267_v60, 2  ;;  %v4138_v60 = vld [vmem:[%s8803_s12 + $0x30] sm:$0xff] }
 0x339   :  { %3883 = vmatpush.bf16.msra.mxu1 %v9225_v45  ;;  %v3757_v2 = vmul.f32 0.5, %v3749_v14 }
 0x33a   :  { %3897 = vmatpush.bf16.msra.mxu2 %v9227_v58 }
 0x33b   :  { %3910 = vmatpush.bf16.msra.mxu3 %v9230_v0  ;;  %v6684_v24 = vpop.eup %6683  ;;  %6685 = vtanh.f32 %v3757_v2 }
 0x33c   :  { %3872 = vmatpush.bf16.msra.mxu0 %v9228_v19  ;;  %v3601_v43 = vpop.f32.mrf.mxu0  ;;  %v2590_v19 = vadd.f32 %v9244_v7, %v1870_v20  ;;  %v3764_v0 = vadd.f32 1.0, %v6684_v24 }
 0x33d   :  { %3884 = vmatpush.bf16.msra.mxu1 %v9229_v21 }
 0x33e   :  { %3898 = vmatpush.bf16.msra.mxu2 %v9231_v18  ;;  %v2604_v18 = vadd.f32 %v9245_v25, %v2590_v19 }
 0x33f   :  { %3911 = vmatpush.bf16.msra.mxu3 %v9235_v31 }
 0x340   :  { %3873 = vmatpush.bf16.msra.mxu0 %v9233_v40 }
 0x341   :  { %3885 = vmatpush.bf16.msra.mxu1 %v9234_v47  ;;  %v6686_v61 = vpop.eup %6685 }
 0x342   :  { %3899 = vmatpush.bf16.msra.mxu2 %v9236_v1  ;;  %v3614_v6 = vpop.f32.mrf.mxu1  ;;  %v3627_v35 = vpop.f32.mrf.mxu2  ;;  %v3768_v1 = vmul.f32 0.5, %v3764_v0 }
 0x343   :  { %3912 = vmatpush.bf16.msra.mxu3 %v9238_v53  ;;  %v3615_v8 = vadd.f32 %v3614_v6, %v3601_v43  ;;  %v3765_v6 = vadd.f32 1.0, %v6686_v61 }
 0x344   :  { %v3603_v5 = vpop.f32.mrf.mxu0 }
 0x345   :  { %3886 = vmatpush.bf16.msra.mxu1 %v9237_v30  ;;  %v3750_v31 = vadd.f32 %v3615_v8, %v2604_v18  ;;  %v9247_v5 = vld [vmem:[#allocation96_spill] sm:$0xff]  ;;  %v3769_v4 = vmul.f32 0.5, %v3765_v6 }
 0x347   :  { %v3758_v3 = vmul.f32 0.5, %v3750_v31 }
 0x348   :  { %v3640_v36 = vpop.f32.mrf.mxu3 }
 0x34a   :  { %v3616_v48 = vpop.f32.mrf.mxu1  ;;  %v3629_v16 = vpop.f32.mrf.mxu2 }
 0x34b   :  { %v2618_v48 = vadd.f32 %v9247_v5, %v9246_v29  ;;  %v3641_v16 = vadd.f32 %v3640_v36, %v3627_v35 }
 0x350   :  { %v3642_v51 = vpop.f32.mrf.mxu3 }
 0x351   :  { %v9248_v51 = vld [vmem:[#allocation106_spill] sm:$0xff] }
 0x352   :  { %v2632_v9 = vadd.f32 %v9248_v51, %v2618_v48  ;;  %v9251_v51 = vld [vmem:[#allocation47_spill] sm:$0xff] }
 0x354   :  { %v3751_v59 = vadd.f32 %v3641_v16, %v2632_v9  ;;  %v9249_v16 = vld [vmem:[#allocation57_spill] sm:$0xff]  ;;  %v9252_v9 = vld [vmem:[#allocation76_spill] sm:$0xff] }
 0x35c   :  { %v3653_v27 = vpop.f32.mrf.mxu0 }
 0x362   :  { %v3666_v46 = vpop.f32.mrf.mxu1  ;;  %v3679_v21 = vpop.f32.mrf.mxu2 }
 0x363   :  { %v3667_v45 = vadd.f32 %v3666_v46, %v3653_v27 }
 0x364   :  { %v3655_v62 = vpop.f32.mrf.mxu0 }
 0x365   :  { %v3752_v58 = vadd.f32 %v3667_v45, %v9243_v22 }
 0x367   :  { %6687 = vtanh.f32 %v3752_v58 }
 0x368   :  { %v3692_v55 = vpop.f32.mrf.mxu3 }
 0x369   :  { %v3693_v40 = vadd.f32 %v3692_v55, %v3679_v21 }
 0x36a   :  { %v3668_v47 = vpop.f32.mrf.mxu1  ;;  %v3681_v39 = vpop.f32.mrf.mxu2 }
 0x36b   :  { %v3753_v30 = vadd.f32 %v3693_v40, %v8339_v11  ;;  %v3759_v11 = vmul.f32 0.5, %v3751_v59  ;;  %v9253_v59 = vld [vmem:[#allocation70_spill] sm:$0xff] }
 0x36d   :  { %v6688_v53 = vpop.eup %6687  ;;  %6689 = vtanh.f32 %v3753_v30 }
 0x36e   :  { %v3784_v43 = vmul.f32 %v6688_v53, %v3768_v1  ;;  %6691 = vtanh.f32 %v3758_v3 }
 0x36f   :  { %6693 = vtanh.f32 %v3759_v11  ;;  %v4187_v11 = vld [vmem:[#allocation17 + $0x98] sm:$0xff] }
 0x370   :  { %v3694_v26 = vpop.f32.mrf.mxu3 }
 0x371   :  { %v3799_v26 = vlaneseq }
 0x373   :  { %v6690_v38 = vpop.eup %6689  ;;  %vm8493_vm2 = vcmp.lt.s32.totalorder %v3799_v26, 256  ;;  %v9294_v26 = vld [vmem:[#allocation113_spill] sm:$0xff] }
 0x374   :  { %v3785_v56 = vmul.f32 %v6690_v38, %v3769_v4  ;;  %v6692_v12 = vpop.eup %6691  ;;  %v9254_v4 = vld [vmem:[#allocation55_spill] sm:$0xff]  ;;  %v9255_v38 = vld [vmem:[#allocation58_spill] sm:$0xff] }
 0x375   :  { %v3766_v27 = vadd.f32 1.0, %v6692_v12  ;;  %v6694_v35 = vpop.eup %6693  ;;  %v9259_v12 = vld [vmem:[#allocation80_spill] sm:$0xff] }
 0x376   :  { %v3767_v24 = vadd.f32 1.0, %v6694_v35  ;;  %v9262_v35 = vld [vmem:[#allocation72_spill] sm:$0xff] }
 0x377   :  { %v3770_v36 = vmul.f32 0.5, %v3766_v27 }
 0x378   :  { %v3771_v8 = vmul.f32 0.5, %v3767_v24  ;;  %v9267_v24 = vld [vmem:[#allocation52_spill] sm:$0xff] }
 0x379   :  { %v3782_v58 = vmul.f32 0.0, %v3770_v36  ;;  %v9263_v36 = vld [vmem:[#allocation88_spill] sm:$0xff] }
 0x37a   :  { %v3783_v18 = vmul.f32 0.0, %v3771_v8  ;;  %v9272_v8 = vld [vmem:[#allocation59_spill] sm:$0xff] }
 0x37b   :  { %v8470_v7 = vadd.f32 %v3784_v43, %v3782_v58  ;;  %v9250_v43 = vld [vmem:[#allocation62_spill] sm:$0xff]  ;;  %v9269_v58 = vld [vmem:[#allocation77_spill] sm:$0xff] }
 0x37c   :  { %v8474_v47 = vadd.f32 %v3785_v56, %v3783_v18  ;;  %v9256_v56 = vld [vmem:[#allocation68_spill] sm:$0xff]  ;;  %v9276_v18 = vld [vmem:[#allocation93_spill] sm:$0xff] }
 0x380   :  { %v3705_v57 = vpop.f32.mrf.mxu0 }
 0x385   :  { %v3718_v14 = vpop.f32.mrf.mxu1 }
 0x386   :  { %v3719_v2 = vadd.f32 %v3718_v14, %v3705_v57  ;;  %v9260_v57 = vld [vmem:[#allocation84_spill] sm:$0xff] }
 0x387   :  { %v9261_v14 = vld [vmem:[#allocation44_spill] sm:$0xff] }
 0x388   :  { %v3754_v46 = vadd.f32 %v3719_v2, %v8387_v42  ;;  %v3707_v45 = vpop.f32.mrf.mxu0  ;;  %v3731_v22 = vpop.f32.mrf.mxu2  ;;  %v9264_v2 = vld [vmem:[#allocation63_spill] sm:$0xff] }
 0x389   :  { %v3744_v19 = vpop.f32.mrf.mxu3  ;;  %v9266_v45 = vld [vmem:[#allocation56_spill] sm:$0xff] }
 0x38a   :  { %v3774_v62 = vmul.f32 0.5, %v3754_v46  ;;  %v3745_v21 = vadd.f32 %v3744_v19, %v3731_v22  ;;  %v9265_v46 = vld [vmem:[#allocation67_spill] sm:$0xff]  ;;  %v9268_v22 = vld [vmem:[#allocation78_spill] sm:$0xff] }
 0x38b   :  { %v9271_v19 = vld [vmem:[#allocation82_spill] sm:$0xff] }
 0x38c   :  { %6695 = vtanh.f32 %v3774_v62  ;;  %v3755_v25 = vadd.f32 %v3745_v21, %v8396_v50  ;;  %v9270_v62 = vld [vmem:[#allocation86_spill] sm:$0xff]  ;;  %v9273_v21 = vld [vmem:[#allocation85_spill] sm:$0xff] }
 0x38d   :  { %v3720_v0 = vpop.f32.mrf.mxu1  ;;  %6697 = vtanh.f32 %v8470_v7 }
 0x38e   :  { %v3775_v55 = vmul.f32 0.5, %v3755_v25  ;;  %v9274_v0 = vld [vmem:[#allocation91_spill] sm:$0xff]  ;;  %v9275_v25 = vld [vmem:[#allocation89_spill] sm:$0xff] }
 0x390   :  { %v3733_v40 = vpop.f32.mrf.mxu2  ;;  %6699 = vtanh.f32 %v3775_v55  ;;  %v9277_v55 = vld [vmem:[#allocation75_spill] sm:$0xff] }
 0x391   :  { %v3746_v61 = vpop.f32.mrf.mxu3  ;;  %6701 = vtanh.f32 %v8474_v47  ;;  %v9278_v40 = vld [vmem:[#allocation90_spill] sm:$0xff] }
 0x392   :  { %v6696_v42 = vpop.eup %6695  ;;  %v9281_v61 = vld [vmem:[#allocation79_spill] sm:$0xff] }
 0x393   :  { %v3778_v31 = vadd.f32 1.0, %v6696_v42  ;;  %v6698_v30 = vpop.eup %6697  ;;  %v9279_v42 = vld [vmem:[#allocation92_spill] sm:$0xff] }
 0x395   :  { %v3780_v1 = vmul.f32 0.5, %v3778_v31  ;;  %v9280_v31 = vld [vmem:[#allocation94_spill] sm:$0xff] }
 0x396   :  { %v6700_v29 = vpop.eup %6699 }
 0x397   :  { %v3790_v53 = vmul.f32 %v6698_v30, %v3780_v1  ;;  %v3779_v50 = vadd.f32 1.0, %v6700_v29  ;;  %v6702_v6 = vpop.eup %6701  ;;  %v9282_v1 = vld [vmem:[#allocation83_spill] sm:$0xff]  ;;  %v9283_v30 = vld [vmem:[#allocation97_spill] sm:$0xff]  ;;  %v9285_v29 = vld [vmem:[#allocation98_spill] sm:$0xff] }
 0x399   :  { %3794 = vst [vmem:[#allocation1] sm:$0xff] %v3790_v53  ;;  %v8477_v5 = vpack.c.bf16 %v3790_v53, %v3790_v53  ;;  %v3781_v48 = vmul.f32 0.5, %v3779_v50  ;;  %v9284_v53 = vld [vmem:[#allocation103_spill] sm:$0xff] }
 0x39a   :  { %v9286_v50 = vld [vmem:[#allocation99_spill] sm:$0xff] }
 0x39b   :  { %3822 = vmatmul.bf16.vlgmr.msrb.gmra.mxu0 %v8477_v5  ;;  %3848 = vmatmul.bf16.vlgmr.msrb.gmra.mxu2 %v8477_v5  ;;  %v3791_v3 = vmul.f32 %v6702_v6, %v3781_v48  ;;  %v9287_v48 = vld [vmem:[#allocation100_spill] sm:$0xff] }
 0x39c   :  { %3918 = vmatpush.bf16.msrb.mxu0 %v9249_v16  ;;  %3944 = vmatpush.bf16.msrb.mxu2 %v9250_v43  ;;  %v9288_v16 = vld [vmem:[#allocation102_spill] sm:$0xff]  ;;  %v9289_v43 = vld [vmem:[#allocation104_spill] sm:$0xff] }
 0x39d   :  { %3795 = vst [vmem:[#allocation1 + $0x9] sm:$0xff] %v3791_v3  ;;  %v8483_v39 = vpack.c.bf16 %v3791_v3, %v3791_v3  ;;  %v9290_v6 = vld [vmem:[#allocation108_spill] sm:$0xff]  ;;  %v9291_v3 = vld [vmem:[#allocation105_spill] sm:$0xff] }
 0x39f   :  { %3835 = vmatmul.bf16.vlgmr.msrb.gmra.mxu1 %v8483_v39  ;;  %3861 = vmatmul.bf16.vlgmr.msrb.gmra.mxu3 %v8483_v39 }
 0x3a0   :  { %3919 = vmatpush.bf16.msrb.mxu0 %v9251_v51  ;;  %3945 = vmatpush.bf16.msrb.mxu2 %v9252_v9  ;;  %v9292_v51 = vld [vmem:[#allocation107_spill] sm:$0xff]  ;;  %v9293_v9 = vld [vmem:[#allocation110_spill] sm:$0xff] }
 0x3a1   :  { %3931 = vmatpush.bf16.msrb.mxu1 %v9253_v59  ;;  %3957 = vmatpush.bf16.msrb.mxu3 %v9254_v4  ;;  %v9295_v59 = vld [vmem:[#allocation111_spill] sm:$0xff]  ;;  %v9296_v4 = vld [vmem:[#allocation112_spill] sm:$0xff] }
 0x3a4   :  { %3920 = vmatpush.bf16.msrb.mxu0 %v9255_v38  ;;  %3946 = vmatpush.bf16.msrb.mxu2 %v9256_v56  ;;  %v3797_v27 = vld [vmem:[#allocation1 + $0x7] ss:$9 sm:$0xff] }
 0x3a5   :  { %3932 = vmatpush.bf16.msrb.mxu1 %v9259_v12  ;;  %3958 = vmatpush.bf16.msrb.mxu3 %v9260_v57  ;;  %3803 = vst.msk [vmem:[#allocation4] ss:$2 sm:$0x3] %vm8493_vm2, %v3797_v27  ;;  %v9297_v38 = vld [vmem:[#allocation114_spill] sm:$0xff]  ;;  %v9299_v12 = vld [vmem:[#allocation115_spill] sm:$0xff]  ;;  %v9300_v57 = vld [vmem:[#allocation116_spill] sm:$0xff] }
 0x3a6   :  { %v9298_v56 = vld [vmem:[#allocation118_spill] sm:$0xff]  ;;  %v9301_v27 = vld [vmem:[#allocation119_spill] sm:$0xff] }
 0x3a8   :  { %3921 = vmatpush.bf16.msrb.mxu0 %v9261_v14  ;;  %3947 = vmatpush.bf16.msrb.mxu2 %v9262_v35  ;;  %v9302_v14 = vld [vmem:[#allocation123_spill] sm:$0xff]  ;;  %v4081_v35 = vpop.permute.xlu0 %4080 }
 0x3a9   :  { %3933 = vmatpush.bf16.msrb.mxu1 %v9263_v36  ;;  %3959 = vmatpush.bf16.msrb.mxu3 %v9264_v2  ;;  %v9303_v36 = vld [vmem:[#allocation120_spill] sm:$0xff]  ;;  %v9304_v2 = vld [vmem:[#allocation122_spill] sm:$0xff] }
 0x3ab   :  { %3874 = vmatmul.bf16.vlgmr.msra.gmra.mxu0 %v8477_v5  ;;  %3900 = vmatmul.bf16.vlgmr.msra.gmra.mxu2 %v8477_v5 }
 0x3ac   :  { %3922 = vmatpush.bf16.msrb.mxu0 %v9265_v46  ;;  %3948 = vmatpush.bf16.msrb.mxu2 %v9266_v45  ;;  %v4102_v46 = vld [vmem:[#allocation13 + $0x18] sm:$0xff]  ;;  %v6637_v45 = vld [vmem:[%s8799_s8] ss:$0 sm:$0xff] }
 0x3ad   :  { %3934 = vmatpush.bf16.msrb.mxu1 %v9267_v24  ;;  %3960 = vmatpush.bf16.msrb.mxu3 %v9268_v22  ;;  %v6638_v24 = vld [vmem:[%s8799_s8 + $0x1] ss:$0 sm:$0xff]  ;;  %v6639_v22 = vld [vmem:[#allocation11] ss:$0 sm:$0xff] }
 0x3af   :  { %3887 = vmatmul.bf16.vlgmr.msra.gmra.mxu1 %v8483_v39  ;;  %3913 = vmatmul.bf16.vlgmr.msra.gmra.mxu3 %v8483_v39 }
 0x3b0   :  { %3923 = vmatpush.bf16.msrb.mxu0 %v9269_v58  ;;  %3949 = vmatpush.bf16.msrb.mxu2 %v9270_v62 }
 0x3b1   :  { %3935 = vmatpush.bf16.msrb.mxu1 %v9271_v19  ;;  %3961 = vmatpush.bf16.msrb.mxu3 %v9272_v8 }
 0x3b4   :  { %3924 = vmatpush.bf16.msrb.mxu0 %v9273_v21  ;;  %3950 = vmatpush.bf16.msrb.mxu2 %v9274_v0 }
 0x3b5   :  { %3936 = vmatpush.bf16.msrb.mxu1 %v9275_v25  ;;  %3962 = vmatpush.bf16.msrb.mxu3 %v9276_v18  ;;  %v9305_v18 = vld [vmem:[#allocation101_spill] sm:$0xff] }
 0x3b8   :  { %3925 = vmatpush.bf16.msrb.mxu0 %v9277_v55  ;;  %3951 = vmatpush.bf16.msrb.mxu2 %v9278_v40  ;;  %v2592_v55 = vadd.f32 %v9305_v18, %v1870_v20  ;;  %v4139_v20 = vld [vmem:[%s8803_s12 + $0x38] sm:$0xff] }
 0x3b9   :  { %3937 = vmatpush.bf16.msrb.mxu1 %v9281_v61  ;;  %3963 = vmatpush.bf16.msrb.mxu3 %v9282_v1  ;;  %v9307_v1 = vld [vmem:[#allocation109_spill] sm:$0xff] }
 0x3bb   :  { %3926 = vmatmul.bf16.vlgmr.msrb.gmra.mxu0 %v8477_v5  ;;  %3952 = vmatmul.bf16.vlgmr.msrb.gmra.mxu2 %v8477_v5 }
 0x3bc   :  { %3970 = vmatpush.bf16.msra.mxu0 %v9279_v42  ;;  %3996 = vmatpush.bf16.msra.mxu2 %v9280_v31  ;;  %v9306_v31 = vld [vmem:[#allocation71_spill] sm:$0xff] }
 0x3bd   :  { %3938 = vmatpush.bf16.msrb.mxu1 %v9285_v29  ;;  %3964 = vmatpush.bf16.msrb.mxu3 %v9286_v50  ;;  %v2536_v61 = vadd.f32 %v9306_v31, %v1868_v63  ;;  %v9308_v50 = vld [vmem:[#allocation69_spill] sm:$0xff] }
 0x3c0   :  { %3971 = vmatpush.bf16.msra.mxu0 %v9283_v30  ;;  %3997 = vmatpush.bf16.msra.mxu2 %v9284_v53  ;;  %v2606_v30 = vadd.f32 %v9307_v1, %v2592_v55 }
 0x3c1   :  { %3983 = vmatpush.bf16.msra.mxu1 %v9287_v48  ;;  %4009 = vmatpush.bf16.msra.mxu3 %v9288_v16  ;;  %v2550_v48 = vadd.f32 %v9308_v50, %v2536_v61  ;;  %v4196_v50 = vld [vmem:[#allocation17 + $0xe0] sm:$0xff] }
 0x3c2   :  { %3939 = vmatmul.bf16.vlgmr.msrb.gmra.mxu1 %v8483_v39  ;;  %3965 = vmatmul.bf16.vlgmr.msrb.gmra.mxu3 %v8483_v39 }
 0x3c4   :  { %3972 = vmatpush.bf16.msra.mxu0 %v9289_v43  ;;  %3998 = vmatpush.bf16.msra.mxu2 %v9290_v6 }
 0x3c5   :  { %3984 = vmatpush.bf16.msra.mxu1 %v9291_v3  ;;  %4010 = vmatpush.bf16.msra.mxu3 %v9292_v51  ;;  %v9309_v51 = vld [vmem:[#allocation65_spill] sm:$0xff] }
 0x3c8   :  { %3973 = vmatpush.bf16.msra.mxu0 %v9293_v9  ;;  %3999 = vmatpush.bf16.msra.mxu2 %v9294_v26  ;;  %v2564_v9 = vadd.f32 %v9309_v51, %v1869_v44  ;;  %v4192_v51 = vld [vmem:[#allocation17 + $0xc0] sm:$0xff] }
 0x3c9   :  { %3985 = vmatpush.bf16.msra.mxu1 %v9295_v59  ;;  %4011 = vmatpush.bf16.msra.mxu3 %v9296_v4 }
 0x3cc   :  { %3974 = vmatpush.bf16.msra.mxu0 %v9297_v38  ;;  %4000 = vmatpush.bf16.msra.mxu2 %v9298_v56  ;;  %v9310_v38 = vld [vmem:[#allocation87_spill] sm:$0xff] }
 0x3cd   :  { %3986 = vmatpush.bf16.msra.mxu1 %v9299_v12  ;;  %4012 = vmatpush.bf16.msra.mxu3 %v9300_v57  ;;  %v2578_v56 = vadd.f32 %v9310_v38, %v2564_v9  ;;  %v9311_v57 = vld [vmem:[#allocation117_spill] sm:$0xff]  ;;  %v4224_v9 = vld [vmem:[#allocation17 + $0x1c0] sm:$0xff] }
 0x3ce   :  { %v4220_v38 = vld [vmem:[#allocation17 + $0x1a0] sm:$0xff] }
 0x3d0   :  { %3975 = vmatpush.bf16.msra.mxu0 %v9301_v27  ;;  %4001 = vmatpush.bf16.msra.mxu2 %v9302_v14 }
 0x3d1   :  { %3987 = vmatpush.bf16.msra.mxu1 %v9303_v36  ;;  %4013 = vmatpush.bf16.msra.mxu3 %v9304_v2 }
 0x3d4   :  { %3976 = vmatpush.bf16.msra.mxu0 %v8328_v52  ;;  %4002 = vmatpush.bf16.msra.mxu2 %v8337_v37  ;;  %v4101_v52 = vld [vmem:[#allocation13 + $0x10] sm:$0xff]  ;;  %v4088_v37 = vpop.permute.xlu0 %4087 }
 0x3d5   :  { %3988 = vmatpush.bf16.msra.mxu1 %v8331_v33  ;;  %4014 = vmatpush.bf16.msra.mxu3 %v8334_v17  ;;  %v4100_v33 = vld [vmem:[#allocation13 + $0x8] sm:$0xff]  ;;  %v4084_v17 = vmul.f32 %v6637_v45, %v4081_v35  ;;  %v4137_v45 = vld [vmem:[%s8803_s12 + $0x28] sm:$0xff] }
 0x3d8   :  { %3977 = vmatpush.bf16.msra.mxu0 %v8342_v41  ;;  %4003 = vmatpush.bf16.msra.mxu2 %v8353_v34  ;;  %v4091_v41 = vmul.f32 %v6638_v24, %v4088_v37  ;;  %v4099_v34 = vld [vmem:[#allocation13] sm:$0xff] }
 0x3d9   :  { %3989 = vmatpush.bf16.msra.mxu1 %v8345_v32  ;;  %4015 = vmatpush.bf16.msra.mxu3 %v8350_v15 }
 0x3da   :  { %v4092_v58 = vadd.f32 %v4091_v41, %v4084_v17  ;;  %v4136_v17 = vld [vmem:[%s8803_s12 + $0x20] sm:$0xff] }
 0x3db   :  { %3978 = vmatmul.bf16.vlgmr.msra.gmra.mxu0 %v8477_v5  ;;  %4004 = vmatmul.bf16.vlgmr.msra.gmra.mxu2 %v8477_v5 }
 0x3dc   :  { %4123 = vmatpush.msrb.mxu0 %v4102_v46  ;;  %v4097_v32 = vadd.f32 %v6639_v22, %v4092_v58  ;;  %v4135_v22 = vld [vmem:[%s8803_s12 + $0x18] sm:$0xff] }
 0x3dd   :  { %3990 = vmatpush.bf16.msra.mxu1 %v8357_v28  ;;  %4016 = vmatpush.bf16.msra.mxu3 %v8361_v54 }
 0x3de   :  { %4124 = vmatpush.msrb.mxu0 %v4101_v52  ;;  %v4098_v15 = vmax.f32 %v4097_v32, 0.0  ;;  %v4134_v32 = vld [vmem:[%s8803_s12 + $0x10] sm:$0xff] }
 0x3e0   :  { %4125 = vmatpush.msrb.mxu0 %v4100_v33  ;;  %3991 = vmatmul.bf16.vlgmr.msra.gmra.mxu1 %v8483_v39 }
 0x3e1   :  { %4017 = vmatmul.bf16.vlgmr.msra.gmra.mxu3 %v8483_v39  ;;  %4156 = vmatpush.msrb.mxu1 %v4139_v20 }
 0x3e2   :  { %4126 = vmatpush.msrb.mxu0 %v4099_v34 }
 0x3e3   :  { %4157 = vmatpush.msrb.mxu1 %v4138_v60  ;;  %v4214_v60 = vld [vmem:[#allocation17 + $0x170] sm:$0xff] }
 0x3e5   :  { %4158 = vmatpush.msrb.mxu1 %v4137_v45  ;;  %v4212_v45 = vld [vmem:[#allocation17 + $0x160] sm:$0xff] }
 0x3e7   :  { %4159 = vmatpush.msrb.mxu1 %v4136_v17 }
 0x3e9   :  { %4160 = vmatpush.msrb.mxu1 %v4135_v22 }
 0x3eb   :  { %6220 = vmatmul.msk.f32.vlgmr.msrb.gmra.mxu0 %vm4107_vm3, %v4098_v15  ;;  %4161 = vmatpush.msrb.mxu1 %v4134_v32  ;;  %v4208_v32 = vld [vmem:[#allocation17 + $0x140] sm:$0xff] }
 0x418   :  { %v3823_v5 = vpop.f32.mrf.mxu0 }
 0x41c   :  { %v3836_v19 = vpop.f32.mrf.mxu1 }
 0x41d   :  { %v3837_v53 = vadd.f32 %v3836_v19, %v3823_v5 }
 0x41e   :  { %v3849_v62 = vpop.f32.mrf.mxu2 }
 0x41f   :  { %v4022_v43 = vadd.f32 %v3837_v53, %v2550_v48  ;;  %v4198_v53 = vld [vmem:[#allocation17 + $0xf0] sm:$0xff]  ;;  %v4228_v48 = vld [vmem:[#allocation17 + $0x1e0] sm:$0xff] }
 0x420   :  { %v3825_v8 = vpop.f32.mrf.mxu0  ;;  %4297 = vmatpush.msra.mxu0 %v4198_v53 }
 0x421   :  { %v4030_v12 = vmul.f32 0.5, %v4022_v43 }
 0x422   :  { %v3862_v28 = vpop.f32.mrf.mxu3  ;;  %4298 = vmatpush.msra.mxu0 %v4196_v50  ;;  %v4242_v50 = vld [vmem:[%s8806_s15 + $0x50] sm:$0xff] }
 0x423   :  { %v3863_v26 = vadd.f32 %v3862_v28, %v3849_v62 }
 0x424   :  { %v3838_v54 = vpop.f32.mrf.mxu1 }
 0x425   :  { %v4023_v35 = vadd.f32 %v3863_v26, %v2578_v56  ;;  %v4218_v56 = vld [vmem:[#allocation17 + $0x190] sm:$0xff] }
 0x426   :  { %v3851_v21 = vpop.f32.mrf.mxu2 }
 0x427   :  { %v4031_v44 = vmul.f32 0.5, %v4023_v35 }
 0x428   :  { %v3875_v0 = vpop.f32.mrf.mxu0 }
 0x42a   :  { %v3864_v25 = vpop.f32.mrf.mxu3 }
 0x42b   :  { %v4132_v25 = vld [vmem:[%s8803_s12] sm:$0xff] }
 0x42c   :  { %v3888_v40 = vpop.f32.mrf.mxu1 }
 0x42d   :  { %v3889_v42 = vadd.f32 %v3888_v40, %v3875_v0 }
 0x42e   :  { %v3901_v39 = vpop.f32.mrf.mxu2 }
 0x42f   :  { %v4024_v16 = vadd.f32 %v3889_v42, %v2606_v30 }
 0x430   :  { %v3877_v29 = vpop.f32.mrf.mxu0 }
 0x431   :  { %v4032_v63 = vmul.f32 0.5, %v4024_v16  ;;  %v4230_v29 = vld [vmem:[#allocation17 + $0x1f0] sm:$0xff] }
 0x432   :  { %v3914_v6 = vpop.f32.mrf.mxu3 }
 0x433   :  { %v3915_v3 = vadd.f32 %v3914_v6, %v3901_v39  ;;  %6703 = vtanh.f32 %v4032_v63  ;;  %v4190_v63 = vld [vmem:[#allocation17 + $0xb0] sm:$0xff] }
 0x434   :  { %v3890_v59 = vpop.f32.mrf.mxu1  ;;  %6705 = vtanh.f32 %v4030_v12 }
 0x435   :  { %v4025_v27 = vadd.f32 %v3915_v3, %v9311_v57  ;;  %v4194_v3 = vld [vmem:[#allocation17 + $0xd0] sm:$0xff] }
 0x436   :  { %v3903_v4 = vpop.f32.mrf.mxu2  ;;  %4299 = vmatpush.msra.mxu0 %v4194_v3  ;;  %v4222_v59 = vld [vmem:[#allocation17 + $0x1b0] sm:$0xff] }
 0x437   :  { %v4033_v36 = vmul.f32 0.5, %v4025_v27  ;;  %v4188_v4 = vld [vmem:[#allocation17 + $0xa0] sm:$0xff] }
 0x438   :  { %v3927_v14 = vpop.f32.mrf.mxu0  ;;  %4300 = vmatpush.msra.mxu0 %v4192_v51  ;;  %v4184_v27 = vld [vmem:[#allocation17 + $0x80] sm:$0xff] }
 0x439   :  { %v6704_v52 = vpop.eup %6703  ;;  %6707 = vtanh.f32 %v4033_v36  ;;  %v4239_v51 = vld [vmem:[%s8806_s15 + $0x38] sm:$0xff] }
 0x43a   :  { %v3916_v2 = vpop.f32.mrf.mxu3  ;;  %v6706_v41 = vpop.eup %6705  ;;  %6709 = vtanh.f32 %v4031_v44  ;;  %v4040_v58 = vadd.f32 1.0, %v6704_v52  ;;  %4301 = vmatpush.msra.mxu0 %v4190_v63  ;;  %v4234_v63 = vld [vmem:[%s8806_s15 + $0x10] sm:$0xff] }
 0x43b   :  { %v4038_v15 = vadd.f32 1.0, %v6706_v41  ;;  %v4182_v2 = vld [vmem:[#allocation17 + $0x70] sm:$0xff]  ;;  %v6640_v41 = vld [vmem:[#allocation14] ss:$0 sm:$0xff] }
 0x43c   :  { %v4044_v28 = vmul.f32 0.5, %v4040_v58  ;;  %4302 = vmatpush.msra.mxu0 %v4188_v4  ;;  %v4176_v58 = vld [vmem:[#allocation17 + $0x40] sm:$0xff]  ;;  %v4232_v4 = vld [vmem:[%s8806_s15] sm:$0xff] }
 0x43d   :  { %v4042_v18 = vmul.f32 0.5, %v4038_v15 }
 0x43e   :  { %v3953_v46 = vpop.f32.mrf.mxu2  ;;  %v4056_v42 = vmul.f32 %v4044_v28, %v8470_v7  ;;  %v4226_v7 = vld [vmem:[#allocation17 + $0x1d0] sm:$0xff]  ;;  %v4204_v28 = vld [vmem:[#allocation17 + $0x120] sm:$0xff] }
 0x43f   :  { %v3940_v24 = vpop.f32.mrf.mxu1  ;;  %v6708_v62 = vpop.eup %6707 }
 0x440   :  { %v3941_v37 = vadd.f32 %v3940_v24, %v3927_v14  ;;  %v3929_v33 = vpop.f32.mrf.mxu0  ;;  %v6710_v54 = vpop.eup %6709  ;;  %v4041_v55 = vadd.f32 1.0, %v6708_v62  ;;  %v4216_v14 = vld [vmem:[#allocation17 + $0x180] sm:$0xff]  ;;  %v4206_v62 = vld [vmem:[#allocation17 + $0x130] sm:$0xff] }
 0x441   :  { %v4039_v39 = vadd.f32 1.0, %v6710_v54  ;;  %v4210_v33 = vld [vmem:[#allocation17 + $0x150] sm:$0xff] }
 0x442   :  { %v4026_v34 = vadd.f32 %v3941_v37, %v8347_v49  ;;  %v4133_v49 = vld [vmem:[%s8803_s12 + $0x8] sm:$0xff]  ;;  %v4045_v61 = vmul.f32 0.5, %v4041_v55  ;;  %v4168_v55 = vld [vmem:[#allocation17] sm:$0xff] }
 0x443   :  { %4162 = vmatpush.msrb.mxu1 %v4133_v49  ;;  %v4178_v37 = vld [vmem:[#allocation17 + $0x50] sm:$0xff] }
 0x444   :  { %6711 = vtanh.f32 %v4026_v34  ;;  %v4057_v43 = vmul.f32 %v4045_v61, %v8474_v47  ;;  %v4186_v47 = vld [vmem:[#allocation17 + $0x90] sm:$0xff]  ;;  %v4246_v61 = vld [vmem:[%s8806_s15 + $0x70] sm:$0xff] }
 0x445   :  { %v3966_v5 = vpop.f32.mrf.mxu3  ;;  %4163 = vmatpush.msrb.mxu1 %v4132_v25  ;;  %4303 = vmatpush.msra.mxu0 %v4186_v47  ;;  %v4199_v47 = vld [vmem:[#allocation17 + $0xf8] sm:$0xff] }
 0x446   :  { %v3967_v19 = vadd.f32 %v3966_v5, %v3953_v46  ;;  %v3955_v8 = vpop.f32.mrf.mxu2  ;;  %v4180_v46 = vld [vmem:[#allocation17 + $0x60] sm:$0xff]  ;;  %v4174_v5 = vld [vmem:[#allocation17 + $0x30] sm:$0xff]  ;;  %4259 = vmatpush.msrb.mxu2 %v4246_v61 }
 0x447   :  { %v3942_v21 = vpop.f32.mrf.mxu1  ;;  %4317 = vmatpush.msra.mxu1 %v4230_v29  ;;  %4304 = vmatpush.msra.mxu0 %v4184_v27  ;;  %v4245_v29 = vld [vmem:[%s8806_s15 + $0x68] sm:$0xff]  ;;  %v4229_v27 = vld [vmem:[#allocation17 + $0x1e8] sm:$0xff] }
 0x448   :  { %v4027_v0 = vadd.f32 %v3967_v19, %v8365_v10  ;;  %v4043_v10 = vmul.f32 0.5, %v4039_v39  ;;  %v4172_v19 = vld [vmem:[#allocation17 + $0x20] sm:$0xff]  ;;  %v4170_v21 = vld [vmem:[#allocation17 + $0x10] sm:$0xff] }
 0x449   :  { %4318 = vmatpush.msra.mxu1 %v4228_v48  ;;  %4305 = vmatpush.msra.mxu0 %v4182_v2  ;;  %v4243_v48 = vld [vmem:[%s8806_s15 + $0x58] sm:$0xff]  ;;  %v4413_v61 = vld [vmem:[#allocation19 + $0xd0] sm:$0xff] }
 0x44a   :  { %v6712_v40 = vpop.eup %6711  ;;  %6713 = vtanh.f32 %v4027_v0  ;;  %v4225_v2 = vld [vmem:[#allocation17 + $0x1c8] sm:$0xff] }
 0x44b   :  { %v4058_v31 = vmul.f32 %v6712_v40, %v4042_v18  ;;  %4319 = vmatpush.msra.mxu1 %v4226_v7  ;;  %4306 = vmatpush.msra.mxu0 %v4180_v46  ;;  %v4200_v40 = vld [vmem:[#allocation17 + $0x100] sm:$0xff] }
 0x44d   :  { %v8613_v1 = vadd.f32 %v4058_v31, %v4056_v42  ;;  %v3968_v30 = vpop.f32.mrf.mxu3  ;;  %4320 = vmatpush.msra.mxu1 %v4224_v9  ;;  %4307 = vmatpush.msra.mxu0 %v4178_v37  ;;  %v4236_v9 = vld [vmem:[%s8806_s15 + $0x20] sm:$0xff] }
 0x44e   :  { %v4244_v30 = vld [vmem:[%s8806_s15 + $0x60] sm:$0xff] }
 0x44f   :  { %4321 = vmatpush.msra.mxu1 %v4222_v59  ;;  %4308 = vmatpush.msra.mxu0 %v4176_v58  ;;  %v4235_v59 = vld [vmem:[%s8806_s15 + $0x18] sm:$0xff] }
 0x450   :  { %v6714_v16 = vpop.eup %6713  ;;  %4260 = vmatpush.msrb.mxu2 %v4244_v30  ;;  %v4185_v37 = vld [vmem:[#allocation17 + $0x88] sm:$0xff]  ;;  %v4449_v30 = vld [vmem:[#allocation19 + $0x1f0] sm:$0xff] }
 0x451   :  { %v4059_v6 = vmul.f32 %v6714_v16, %v4043_v10  ;;  %4322 = vmatpush.msra.mxu1 %v4220_v38  ;;  %4309 = vmatpush.msra.mxu0 %v4174_v5  ;;  %v4233_v38 = vld [vmem:[%s8806_s15 + $0x8] sm:$0xff]  ;;  %v4181_v58 = vld [vmem:[#allocation17 + $0x68] sm:$0xff] }
 0x452   :  { %4261 = vmatpush.msrb.mxu2 %v4242_v50  ;;  %v4177_v5 = vld [vmem:[#allocation17 + $0x48] sm:$0xff]  ;;  %v4447_v50 = vld [vmem:[#allocation19 + $0x1e0] sm:$0xff] }
 0x453   :  { %v8616_v20 = vadd.f32 %v4059_v6, %v4057_v43  ;;  %4323 = vmatpush.msra.mxu1 %v4218_v56  ;;  %4310 = vmatpush.msra.mxu0 %v4172_v19  ;;  %v4240_v43 = vld [vmem:[%s8806_s15 + $0x40] sm:$0xff]  ;;  %v4241_v6 = vld [vmem:[%s8806_s15 + $0x48] sm:$0xff] }
 0x454   :  { %4262 = vmatpush.msrb.mxu2 %v4240_v43  ;;  %v4231_v56 = vld [vmem:[#allocation17 + $0x1f8] sm:$0xff] }
 0x455   :  { %4324 = vmatpush.msra.mxu1 %v4216_v14  ;;  %4311 = vmatpush.msra.mxu0 %v4170_v21  ;;  %v4195_v14 = vld [vmem:[#allocation17 + $0xd8] sm:$0xff] }
 0x456   :  { %v4175_v19 = vld [vmem:[#allocation17 + $0x38] sm:$0xff] }
 0x457   :  { %4325 = vmatpush.msra.mxu1 %v4214_v60  ;;  %4312 = vmatpush.msra.mxu0 %v4168_v55  ;;  %v4191_v60 = vld [vmem:[#allocation17 + $0xb8] sm:$0xff] }
 0x458   :  { %v3979_v26 = vpop.f32.mrf.mxu0  ;;  %v4171_v21 = vld [vmem:[#allocation17 + $0x18] sm:$0xff] }
 0x459   :  { %4326 = vmatpush.msra.mxu1 %v4212_v45  ;;  %v4189_v45 = vld [vmem:[#allocation17 + $0xa8] sm:$0xff]  ;;  %v4410_v43 = vld [vmem:[#allocation19 + $0xb8] sm:$0xff] }
 0x45b   :  { %4327 = vmatpush.msra.mxu1 %v4210_v33  ;;  %v4217_v33 = vld [vmem:[#allocation17 + $0x188] sm:$0xff] }
 0x45d   :  { %v3992_v12 = vpop.f32.mrf.mxu1  ;;  %4328 = vmatpush.msra.mxu1 %v4208_v32  ;;  %v4213_v32 = vld [vmem:[#allocation17 + $0x168] sm:$0xff] }
 0x45e   :  { %v4005_v57 = vpop.f32.mrf.mxu2  ;;  %v3993_v35 = vadd.f32 %v3992_v12, %v3979_v26  ;;  %v4237_v26 = vld [vmem:[%s8806_s15 + $0x28] sm:$0xff] }
 0x45f   :  { %4329 = vmatpush.msra.mxu1 %v4206_v62  ;;  %v4209_v62 = vld [vmem:[#allocation17 + $0x148] sm:$0xff] }
 0x460   :  { %v3981_v36 = vpop.f32.mrf.mxu0  ;;  %v4028_v44 = vadd.f32 %v3993_v35, %v8400_v13  ;;  %v4227_v35 = vld [vmem:[#allocation17 + $0x1d8] sm:$0xff] }
 0x461   :  { %4330 = vmatpush.msra.mxu1 %v4204_v28  ;;  %v4193_v36 = vld [vmem:[#allocation17 + $0xc8] sm:$0xff] }
 0x462   :  { %v4048_v24 = vmul.f32 0.5, %v4028_v44  ;;  %v4223_v44 = vld [vmem:[#allocation17 + $0x1b8] sm:$0xff]  ;;  %v4205_v28 = vld [vmem:[#allocation17 + $0x128] sm:$0xff] }
 0x464   :  { %v4018_v52 = vpop.f32.mrf.mxu3  ;;  %6715 = vtanh.f32 %v4048_v24  ;;  %v4221_v24 = vld [vmem:[#allocation17 + $0x1a8] sm:$0xff] }
 0x465   :  { %v4019_v17 = vadd.f32 %v4018_v52, %v4005_v57  ;;  %v3994_v34 = vpop.f32.mrf.mxu1  ;;  %6717 = vtanh.f32 %v8613_v1  ;;  %v4247_v1 = vld [vmem:[%s8806_s15 + $0x78] sm:$0xff]  ;;  %v4219_v52 = vld [vmem:[#allocation17 + $0x198] sm:$0xff] }
 0x466   :  { %v4007_v22 = vpop.f32.mrf.mxu2  ;;  %4279 = vmatpush.msrb.mxu3 %v4247_v1  ;;  %v4197_v57 = vld [vmem:[#allocation17 + $0xe8] sm:$0xff]  ;;  %v4414_v1 = vld [vmem:[#allocation19 + $0xd8] sm:$0xff] }
 0x467   :  { %v4029_v13 = vadd.f32 %v4019_v17, %v8409_v23  ;;  %v4202_v23 = vld [vmem:[#allocation17 + $0x110] sm:$0xff]  ;;  %v4183_v17 = vld [vmem:[#allocation17 + $0x78] sm:$0xff] }
 0x468   :  { %v4128_v15 = vpop.f32.mrf.mxu0  ;;  %4331 = vmatpush.msra.mxu1 %v4202_v23  ;;  %4280 = vmatpush.msrb.mxu3 %v4245_v29  ;;  %v4201_v23 = vld [vmem:[#allocation17 + $0x108] sm:$0xff]  ;;  %v4411_v29 = vld [vmem:[#allocation19 + $0xc0] sm:$0xff] }
 0x469   :  { %v4049_v8 = vmul.f32 0.5, %v4029_v13  ;;  %v4129_v49 = vadd.f32 %v6640_v41, %v4128_v15  ;;  %v4215_v41 = vld [vmem:[#allocation17 + $0x178] sm:$0xff] }
 0x46a   :  { %v6716_v54 = vpop.eup %6715  ;;  %4332 = vmatpush.msra.mxu1 %v4200_v40  ;;  %4281 = vmatpush.msrb.mxu3 %v4243_v48  ;;  %v4179_v13 = vld [vmem:[#allocation17 + $0x58] sm:$0xff]  ;;  %v4417_v40 = vld [vmem:[#allocation19 + $0xf0] sm:$0xff]  ;;  %v4448_v48 = vld [vmem:[#allocation19 + $0x1e8] sm:$0xff] }
 0x46b   :  { %6719 = vtanh.f32 %v4049_v8  ;;  %v4131_v0 = vmax.f32 %v4129_v49, 0.0  ;;  %v4052_v25 = vadd.f32 1.0, %v6716_v54  ;;  %v6718_v42 = vpop.eup %6717  ;;  %v4211_v15 = vld [vmem:[#allocation17 + $0x158] sm:$0xff]  ;;  %v4173_v49 = vld [vmem:[#allocation17 + $0x28] sm:$0xff]  ;;  %4457 = vmatpush.msrb.mxu0 %v4417_v40 }
 0x46c   :  { %v4020_v18 = vpop.f32.mrf.mxu3  ;;  %6721 = vtanh.f32 %v8616_v20  ;;  %v4238_v20 = vld [vmem:[%s8806_s15 + $0x30] sm:$0xff]  ;;  %4282 = vmatpush.msrb.mxu3 %v4241_v6  ;;  %v4445_v6 = vld [vmem:[#allocation19 + $0x1d0] sm:$0xff]  ;;  %v4554_v40 = vld [vmem:[%s8810_s19 + $0x78] sm:$0xff] }
 0x46d   :  { %6221 = vmatmul.msk.f32.vlgmr.msrb.gmra.mxu1 %vm4144_vm4, %v4131_v0  ;;  %v4054_v39 = vmul.f32 0.5, %v4052_v25  ;;  %4263 = vmatpush.msrb.mxu2 %v4238_v20  ;;  %v4207_v8 = vld [vmem:[#allocation17 + $0x138] sm:$0xff]  ;;  %v4169_v0 = vld [vmem:[#allocation17 + $0x8] sm:$0xff] }
 0x46e   :  { %4283 = vmatpush.msrb.mxu3 %v4239_v51  ;;  %v4203_v54 = vld [vmem:[#allocation17 + $0x118] sm:$0xff]  ;;  %4477 = vmatpush.msrb.mxu1 %v4449_v30  ;;  %v4408_v20 = vld [vmem:[#allocation19 + $0xa8] sm:$0xff]  ;;  %v4443_v51 = vld [vmem:[#allocation19 + $0x1c0] sm:$0xff] }
 0x46f   :  { %v4064_v31 = vmul.f32 %v6718_v42, %v4054_v39  ;;  %4264 = vmatpush.msrb.mxu2 %v4236_v9  ;;  %v6641_v25 = vld [vmem:[#allocation16] ss:$0 sm:$0xff]  ;;  %v4415_v42 = vld [vmem:[#allocation19 + $0xe0] sm:$0xff]  ;;  %v4444_v9 = vld [vmem:[#allocation19 + $0x1c8] sm:$0xff] }
 0x470   :  { %4284 = vmatpush.msrb.mxu3 %v4237_v26  ;;  %v4418_v39 = vld [vmem:[#allocation19 + $0xf8] sm:$0xff]  ;;  %4458 = vmatpush.msrb.mxu0 %v4415_v42  ;;  %v4405_v26 = vld [vmem:[#allocation19 + $0x90] sm:$0xff]  ;;  %v4570_v42 = vld [vmem:[%s8810_s19 + $0xf8] sm:$0xff] }
 0x471   :  { %v6720_v53 = vpop.eup %6719  ;;  %4068 = vst [vmem:[#allocation1] sm:$0xff] %v4064_v31  ;;  %4265 = vmatpush.msrb.mxu2 %v4234_v63  ;;  %v4416_v31 = vld [vmem:[#allocation19 + $0xe8] sm:$0xff]  ;;  %4478 = vmatpush.msrb.mxu1 %v4447_v50  ;;  %v4406_v63 = vld [vmem:[#allocation19 + $0x98] sm:$0xff] }
 0x472   :  { %v4053_v10 = vadd.f32 1.0, %v6720_v53  ;;  %v6722_v3 = vpop.eup %6721  ;;  %4285 = vmatpush.msrb.mxu3 %v4235_v59  ;;  %v4450_v53 = vld [vmem:[#allocation19 + $0x1f8] sm:$0xff]  ;;  %4459 = vmatpush.msrb.mxu0 %v4413_v61  ;;  %v4441_v59 = vld [vmem:[#allocation19 + $0x1b0] sm:$0xff] }
 0x473   :  { %4266 = vmatpush.msrb.mxu2 %v4232_v4  ;;  %4479 = vmatpush.msrb.mxu1 %v4445_v6  ;;  %v4442_v4 = vld [vmem:[#allocation19 + $0x1b8] sm:$0xff]  ;;  %v4551_v30 = vld [vmem:[%s8810_s19 + $0x60] sm:$0xff] }
 0x474   :  { %v4055_v16 = vmul.f32 0.5, %v4053_v10  ;;  %4286 = vmatpush.msrb.mxu3 %v4233_v38  ;;  %v4412_v10 = vld [vmem:[#allocation19 + $0xc8] sm:$0xff]  ;;  %4460 = vmatpush.msrb.mxu0 %v4411_v29  ;;  %v4403_v38 = vld [vmem:[#allocation19 + $0x80] sm:$0xff] }
 0x475   :  { %4337 = vmatpush.msra.mxu2 %v4199_v47  ;;  %4480 = vmatpush.msrb.mxu1 %v4443_v51  ;;  %v4404_v47 = vld [vmem:[#allocation19 + $0x88] sm:$0xff]  ;;  %v4569_v61 = vld [vmem:[%s8810_s19 + $0xf0] sm:$0xff] }
 0x476   :  { %v4065_v7 = vmul.f32 %v6722_v3, %v4055_v16  ;;  %4357 = vmatpush.msra.mxu3 %v4231_v56  ;;  %v4409_v16 = vld [vmem:[#allocation19 + $0xb0] sm:$0xff]  ;;  %v4446_v3 = vld [vmem:[#allocation19 + $0x1d8] sm:$0xff]  ;;  %v4439_v56 = vld [vmem:[#allocation19 + $0x1a0] sm:$0xff] }
 0x477   :  { %4338 = vmatpush.msra.mxu2 %v4197_v57  ;;  %4461 = vmatpush.msrb.mxu0 %v4409_v16  ;;  %v4401_v57 = vld [vmem:[#allocation19 + $0x70] sm:$0xff]  ;;  %v4550_v29 = vld [vmem:[%s8810_s19 + $0x58] sm:$0xff]  ;;  %v4549_v50 = vld [vmem:[%s8810_s19 + $0x50] sm:$0xff] }
 0x478   :  { %4069 = vst [vmem:[#allocation1 + $0x9] sm:$0xff] %v4065_v7  ;;  %4358 = vmatpush.msra.mxu3 %v4229_v27  ;;  %v4407_v7 = vld [vmem:[#allocation19 + $0xa0] sm:$0xff]  ;;  %4481 = vmatpush.msrb.mxu1 %v4441_v59  ;;  %v4402_v27 = vld [vmem:[#allocation19 + $0x78] sm:$0xff]  ;;  %v4377_v6 = vld [vmem:[%s8807_s16] sm:$0x3] }
 0x479   :  { %4339 = vmatpush.msra.mxu2 %v4195_v14  ;;  %4462 = vmatpush.msrb.mxu0 %v4407_v7  ;;  %v4437_v14 = vld [vmem:[#allocation19 + $0x190] sm:$0xff]  ;;  %v4546_v7 = vld [vmem:[%s8810_s19 + $0x38] sm:$0xff] }
 0x47a   :  { %4359 = vmatpush.msra.mxu3 %v4227_v35  ;;  %v4438_v35 = vld [vmem:[#allocation19 + $0x198] sm:$0xff]  ;;  %4482 = vmatpush.msrb.mxu1 %v4439_v56 }
 0x47b   :  { %4340 = vmatpush.msra.mxu2 %v4193_v36  ;;  %4463 = vmatpush.msrb.mxu0 %v4405_v26  ;;  %v4399_v36 = vld [vmem:[#allocation19 + $0x60] sm:$0xff]  ;;  %v4548_v16 = vld [vmem:[%s8810_s19 + $0x48] sm:$0xff]  ;;  %v4379_v26 = vperm.slane %v4377_v6, 0 }
 0x47c   :  { %4360 = vmatpush.msra.mxu3 %v4225_v2  ;;  %v4400_v2 = vld [vmem:[#allocation19 + $0x68] sm:$0xff]  ;;  %4483 = vmatpush.msrb.mxu1 %v4437_v14 }
 0x47d   :  { %4341 = vmatpush.msra.mxu2 %v4191_v60  ;;  %4464 = vmatpush.msrb.mxu0 %v4403_v38  ;;  %v4397_v60 = vld [vmem:[#allocation19 + $0x50] sm:$0xff] }
 0x47e   :  { %4361 = vmatpush.msra.mxu3 %v4223_v44  ;;  %v4398_v44 = vld [vmem:[#allocation19 + $0x58] sm:$0xff] }
 0x47f   :  { %v4071_v12 = vld [vmem:[#allocation1 + $0x7] ss:$9 sm:$0xff]  ;;  %4342 = vmatpush.msra.mxu2 %v4189_v45  ;;  %4465 = vmatpush.msrb.mxu0 %v4401_v57 }
 0x480   :  { %4074 = vst.msk [vmem:[#allocation4 + $0x1] ss:$2 sm:$0x3] %vm8493_vm2, %v4071_v12  ;;  %4362 = vmatpush.msra.mxu3 %v4221_v24  ;;  %v4440_v12 = vld [vmem:[#allocation19 + $0x1a8] sm:$0xff]  ;;  %v4435_v45 = vld [vmem:[#allocation19 + $0x180] sm:$0xff] }
 0x481   :  { %4343 = vmatpush.msra.mxu2 %v4187_v11  ;;  %4466 = vmatpush.msrb.mxu0 %v4399_v36  ;;  %v4396_v24 = vld [vmem:[#allocation19 + $0x48] sm:$0xff]  ;;  %v4545_v36 = vld [vmem:[%s8810_s19 + $0x30] sm:$0xff] }
 0x482   :  { %4363 = vmatpush.msra.mxu3 %v4219_v52  ;;  %4484 = vmatpush.msrb.mxu1 %v4435_v45  ;;  %v4436_v11 = vld [vmem:[#allocation19 + $0x188] sm:$0xff]  ;;  %v4393_v52 = vld [vmem:[#allocation19 + $0x30] sm:$0xff] }
 0x483   :  { %4344 = vmatpush.msra.mxu2 %v4185_v37  ;;  %4467 = vmatpush.msrb.mxu0 %v4397_v60  ;;  %v4433_v37 = vld [vmem:[#allocation19 + $0x170] sm:$0xff]  ;;  %v4562_v45 = vld [vmem:[%s8810_s19 + $0xb8] sm:$0xff] }
 0x484   :  { %4364 = vmatpush.msra.mxu3 %v4217_v33  ;;  %v4394_v33 = vld [vmem:[#allocation19 + $0x38] sm:$0xff]  ;;  %4485 = vmatpush.msrb.mxu1 %v4433_v37 }
 0x485   :  { %4345 = vmatpush.msra.mxu2 %v4183_v17  ;;  %v4434_v17 = vld [vmem:[#allocation19 + $0x178] sm:$0xff] }
 0x486   :  { %4365 = vmatpush.msra.mxu3 %v4215_v41  ;;  %v4391_v41 = vld [vmem:[#allocation19 + $0x20] sm:$0xff]  ;;  %v4544_v60 = vld [vmem:[%s8810_s19 + $0x28] sm:$0xff] }
 0x487   :  { %v4075_v46 = vld [vmem:[#allocation4] sm:$0xf]  ;;  %4346 = vmatpush.msra.mxu2 %v4181_v58  ;;  %v4432_v58 = vld [vmem:[#allocation19 + $0x168] sm:$0xff] }
 0x488   :  { %4292 = vst [vmem:[#allocation1] ss:$4 sm:$0xff] %v4075_v46  ;;  %4366 = vmatpush.msra.mxu3 %v4213_v32  ;;  %v4395_v46 = vld [vmem:[#allocation19 + $0x40] sm:$0xff]  ;;  %v4389_v32 = vld [vmem:[#allocation19 + $0x10] sm:$0xff] }
 0x489   :  { %4347 = vmatpush.msra.mxu2 %v4179_v13  ;;  %4468 = vmatpush.msrb.mxu0 %v4395_v46  ;;  %v4429_v13 = vld [vmem:[#allocation19 + $0x150] sm:$0xff] }
 0x48a   :  { %4367 = vmatpush.msra.mxu3 %v4211_v15  ;;  %v4390_v15 = vld [vmem:[#allocation19 + $0x18] sm:$0xff]  ;;  %v4543_v46 = vld [vmem:[%s8810_s19 + $0x20] sm:$0xff] }
 0x48b   :  { %4348 = vmatpush.msra.mxu2 %v4177_v5  ;;  %4469 = vmatpush.msrb.mxu0 %v4393_v52  ;;  %v4430_v5 = vld [vmem:[#allocation19 + $0x158] sm:$0xff] }
 0x48c   :  { %4368 = vmatpush.msra.mxu3 %v4209_v62  ;;  %v4387_v62 = vld [vmem:[#allocation19] sm:$0xff]  ;;  %v4560_v37 = vld [vmem:[%s8810_s19 + $0xa8] sm:$0xff] }
 0x48d   :  { %4349 = vmatpush.msra.mxu2 %v4175_v19  ;;  %4470 = vmatpush.msrb.mxu0 %v4391_v41  ;;  %v4427_v19 = vld [vmem:[#allocation19 + $0x140] sm:$0xff]  ;;  %v4539_v41 = vld [vmem:[%s8810_s19] sm:$0xff] }
 0x48e   :  { %4369 = vmatpush.msra.mxu3 %v4207_v8  ;;  %v4388_v8 = vld [vmem:[#allocation19 + $0x8] sm:$0xff]  ;;  %v4541_v52 = vld [vmem:[%s8810_s19 + $0x10] sm:$0xff] }
 0x48f   :  { %v8673_v34 = vld.sshfl [vmem:[#allocation1] sm:$0xff pattern:$0x73625140]  ;;  %v8675_v22 = vld.sshfl [vmem:[#allocation1 + $0x8] sm:$0xff pattern:$0x73625140]  ;;  %4350 = vmatpush.msra.mxu2 %v4173_v49  ;;  %4471 = vmatpush.msrb.mxu0 %v4389_v32 }
 0x490   :  { %4313 = vmatmul.f32.vlgmr.msra.gmra.mxu0 %v8673_v34  ;;  %4333 = vmatmul.f32.vlgmr.msra.gmra.mxu1 %v8675_v22  ;;  %v4428_v49 = vld [vmem:[#allocation19 + $0x148] sm:$0xff] }
 0x491   :  { %4370 = vmatpush.msra.mxu3 %v4205_v28  ;;  %4351 = vmatpush.msra.mxu2 %v4171_v21  ;;  %v4425_v28 = vld [vmem:[#allocation19 + $0x130] sm:$0xff]  ;;  %v4426_v21 = vld [vmem:[#allocation19 + $0x138] sm:$0xff] }
 0x492   :  { %4472 = vmatpush.msrb.mxu0 %v4387_v62  ;;  %v4555_v32 = vld [vmem:[%s8810_s19 + $0x80] sm:$0xff] }
 0x493   :  { %4371 = vmatpush.msra.mxu3 %v4203_v54  ;;  %4352 = vmatpush.msra.mxu2 %v4169_v0  ;;  %v4423_v54 = vld [vmem:[#allocation19 + $0x120] sm:$0xff]  ;;  %v4424_v0 = vld [vmem:[#allocation19 + $0x128] sm:$0xff] }
 0x494   :  { %4575 = vmatpush.msra.mxu0 %v4554_v40 }
 0x495   :  { %4372 = vmatpush.msra.mxu3 %v4201_v23  ;;  %v4421_v23 = vld [vmem:[#allocation19 + $0x110] sm:$0xff] }
 0x4ea   :  { %v4165_v18 = vpop.f32.mrf.mxu1 }
 0x4eb   :  { %v4166_v55 = vadd.f32 %v6641_v25, %v4165_v18  ;;  %v4422_v25 = vld [vmem:[#allocation19 + $0x118] sm:$0xff]  ;;  %v4419_v18 = vld [vmem:[#allocation19 + $0x100] sm:$0xff] }
 0x4ed   :  { %6222 = vmatmul.msk.f32.vlgmr.msrb.gmra.mxu2 %vm4144_vm4, %v4166_v55  ;;  %6223 = vmatmul.msk.f32.vlgmr.msrb.gmra.mxu3 %vm4144_vm4, %v4166_v55  ;;  %v4420_v55 = vld [vmem:[#allocation19 + $0x108] sm:$0xff] }
 0x4ee   :  { %4497 = vmatpush.msrb.mxu2 %v4418_v39  ;;  %4517 = vmatpush.msrb.mxu3 %v4450_v53  ;;  %v4553_v39 = vld [vmem:[%s8810_s19 + $0x70] sm:$0xff]  ;;  %v4567_v53 = vld [vmem:[%s8810_s19 + $0xe0] sm:$0xff] }
 0x4ef   :  { %4576 = vmatpush.msra.mxu0 %v4553_v39 }
 0x4f0   :  { %4498 = vmatpush.msrb.mxu2 %v4416_v31  ;;  %4518 = vmatpush.msrb.mxu3 %v4448_v48  ;;  %v4552_v31 = vld [vmem:[%s8810_s19 + $0x68] sm:$0xff]  ;;  %v4565_v48 = vld [vmem:[%s8810_s19 + $0xd0] sm:$0xff] }
 0x4f1   :  { %4577 = vmatpush.msra.mxu0 %v4552_v31 }
 0x4f2   :  { %4499 = vmatpush.msrb.mxu2 %v4414_v1  ;;  %4519 = vmatpush.msrb.mxu3 %v4446_v3  ;;  %v4568_v1 = vld [vmem:[%s8810_s19 + $0xe8] sm:$0xff] }
 0x4f3   :  { %4578 = vmatpush.msra.mxu0 %v4551_v30 }
 0x4f4   :  { %4500 = vmatpush.msrb.mxu2 %v4412_v10  ;;  %4520 = vmatpush.msrb.mxu3 %v4444_v9  ;;  %v4566_v10 = vld [vmem:[%s8810_s19 + $0xd8] sm:$0xff] }
 0x4f5   :  { %4353 = vmatmul.f32.vlgmr.msra.gmra.mxu2 %v8673_v34  ;;  %4373 = vmatmul.f32.vlgmr.msra.gmra.mxu3 %v8675_v22  ;;  %v4431_v34 = vld [vmem:[#allocation19 + $0x160] sm:$0xff]  ;;  %v4392_v22 = vld [vmem:[#allocation19 + $0x28] sm:$0xff] }
 0x4f6   :  { %4501 = vmatpush.msrb.mxu2 %v4410_v43  ;;  %4521 = vmatpush.msrb.mxu3 %v4442_v4  ;;  %v4547_v43 = vld [vmem:[%s8810_s19 + $0x40] sm:$0xff] }
 0x4f7   :  { %4486 = vmatpush.msrb.mxu1 %v4431_v34  ;;  %4579 = vmatpush.msra.mxu0 %v4550_v29  ;;  %v4558_v34 = vld [vmem:[%s8810_s19 + $0x98] sm:$0xff] }
 0x4f8   :  { %4502 = vmatpush.msrb.mxu2 %v4408_v20  ;;  %4522 = vmatpush.msrb.mxu3 %v4440_v12  ;;  %v4380_v12 = vperm.slane %v4377_v6, 1 }
 0x4f9   :  { %4487 = vmatpush.msrb.mxu1 %v4429_v13  ;;  %4580 = vmatpush.msra.mxu0 %v4549_v50  ;;  %v4451_v13 = vld [vmem:[%s8809_s18] sm:$0x3]  ;;  %s6992_s18 = smov [#allocation20]  }
 0x4fa   :  { %4503 = vmatpush.msrb.mxu2 %v4406_v63  ;;  %4523 = vmatpush.msrb.mxu3 %v4438_v35  ;;  %s4622_s2 = sshll.u32 %s6992_s18, 4  ;;  %s4623_s2 = int_to_ptr.vmem [resolvable:$true] %s4622_s2 }
 0x4fb   :  { %4488 = vmatpush.msrb.mxu1 %v4427_v19  ;;  %4581 = vmatpush.msra.mxu0 %v4548_v16 }
 0x4fc   :  { %4504 = vmatpush.msrb.mxu2 %v4404_v47  ;;  %4524 = vmatpush.msrb.mxu3 %v4436_v11  ;;  %v4561_v11 = vld [vmem:[%s8810_s19 + $0xb0] sm:$0xff] }
 0x4fd   :  { %4489 = vmatpush.msrb.mxu1 %v4425_v28  ;;  %4582 = vmatpush.msra.mxu0 %v4547_v43 }
 0x4fe   :  { %4505 = vmatpush.msrb.mxu2 %v4402_v27  ;;  %4525 = vmatpush.msrb.mxu3 %v4434_v17  ;;  %v4559_v17 = vld [vmem:[%s8810_s19 + $0xa0] sm:$0xff] }
 0x4ff   :  { %4490 = vmatpush.msrb.mxu1 %v4423_v54  ;;  %4583 = vmatpush.msra.mxu0 %v4546_v7 }
 0x500   :  { %4506 = vmatpush.msrb.mxu2 %v4400_v2  ;;  %4526 = vmatpush.msrb.mxu3 %v4432_v58  ;;  %v4564_v2 = vld [vmem:[%s8810_s19 + $0xc8] sm:$0xff] }
 0x501   :  { %4491 = vmatpush.msrb.mxu1 %v4421_v23  ;;  %4584 = vmatpush.msra.mxu0 %v4545_v36  ;;  %v4556_v58 = vld [vmem:[%s8810_s19 + $0x88] sm:$0xff] }
 0x502   :  { %4507 = vmatpush.msrb.mxu2 %v4398_v44  ;;  %4527 = vmatpush.msrb.mxu3 %v4430_v5  ;;  %v4563_v44 = vld [vmem:[%s8810_s19 + $0xc0] sm:$0xff] }
 0x503   :  { %4492 = vmatpush.msrb.mxu1 %v4419_v18  ;;  %4585 = vmatpush.msra.mxu0 %v4544_v60  ;;  %v6642_v18 = vld [vmem:[%s8811_s20] ss:$0 sm:$0xff] }
 0x504   :  { %4508 = vmatpush.msrb.mxu2 %v4396_v24  ;;  %4528 = vmatpush.msrb.mxu3 %v4428_v49  ;;  %v4542_v24 = vld [vmem:[%s8810_s19 + $0x18] sm:$0xff] }
 0x505   :  { %4595 = vmatpush.msra.mxu1 %v4570_v42  ;;  %4586 = vmatpush.msra.mxu0 %v4543_v46 }
 0x506   :  { %4509 = vmatpush.msrb.mxu2 %v4394_v33  ;;  %4529 = vmatpush.msrb.mxu3 %v4426_v21  ;;  %v4540_v33 = vld [vmem:[%s8810_s19 + $0x8] sm:$0xff] }
 0x507   :  { %4596 = vmatpush.msra.mxu1 %v4569_v61  ;;  %4587 = vmatpush.msra.mxu0 %v4542_v24 }
 0x508   :  { %4510 = vmatpush.msrb.mxu2 %v4392_v22  ;;  %4530 = vmatpush.msrb.mxu3 %v4424_v0  ;;  %v4557_v22 = vld [vmem:[%s8810_s19 + $0x90] sm:$0xff] }
 0x509   :  { %4597 = vmatpush.msra.mxu1 %v4568_v1  ;;  %4588 = vmatpush.msra.mxu0 %v4541_v52 }
 0x50a   :  { %4511 = vmatpush.msrb.mxu2 %v4390_v15  ;;  %4531 = vmatpush.msrb.mxu3 %v4422_v25  ;;  %v4453_v15 = vperm.slane %v4451_v13, 0 }
 0x50b   :  { %4598 = vmatpush.msra.mxu1 %v4567_v53  ;;  %4589 = vmatpush.msra.mxu0 %v4540_v33 }
 0x50c   :  { %4512 = vmatpush.msrb.mxu2 %v4388_v8  ;;  %4532 = vmatpush.msrb.mxu3 %v4420_v55  ;;  %v4454_v8 = vperm.slane %v4451_v13, 1 }
 0x50d   :  { %4599 = vmatpush.msra.mxu1 %v4566_v10  ;;  %v4314_v3 = vpop.f32.mrf.mxu0  ;;  %v4334_v63 = vpop.f32.mrf.mxu1  ;;  %4590 = vmatpush.msra.mxu0 %v4539_v41 }
 0x50f   :  { %4600 = vmatpush.msra.mxu1 %v4565_v48 }
 0x511   :  { %4601 = vmatpush.msra.mxu1 %v4564_v2 }
 0x513   :  { %4602 = vmatpush.msra.mxu1 %v4563_v44 }
 0x515   :  { %4603 = vmatpush.msra.mxu1 %v4562_v45 }
 0x517   :  { %4604 = vmatpush.msra.mxu1 %v4561_v11 }
 0x519   :  { %4605 = vmatpush.msra.mxu1 %v4560_v37 }
 0x51b   :  { %4606 = vmatpush.msra.mxu1 %v4559_v17 }
 0x51d   :  { %4607 = vmatpush.msra.mxu1 %v4558_v34 }
 0x51f   :  { %4608 = vmatpush.msra.mxu1 %v4557_v22 }
 0x521   :  { %4609 = vmatpush.msra.mxu1 %v4556_v58 }
 0x523   :  { %4610 = vmatpush.msra.mxu1 %v4555_v32 }
 0x570   :  { %v4268_v20 = vpop.f32.mrf.mxu2  ;;  %v4288_v51 = vpop.f32.mrf.mxu3 }
 0x571   :  { %v4315_v9 = vadd.f32 %v4314_v3, %v4268_v20 }
 0x573   :  { %v4335_v59 = vadd.f32 %v4334_v63, %v4315_v9 }
 0x575   :  { %v4383_v4 = vadd.f32 %v4379_v26, %v4335_v59 }
 0x577   :  { %v4385_v38 = vmax.f32 %v4383_v4, 0.0 }
 0x578   :  { %v4354_v47 = vpop.f32.mrf.mxu2  ;;  %v4374_v57 = vpop.f32.mrf.mxu3 }
 0x579   :  { %v4355_v56 = vadd.f32 %v4354_v47, %v4288_v51  ;;  %4473 = vmatmul.f32.vlgmr.msrb.gmra.mxu0 %v4385_v38  ;;  %4513 = vmatmul.f32.vlgmr.msrb.gmra.mxu2 %v4385_v38 }
 0x57b   :  { %v4375_v27 = vadd.f32 %v4374_v57, %v4355_v56 }
 0x57d   :  { %v4384_v14 = vadd.f32 %v4380_v12, %v4375_v27 }
 0x57f   :  { %v4386_v35 = vmax.f32 %v4384_v14, 0.0 }
 0x581   :  { %4493 = vmatmul.f32.vlgmr.msrb.gmra.mxu1 %v4386_v35  ;;  %4533 = vmatmul.f32.vlgmr.msrb.gmra.mxu3 %v4386_v35 }
 0x5f6   :  { %v4474_v5 = vpop.f32.mrf.mxu0 }
 0x5f7   :  { %v4475_v62 = vadd.f32 %v4474_v5, %v4453_v15 }
 0x5fc   :  { %v4514_v28 = vpop.f32.mrf.mxu2 }
 0x5fd   :  { %v4515_v54 = vadd.f32 %v4514_v28, %v4454_v8 }
 0x5fe   :  { %v4494_v19 = vpop.f32.mrf.mxu1 }
 0x5ff   :  { %v4495_v49 = vadd.f32 %v4494_v19, %v4475_v62 }
 0x601   :  { %v4537_v21 = vmax.f32 %v4495_v49, 0.0 }
 0x603   :  { %4591 = vmatmul.f32.vlgmr.msra.gmra.mxu0 %v4537_v21 }
 0x604   :  { %v4534_v0 = vpop.f32.mrf.mxu3 }
 0x605   :  { %v4535_v23 = vadd.f32 %v4534_v0, %v4515_v54 }
 0x607   :  { %v4538_v25 = vmax.f32 %v4535_v23, 0.0 }
 0x609   :  { %4611 = vmatmul.f32.vlgmr.msra.gmra.mxu1 %v4538_v25 }
 0x680   :  { %v4592_v55 = vpop.f32.mrf.mxu0 }
 0x681   :  { %v4593_v40 = vadd.f32 %v6642_v18, %v4592_v55 }
 0x686   :  { %v4612_v39 = vpop.f32.mrf.mxu1 }
 0x687   :  { %v4613_v42 = vadd.f32 %v4612_v39, %v4593_v40 }
 0x689   :  { %4616 = vst.msk [vmem:[#allocation20] sm:$0x3] %vm4615_vm5, %v4613_v42 }
 0x68a   :  { %4627 = dma.vmem_to_hbm [thread:$0]  %s4623_s2, 32, %s4625_s10, [#allocation7]  }
 0x68b   :  { %6973 = dma.done.wait [#allocation7], 32  }
 0x68c   :  { %6974 = vsyncadd [#allocation7], 4294967264 }
 0x68d   :  { %4632 = vsyncpa [#allocation6], 1 }
 0x68e   :  { %4633 = vsyncpa [#allocation9], 1 }
 0x68f   :  { %4634 = vsyncpa [#allocation12], 1 }
 0x690   :  { %4635 = vsyncpa [#allocation15], 1 }
 0x691   :  { %4636 = vsyncpa [#allocation18], 1 }
 0x692   :  { %4637 = vsyncpa [#allocation7], 1 }

</bundles_post_ra>
